<compile_context>
chip_gen: v6e
topology: v6e:2x2x1
jax: 0.10.0
libtpu: 0.0.40
codegen_flags: <defaults>
</compile_context>

<pallas_src>
import functools

import jax
import jax.numpy as jnp
import numpy as np
from jax import lax
from jax.experimental import pallas as pl
from jax.experimental.pallas import tpu as pltpu


def _build_kernel(*, K, S, Cin, O1, O2, TH, DH, W_L):
    SW = S * W_L                      # lanes per input channel (W phases x W_L)

    # For each H-phase q: which conv1 taps land there and their row offsets.
    phase_taps = {}
    for dh in range(K):
        phase_taps.setdefault(dh % S, []).append((dh, dh // S))

    def kernel(x_ref, w1_ref, w2_ref, bias2_ref, o_ref):
        # grid = (batch, h_out-block); h0 = first output row of this block.
        h0 = pl.multiple_of(pl.program_id(1) * TH, TH)

        for o in range(O1):                       # conv2 group / shuffle index
            # ---- conv1 (K,1) along H for group channel o (BN1 scale folded)
            # acc1 : (TH, S*W_L) f32, lane layout = (w-phase p, w-position u)
            acc1 = None
            for c in range(Cin):
                for q, taps in phase_taps.items():
                    rows = TH + max(off for _, off in taps)
                    xw = x_ref[0, q, pl.ds(h0, rows),
                               c * SW:(c + 1) * SW].astype(jnp.float32)
                    for dh, off in taps:
                        xs = xw if (off == 0 and rows == TH) else xw[off:off + TH, :]
                        t = xs * w1_ref[dh * Cin * O1 + c * O1 + o]   # SMEM scalar
                        acc1 = t if acc1 is None else acc1 + t

            # ---- build K shifted conv2 taps (masked BN1 shift is folded into
            # bias2 in the wrapper, so acc1 is used directly).  Wrapped lanes
            # land at u >= W_out and are discarded by the wrapper slice.
            taps2 = []
            for dw in range(K):
                p, d = dw % S, dw // S
                v = acc1[:, p * W_L:(p + 1) * W_L]
                if d > 0:
                    # == jnp.roll(v, -d, axis=1): tap[u] = acc1_phase_p[u + d]
                    v = pltpu.roll(v, shift=W_L - d, axis=1)
                taps2.append(v)

            # ---- grouped conv2 (1,K) along W (BN2 scale folded into w2) -----
            # ---- + ChannelShuffle(groups=O1): out channel = c2*O1 + o -------
            for c2 in range(O2):
                ch = o * O2 + c2                  # conv2 channel (torch order)
                acc2 = None
                for dw in range(K):
                    t = taps2[dw] * w2_ref[ch * K + dw]               # SMEM scalar
                    acc2 = t if acc2 is None else acc2 + t
                y2 = acc2 + bias2_ref[ch:ch + 1, :]   # folded BN1/BN2 shifts
                o_ref[0, c2 * O1 + o, :, :] = y2.astype(o_ref.dtype)

    return kernel


def spatial_sep_conv_sf(x, params, *, kernel_size, stride, eps=1e-5,
                        storage_dtype=jnp.bfloat16):
    K, S = kernel_size, stride
    P = K // 2
    B, Cin, H, W = x.shape
    w1 = params["w1"]                      # (O1, Cin, K, 1)   torch layout
    g1, be1, m1, v1 = params["bn1"]
    w2 = params["w2"]                      # (O1*O2, 1, 1, K)  torch layout
    g2, be2, m2, v2 = params["bn2"]
    O1 = w1.shape[0]
    O2 = w2.shape[0] // O1
    H_out = (H + 2 * P - K) // S + 1
    W_out = (W + 2 * P - K) // S + 1
    DH = (K - 1) // S                      # max static in-phase tap offset

    # --- polyphase geometry (stride-S phases along both H and W) -----------
    H_L = max(H_out + DH, -(-(H + 2 * P) // S))
    W_L = max(W_out + DH, -(-(P + W) // S))
    W_L = ((W_L + 127) // 128) * 128       # lane-dense width per W-phase
    SW = S * W_L
    CSW = Cin * SW

    # --- H_out tiling (block must be a multiple of 8 or the full extent) ---
    TH = next((b for b in (64, 56, 32, 16, 8) if H_out % b == 0), H_out)
    n_hb = H_out // TH

    # --- input: zero-pad, split into (S x S) polyphase grid ----------------
    # padded coords: h = S*t + q , w = S*u + p ; data occupies [P,P+H)x[P,P+W)
    xp = jnp.zeros((B, Cin, S * H_L, S * W_L), x.dtype)
    xp = xp.at[:, :, P:P + H, P:P + W].set(x)
    xp = xp.reshape(B, Cin, H_L, S, W_L, S)           # (b, c, t, q, u, p)
    xk = jnp.transpose(xp, (0, 3, 2, 1, 5, 4))        # (b, q, t, c, p, u)
    xk = xk.reshape(B, S, H_L, CSW).astype(storage_dtype)

    # --- fold BN (inference mode) into the conv weights ---------------------
    s1 = (g1 / jnp.sqrt(v1 + eps)).astype(jnp.float32)
    b1 = (be1 - m1 * s1).astype(jnp.float32)
    w1f = (jnp.transpose(w1[:, :, :, 0].astype(jnp.float32), (2, 1, 0))
           * s1[None, None, :]).reshape(-1)           # flat index [dh, cin, o1]

    s2 = (g2 / jnp.sqrt(v2 + eps)).astype(jnp.float32)
    b2 = (be2 - m2 * s2).astype(jnp.float32)
    w2m = w2[:, 0, 0, :].astype(jnp.float32) * s2[:, None]   # (O1*O2, K)

    # --- fold the masked BN1 shift through conv2 into a per-channel lane row
    # (acc1 is exactly zero on W-padding lanes, so y1 = acc1 + masked_b1).
    u = jnp.arange(W_L)
    tap_rows = []
    for dw in range(K):
        p, d = dw % S, dw // S
        coord = u * S + p
        row = ((coord >= P) & (coord < P + W)).astype(jnp.float32)
        if d > 0:
            row = jnp.roll(row, -d)        # same wrap semantics as the kernel
        tap_rows.append(row)
    tap_rows = jnp.stack(tap_rows)                              # (K, W_L)
    tap_bias = b1[:, None, None] * tap_rows[None, :, :]         # (O1, K, W_L)
    bias2 = (jnp.einsum("gck,gkw->gcw", w2m.reshape(O1, O2, K), tap_bias)
             .reshape(O1 * O2, W_L) + b2[:, None]).astype(jnp.float32)
    w2f = w2m.reshape(-1)                  # flat index [(c1*O2 + c2), dw]

    kernel = _build_kernel(K=K, S=S, Cin=Cin, O1=O1, O2=O2,
                           TH=TH, DH=DH, W_L=W_L)

    # --- VMEM budget from the actual buffers (double-buffered) + headroom ---
    itm = jnp.dtype(storage_dtype).itemsize
    in_bytes = S * H_L * CSW * itm
    out_bytes = O1 * O2 * TH * W_L * itm
    bias_bytes = O1 * O2 * W_L * 4
    vmem_need = 2 * in_bytes + 2 * out_bytes + 2 * bias_bytes
    vmem_limit = int(min(max(3 * vmem_need, 8 << 20) + (8 << 20), 48 << 20))

    smem = pl.BlockSpec(memory_space=pltpu.MemorySpace.SMEM)
    out = pl.pallas_call(
        kernel,
        out_shape=jax.ShapeDtypeStruct((B, O1 * O2, H_out, W_L), storage_dtype),
        grid_spec=pltpu.PrefetchScalarGridSpec(
            num_scalar_prefetch=0,
            grid=(B, n_hb),
            in_specs=[
                pl.BlockSpec((1, S, H_L, CSW), lambda b, h: (b, 0, 0, 0)),
                smem,                                    # w1f (folded)
                smem,                                    # w2f (folded)
                pl.BlockSpec((O1 * O2, W_L), lambda b, h: (0, 0)),   # bias2
            ],
            out_specs=pl.BlockSpec((1, O1 * O2, TH, W_L),
                                   lambda b, h: (b, 0, h, 0)),
        ),
        compiler_params=pltpu.CompilerParams(
            dimension_semantics=("parallel", "parallel"),
            vmem_limit_bytes=vmem_limit,
        ),
    )(xk, w1f, w2f, bias2)

    # lane padding beyond W_out is discarded; layout is already NCHW.
    return out[:, :, :, :W_out]


def reference(x, params, *, kernel_size, stride, eps=1e-5):
    """Pure-JAX (XLA) reference matching the PyTorch module in eval mode."""
    K, S, P = kernel_size, stride, kernel_size // 2
    w1 = params["w1"]
    g1, be1, m1, v1 = params["bn1"]
    w2 = params["w2"]
    g2, be2, m2, v2 = params["bn2"]
    O1 = w1.shape[0]

    y = lax.conv_general_dilated(x, w1, (S, 1), ((P, P), (0, 0)),
                                 dimension_numbers=("NCHW", "OIHW", "NCHW"))
    y = ((y - m1[None, :, None, None]) / jnp.sqrt(v1 + eps)[None, :, None, None]
         * g1[None, :, None, None] + be1[None, :, None, None])
    y = lax.conv_general_dilated(y, w2, (1, S), ((0, 0), (P, P)),
                                 dimension_numbers=("NCHW", "OIHW", "NCHW"),
                                 feature_group_count=O1)
    y = ((y - m2[None, :, None, None]) / jnp.sqrt(v2 + eps)[None, :, None, None]
         * g2[None, :, None, None] + be2[None, :, None, None])
    B, C, Ho, Wo = y.shape
    O2 = C // O1
    y = y.reshape(B, O1, O2, Ho, Wo).transpose(0, 2, 1, 3, 4).reshape(B, C, Ho, Wo)
    return y


if __name__ == "__main__":
    B, Cin, H, W = 2, 4, 16, 16
    O1, O2 = 4, 8                 # outs = (4, 8)
    K, S = 3, 2                   # kernel_size=3, stride=2

    key = jax.random.PRNGKey(0)
    ks = jax.random.split(key, 11)
    x = jax.random.normal(ks[0], (B, Cin, H, W), jnp.float32)
    params = {
        "w1": jax.random.normal(ks[1], (O1, Cin, K, 1), jnp.float32) * 0.3,
        "bn1": (jax.random.uniform(ks[2], (O1,), minval=0.5, maxval=1.5),
                jax.random.normal(ks[3], (O1,)) * 0.1,
                jax.random.normal(ks[4], (O1,)) * 0.1,
                jax.random.uniform(ks[5], (O1,), minval=0.5, maxval=1.5)),
        "w2": jax.random.normal(ks[6], (O1 * O2, 1, 1, K), jnp.float32) * 0.3,
        "bn2": (jax.random.uniform(ks[7], (O1 * O2,), minval=0.5, maxval=1.5),
                jax.random.normal(ks[8], (O1 * O2,)) * 0.1,
                jax.random.normal(ks[9], (O1 * O2,)) * 0.1,
                jax.random.uniform(ks[10], (O1 * O2,), minval=0.5, maxval=1.5)),
    }

    H_out = (H + 2 * (K // 2) - K) // S + 1
    W_out = (W + 2 * (K // 2) - K) // S + 1

    # f32 storage + f32 output: tight check against the XLA reference.
    fwd_f32 = jax.jit(functools.partial(spatial_sep_conv_sf, kernel_size=K,
                                        stride=S, storage_dtype=jnp.float32))
    out = jax.block_until_ready(fwd_f32(x, params))
    assert out.shape == (B, O1 * O2, H_out, W_out), out.shape
    ref = reference(x, params, kernel_size=K, stride=S)
    np.testing.assert_allclose(np.asarray(out), np.asarray(ref),
                               rtol=1e-4, atol=1e-4)

    # bf16 storage/output (default; f32 accumulation in-kernel).
    fwd_bf16 = jax.jit(functools.partial(spatial_sep_conv_sf, kernel_size=K,
                                         stride=S))
    out_bf = jax.block_until_ready(fwd_bf16(x, params))
    assert out_bf.dtype == jnp.bfloat16 and out_bf.shape == out.shape
    x_rt = x.astype(jnp.bfloat16).astype(jnp.float32)
    ref_bf = reference(x_rt, params, kernel_size=K, stride=S)
    np.testing.assert_allclose(np.asarray(out_bf.astype(jnp.float32)),
                               np.asarray(ref_bf), rtol=1e-2, atol=2e-2)

    print("KERNEL_OK")
</pallas_src>

<mosaic_0001>
module attributes {stable_mosaic.version = 11 : i64} {
  func.func @kernel(%arg0: i32, %arg1: i32, %arg2: memref<1x2x9x1024xf32, #tpu.memory_space<vmem>>, %arg3: memref<48xf32, #tpu.memory_space<smem>>, %arg4: memref<96xf32, #tpu.memory_space<smem>>, %arg5: memref<32x128xf32, #tpu.memory_space<vmem>>, %arg6: memref<1x32x8x128xf32, #tpu.memory_space<vmem>>) attributes {dimension_semantics = [#tpu.dimension_semantics<parallel>, #tpu.dimension_semantics<parallel>], iteration_bounds = array<i64: 2, 1>, scalar_prefetch = 0 : i64, scratch_operands = 0 : i64, tpu.core_type = #tpu.core_type<tc>, window_params = [{transform_indices = @transform_0, window_bounds = array<i64: 1, 2, 9, 1024>}, {transform_indices = @transform_1, window_bounds = array<i64: 48>}, {transform_indices = @transform_2, window_bounds = array<i64: 96>}, {pipeline_mode = #tpu.pipeline_mode<synchronous>, transform_indices = @transform_3, window_bounds = array<i64: 32, 128>}, {transform_indices = @transform_4, window_bounds = array<i64: 1, 32, 8, 128>}]} {
    %c8_i32 = arith.constant 8 : i32
    %0 = arith.muli %arg1, %c8_i32 : i32
    %1 = tpu.assume_multiple %0, 8 : i32
    %c0 = arith.constant 0 : index
    %c0_0 = arith.constant 0 : index
    %2 = arith.index_cast %1 : i32 to index
    %c0_1 = arith.constant 0 : index
    %3 = vector.load %arg2[%c0, %c0_0, %2, %c0_1] : memref<1x2x9x1024xf32, #tpu.memory_space<vmem>>, vector<1x1x9x256xf32>
    %4 = vector.shape_cast %3 : vector<1x1x9x256xf32> to vector<9x256xf32>
    %5 = vector.extract_strided_slice %4 {offsets = [0, 0], sizes = [8, 256], strides = [1, 1]} : vector<9x256xf32> to vector<8x256xf32>
    %c0_2 = arith.constant 0 : index
    %6 = memref.load %arg3[%c0_2] : memref<48xf32, #tpu.memory_space<smem>>
    %7 = vector.broadcast %6 : f32 to vector<8x256xf32>
    %8 = arith.mulf %5, %7 : vector<8x256xf32>
    %9 = vector.extract_strided_slice %4 {offsets = [1, 0], sizes = [8, 256], strides = [1, 1]} : vector<9x256xf32> to vector<8x256xf32>
    %c32 = arith.constant 32 : index
    %10 = memref.load %arg3[%c32] : memref<48xf32, #tpu.memory_space<smem>>
    %11 = vector.broadcast %10 : f32 to vector<8x256xf32>
    %12 = arith.mulf %9, %11 : vector<8x256xf32>
    %13 = arith.addf %8, %12 : vector<8x256xf32>
    %c0_3 = arith.constant 0 : index
    %c1 = arith.constant 1 : index
    %14 = arith.index_cast %1 : i32 to index
    %c0_4 = arith.constant 0 : index
    %15 = vector.load %arg2[%c0_3, %c1, %14, %c0_4] : memref<1x2x9x1024xf32, #tpu.memory_space<vmem>>, vector<1x1x8x256xf32>
    %16 = vector.shape_cast %15 : vector<1x1x8x256xf32> to vector<8x256xf32>
    %c16 = arith.constant 16 : index
    %17 = memref.load %arg3[%c16] : memref<48xf32, #tpu.memory_space<smem>>
    %18 = vector.broadcast %17 : f32 to vector<8x256xf32>
    %19 = arith.mulf %16, %18 : vector<8x256xf32>
    %20 = arith.addf %13, %19 : vector<8x256xf32>
    %c0_5 = arith.constant 0 : index
    %c0_6 = arith.constant 0 : index
    %21 = arith.index_cast %1 : i32 to index
    %c256 = arith.constant 256 : index
    %22 = vector.load %arg2[%c0_5, %c0_6, %21, %c256] : memref<1x2x9x1024xf32, #tpu.memory_space<vmem>>, vector<1x1x9x256xf32>
    %23 = vector.shape_cast %22 : vector<1x1x9x256xf32> to vector<9x256xf32>
    %24 = vector.extract_strided_slice %23 {offsets = [0, 0], sizes = [8, 256], strides = [1, 1]} : vector<9x256xf32> to vector<8x256xf32>
    %c4 = arith.constant 4 : index
    %25 = memref.load %arg3[%c4] : memref<48xf32, #tpu.memory_space<smem>>
    %26 = vector.broadcast %25 : f32 to vector<8x256xf32>
    %27 = arith.mulf %24, %26 : vector<8x256xf32>
    %28 = arith.addf %20, %27 : vector<8x256xf32>
    %29 = vector.extract_strided_slice %23 {offsets = [1, 0], sizes = [8, 256], strides = [1, 1]} : vector<9x256xf32> to vector<8x256xf32>
    %c36 = arith.constant 36 : index
    %30 = memref.load %arg3[%c36] : memref<48xf32, #tpu.memory_space<smem>>
    %31 = vector.broadcast %30 : f32 to vector<8x256xf32>
    %32 = arith.mulf %29, %31 : vector<8x256xf32>
    %33 = arith.addf %28, %32 : vector<8x256xf32>
    %c0_7 = arith.constant 0 : index
    %c1_8 = arith.constant 1 : index
    %34 = arith.index_cast %1 : i32 to index
    %c256_9 = arith.constant 256 : index
    %35 = vector.load %arg2[%c0_7, %c1_8, %34, %c256_9] : memref<1x2x9x1024xf32, #tpu.memory_space<vmem>>, vector<1x1x8x256xf32>
    %36 = vector.shape_cast %35 : vector<1x1x8x256xf32> to vector<8x256xf32>
    %c20 = arith.constant 20 : index
    %37 = memref.load %arg3[%c20] : memref<48xf32, #tpu.memory_space<smem>>
    %38 = vector.broadcast %37 : f32 to vector<8x256xf32>
    %39 = arith.mulf %36, %38 : vector<8x256xf32>
    %40 = arith.addf %33, %39 : vector<8x256xf32>
    %c0_10 = arith.constant 0 : index
    %c0_11 = arith.constant 0 : index
    %41 = arith.index_cast %1 : i32 to index
    %c512 = arith.constant 512 : index
    %42 = vector.load %arg2[%c0_10, %c0_11, %41, %c512] : memref<1x2x9x1024xf32, #tpu.memory_space<vmem>>, vector<1x1x9x256xf32>
    %43 = vector.shape_cast %42 : vector<1x1x9x256xf32> to vector<9x256xf32>
    %44 = vector.extract_strided_slice %43 {offsets = [0, 0], sizes = [8, 256], strides = [1, 1]} : vector<9x256xf32> to vector<8x256xf32>
    %c8 = arith.constant 8 : index
    %45 = memref.load %arg3[%c8] : memref<48xf32, #tpu.memory_space<smem>>
    %46 = vector.broadcast %45 : f32 to vector<8x256xf32>
    %47 = arith.mulf %44, %46 : vector<8x256xf32>
    %48 = arith.addf %40, %47 : vector<8x256xf32>
    %49 = vector.extract_strided_slice %43 {offsets = [1, 0], sizes = [8, 256], strides = [1, 1]} : vector<9x256xf32> to vector<8x256xf32>
    %c40 = arith.constant 40 : index
    %50 = memref.load %arg3[%c40] : memref<48xf32, #tpu.memory_space<smem>>
    %51 = vector.broadcast %50 : f32 to vector<8x256xf32>
    %52 = arith.mulf %49, %51 : vector<8x256xf32>
    %53 = arith.addf %48, %52 : vector<8x256xf32>
    %c0_12 = arith.constant 0 : index
    %c1_13 = arith.constant 1 : index
    %54 = arith.index_cast %1 : i32 to index
    %c512_14 = arith.constant 512 : index
    %55 = vector.load %arg2[%c0_12, %c1_13, %54, %c512_14] : memref<1x2x9x1024xf32, #tpu.memory_space<vmem>>, vector<1x1x8x256xf32>
    %56 = vector.shape_cast %55 : vector<1x1x8x256xf32> to vector<8x256xf32>
    %c24 = arith.constant 24 : index
    %57 = memref.load %arg3[%c24] : memref<48xf32, #tpu.memory_space<smem>>
    %58 = vector.broadcast %57 : f32 to vector<8x256xf32>
    %59 = arith.mulf %56, %58 : vector<8x256xf32>
    %60 = arith.addf %53, %59 : vector<8x256xf32>
    %c0_15 = arith.constant 0 : index
    %c0_16 = arith.constant 0 : index
    %61 = arith.index_cast %1 : i32 to index
    %c768 = arith.constant 768 : index
    %62 = vector.load %arg2[%c0_15, %c0_16, %61, %c768] : memref<1x2x9x1024xf32, #tpu.memory_space<vmem>>, vector<1x1x9x256xf32>
    %63 = vector.shape_cast %62 : vector<1x1x9x256xf32> to vector<9x256xf32>
    %64 = vector.extract_strided_slice %63 {offsets = [0, 0], sizes = [8, 256], strides = [1, 1]} : vector<9x256xf32> to vector<8x256xf32>
    %c12 = arith.constant 12 : index
    %65 = memref.load %arg3[%c12] : memref<48xf32, #tpu.memory_space<smem>>
    %66 = vector.broadcast %65 : f32 to vector<8x256xf32>
    %67 = arith.mulf %64, %66 : vector<8x256xf32>
    %68 = arith.addf %60, %67 : vector<8x256xf32>
    %69 = vector.extract_strided_slice %63 {offsets = [1, 0], sizes = [8, 256], strides = [1, 1]} : vector<9x256xf32> to vector<8x256xf32>
    %c44 = arith.constant 44 : index
    %70 = memref.load %arg3[%c44] : memref<48xf32, #tpu.memory_space<smem>>
    %71 = vector.broadcast %70 : f32 to vector<8x256xf32>
    %72 = arith.mulf %69, %71 : vector<8x256xf32>
    %73 = arith.addf %68, %72 : vector<8x256xf32>
    %c0_17 = arith.constant 0 : index
    %c1_18 = arith.constant 1 : index
    %74 = arith.index_cast %1 : i32 to index
    %c768_19 = arith.constant 768 : index
    %75 = vector.load %arg2[%c0_17, %c1_18, %74, %c768_19] : memref<1x2x9x1024xf32, #tpu.memory_space<vmem>>, vector<1x1x8x256xf32>
    %76 = vector.shape_cast %75 : vector<1x1x8x256xf32> to vector<8x256xf32>
    %c28 = arith.constant 28 : index
    %77 = memref.load %arg3[%c28] : memref<48xf32, #tpu.memory_space<smem>>
    %78 = vector.broadcast %77 : f32 to vector<8x256xf32>
    %79 = arith.mulf %76, %78 : vector<8x256xf32>
    %80 = arith.addf %73, %79 : vector<8x256xf32>
    %81 = vector.extract_strided_slice %80 {offsets = [0, 0], sizes = [8, 128], strides = [1, 1]} : vector<8x256xf32> to vector<8x128xf32>
    %82 = vector.extract_strided_slice %80 {offsets = [0, 128], sizes = [8, 128], strides = [1, 1]} : vector<8x256xf32> to vector<8x128xf32>
    %83 = vector.extract_strided_slice %80 {offsets = [0, 0], sizes = [8, 128], strides = [1, 1]} : vector<8x256xf32> to vector<8x128xf32>
    %c127_i32 = arith.constant 127 : i32
    %84 = tpu.dynamic_rotate %83 by %c127_i32 dim 1 : vector<8x128xf32>, i32 -> vector<8x128xf32>
    %c0_20 = arith.constant 0 : index
    %85 = memref.load %arg4[%c0_20] : memref<96xf32, #tpu.memory_space<smem>>
    %86 = vector.broadcast %85 : f32 to vector<8x128xf32>
    %87 = arith.mulf %81, %86 : vector<8x128xf32>
    %c1_21 = arith.constant 1 : index
    %88 = memref.load %arg4[%c1_21] : memref<96xf32, #tpu.memory_space<smem>>
    %89 = vector.broadcast %88 : f32 to vector<8x128xf32>
    %90 = arith.mulf %82, %89 : vector<8x128xf32>
    %91 = arith.addf %87, %90 : vector<8x128xf32>
    %c2 = arith.constant 2 : index
    %92 = memref.load %arg4[%c2] : memref<96xf32, #tpu.memory_space<smem>>
    %93 = vector.broadcast %92 : f32 to vector<8x128xf32>
    %94 = arith.mulf %84, %93 : vector<8x128xf32>
    %95 = arith.addf %91, %94 : vector<8x128xf32>
    %c0_22 = arith.constant 0 : index
    %c0_23 = arith.constant 0 : index
    %96 = vector.load %arg5[%c0_22, %c0_23] : memref<32x128xf32, #tpu.memory_space<vmem>>, vector<1x128xf32>
    %97 = vector.broadcast %96 : vector<1x128xf32> to vector<8x128xf32>
    %98 = arith.addf %95, %97 : vector<8x128xf32>
    %c0_24 = arith.constant 0 : index
    %c0_25 = arith.constant 0 : index
    %c0_26 = arith.constant 0 : index
    %c0_27 = arith.constant 0 : index
    %99 = vector.load %arg6[%c0_24, %c0_25, %c0_26, %c0_27] : memref<1x32x8x128xf32, #tpu.memory_space<vmem>>, vector<1x1x8x128xf32>
    %100 = vector.shape_cast %99 : vector<1x1x8x128xf32> to vector<8x128xf32>
    %101 = vector.shape_cast %98 : vector<8x128xf32> to vector<1x1x8x128xf32>
    tpu.vector_store %arg6[%c0_24, %c0_25, %c0_26, %c0_27], %101 {strides = array<i32>} : memref<1x32x8x128xf32, #tpu.memory_space<vmem>>, vector<1x1x8x128xf32>,
    %c3 = arith.constant 3 : index
    %102 = memref.load %arg4[%c3] : memref<96xf32, #tpu.memory_space<smem>>
    %103 = vector.broadcast %102 : f32 to vector<8x128xf32>
    %104 = arith.mulf %81, %103 : vector<8x128xf32>
    %c4_28 = arith.constant 4 : index
    %105 = memref.load %arg4[%c4_28] : memref<96xf32, #tpu.memory_space<smem>>
    %106 = vector.broadcast %105 : f32 to vector<8x128xf32>
    %107 = arith.mulf %82, %106 : vector<8x128xf32>
    %108 = arith.addf %104, %107 : vector<8x128xf32>
    %c5 = arith.constant 5 : index
    %109 = memref.load %arg4[%c5] : memref<96xf32, #tpu.memory_space<smem>>
    %110 = vector.broadcast %109 : f32 to vector<8x128xf32>
    %111 = arith.mulf %84, %110 : vector<8x128xf32>
    %112 = arith.addf %108, %111 : vector<8x128xf32>
    %c1_29 = arith.constant 1 : index
    %c0_30 = arith.constant 0 : index
    %113 = vector.load %arg5[%c1_29, %c0_30] : memref<32x128xf32, #tpu.memory_space<vmem>>, vector<1x128xf32>
    %114 = vector.broadcast %113 : vector<1x128xf32> to vector<8x128xf32>
    %115 = arith.addf %112, %114 : vector<8x128xf32>
    %c0_31 = arith.constant 0 : index
    %c4_32 = arith.constant 4 : index
    %c0_33 = arith.constant 0 : index
    %c0_34 = arith.constant 0 : index
    %116 = vector.load %arg6[%c0_31, %c4_32, %c0_33, %c0_34] : memref<1x32x8x128xf32, #tpu.memory_space<vmem>>, vector<1x1x8x128xf32>
    %117 = vector.shape_cast %116 : vector<1x1x8x128xf32> to vector<8x128xf32>
    %118 = vector.shape_cast %115 : vector<8x128xf32> to vector<1x1x8x128xf32>
    tpu.vector_store %arg6[%c0_31, %c4_32, %c0_33, %c0_34], %118 {strides = array<i32>} : memref<1x32x8x128xf32, #tpu.memory_space<vmem>>, vector<1x1x8x128xf32>,
    %c6 = arith.constant 6 : index
    %119 = memref.load %arg4[%c6] : memref<96xf32, #tpu.memory_space<smem>>
    %120 = vector.broadcast %119 : f32 to vector<8x128xf32>
    %121 = arith.mulf %81, %120 : vector<8x128xf32>
    %c7 = arith.constant 7 : index
    %122 = memref.load %arg4[%c7] : memref<96xf32, #tpu.memory_space<smem>>
    %123 = vector.broadcast %122 : f32 to vector<8x128xf32>
    %124 = arith.mulf %82, %123 : vector<8x128xf32>
    %125 = arith.addf %121, %124 : vector<8x128xf32>
    %c8_35 = arith.constant 8 : index
    %126 = memref.load %arg4[%c8_35] : memref<96xf32, #tpu.memory_space<smem>>
    %127 = vector.broadcast %126 : f32 to vector<8x128xf32>
    %128 = arith.mulf %84, %127 : vector<8x128xf32>
    %129 = arith.addf %125, %128 : vector<8x128xf32>
    %c2_36 = arith.constant 2 : index
    %c0_37 = arith.constant 0 : index
    %130 = vector.load %arg5[%c2_36, %c0_37] : memref<32x128xf32, #tpu.memory_space<vmem>>, vector<1x128xf32>
    %131 = vector.broadcast %130 : vector<1x128xf32> to vector<8x128xf32>
    %132 = arith.addf %129, %131 : vector<8x128xf32>
    %c0_38 = arith.constant 0 : index
    %c8_39 = arith.constant 8 : index
    %c0_40 = arith.constant 0 : index
    %c0_41 = arith.constant 0 : index
    %133 = vector.load %arg6[%c0_38, %c8_39, %c0_40, %c0_41] : memref<1x32x8x128xf32, #tpu.memory_space<vmem>>, vector<1x1x8x128xf32>
    %134 = vector.shape_cast %133 : vector<1x1x8x128xf32> to vector<8x128xf32>
    %135 = vector.shape_cast %132 : vector<8x128xf32> to vector<1x1x8x128xf32>
    tpu.vector_store %arg6[%c0_38, %c8_39, %c0_40, %c0_41], %135 {strides = array<i32>} : memref<1x32x8x128xf32, #tpu.memory_space<vmem>>, vector<1x1x8x128xf32>,
    %c9 = arith.constant 9 : index
    %136 = memref.load %arg4[%c9] : memref<96xf32, #tpu.memory_space<smem>>
    %137 = vector.broadcast %136 : f32 to vector<8x128xf32>
    %138 = arith.mulf %81, %137 : vector<8x128xf32>
    %c10 = arith.constant 10 : index
    %139 = memref.load %arg4[%c10] : memref<96xf32, #tpu.memory_space<smem>>
    %140 = vector.broadcast %139 : f32 to vector<8x128xf32>
    %141 = arith.mulf %82, %140 : vector<8x128xf32>
    %142 = arith.addf %138, %141 : vector<8x128xf32>
    %c11 = arith.constant 11 : index
    %143 = memref.load %arg4[%c11] : memref<96xf32, #tpu.memory_space<smem>>
    %144 = vector.broadcast %143 : f32 to vector<8x128xf32>
    %145 = arith.mulf %84, %144 : vector<8x128xf32>
    %146 = arith.addf %142, %145 : vector<8x128xf32>
    %c3_42 = arith.constant 3 : index
    %c0_43 = arith.constant 0 : index
    %147 = vector.load %arg5[%c3_42, %c0_43] : memref<32x128xf32, #tpu.memory_space<vmem>>, vector<1x128xf32>
    %148 = vector.broadcast %147 : vector<1x128xf32> to vector<8x128xf32>
    %149 = arith.addf %146, %148 : vector<8x128xf32>
    %c0_44 = arith.constant 0 : index
    %c12_45 = arith.constant 12 : index
    %c0_46 = arith.constant 0 : index
    %c0_47 = arith.constant 0 : index
    %150 = vector.load %arg6[%c0_44, %c12_45, %c0_46, %c0_47] : memref<1x32x8x128xf32, #tpu.memory_space<vmem>>, vector<1x1x8x128xf32>
    %151 = vector.shape_cast %150 : vector<1x1x8x128xf32> to vector<8x128xf32>
    %152 = vector.shape_cast %149 : vector<8x128xf32> to vector<1x1x8x128xf32>
    tpu.vector_store %arg6[%c0_44, %c12_45, %c0_46, %c0_47], %152 {strides = array<i32>} : memref<1x32x8x128xf32, #tpu.memory_space<vmem>>, vector<1x1x8x128xf32>,
    %c12_48 = arith.constant 12 : index
    %153 = memref.load %arg4[%c12_48] : memref<96xf32, #tpu.memory_space<smem>>
    %154 = vector.broadcast %153 : f32 to vector<8x128xf32>
    %155 = arith.mulf %81, %154 : vector<8x128xf32>
    %c13 = arith.constant 13 : index
    %156 = memref.load %arg4[%c13] : memref<96xf32, #tpu.memory_space<smem>>
    %157 = vector.broadcast %156 : f32 to vector<8x128xf32>
    %158 = arith.mulf %82, %157 : vector<8x128xf32>
    %159 = arith.addf %155, %158 : vector<8x128xf32>
    %c14 = arith.constant 14 : index
    %160 = memref.load %arg4[%c14] : memref<96xf32, #tpu.memory_space<smem>>
    %161 = vector.broadcast %160 : f32 to vector<8x128xf32>
    %162 = arith.mulf %84, %161 : vector<8x128xf32>
    %163 = arith.addf %159, %162 : vector<8x128xf32>
    %c4_49 = arith.constant 4 : index
    %c0_50 = arith.constant 0 : index
    %164 = vector.load %arg5[%c4_49, %c0_50] : memref<32x128xf32, #tpu.memory_space<vmem>>, vector<1x128xf32>
    %165 = vector.broadcast %164 : vector<1x128xf32> to vector<8x128xf32>
    %166 = arith.addf %163, %165 : vector<8x128xf32>
    %c0_51 = arith.constant 0 : index
    %c16_52 = arith.constant 16 : index
    %c0_53 = arith.constant 0 : index
    %c0_54 = arith.constant 0 : index
    %167 = vector.load %arg6[%c0_51, %c16_52, %c0_53, %c0_54] : memref<1x32x8x128xf32, #tpu.memory_space<vmem>>, vector<1x1x8x128xf32>
    %168 = vector.shape_cast %167 : vector<1x1x8x128xf32> to vector<8x128xf32>
    %169 = vector.shape_cast %166 : vector<8x128xf32> to vector<1x1x8x128xf32>
    tpu.vector_store %arg6[%c0_51, %c16_52, %c0_53, %c0_54], %169 {strides = array<i32>} : memref<1x32x8x128xf32, #tpu.memory_space<vmem>>, vector<1x1x8x128xf32>,
    %c15 = arith.constant 15 : index
    %170 = memref.load %arg4[%c15] : memref<96xf32, #tpu.memory_space<smem>>
    %171 = vector.broadcast %170 : f32 to vector<8x128xf32>
    %172 = arith.mulf %81, %171 : vector<8x128xf32>
    %c16_55 = arith.constant 16 : index
    %173 = memref.load %arg4[%c16_55] : memref<96xf32, #tpu.memory_space<smem>>
    %174 = vector.broadcast %173 : f32 to vector<8x128xf32>
    %175 = arith.mulf %82, %174 : vector<8x128xf32>
    %176 = arith.addf %172, %175 : vector<8x128xf32>
    %c17 = arith.constant 17 : index
    %177 = memref.load %arg4[%c17] : memref<96xf32, #tpu.memory_space<smem>>
    %178 = vector.broadcast %177 : f32 to vector<8x128xf32>
    %179 = arith.mulf %84, %178 : vector<8x128xf32>
    %180 = arith.addf %176, %179 : vector<8x128xf32>
    %c5_56 = arith.constant 5 : index
    %c0_57 = arith.constant 0 : index
    %181 = vector.load %arg5[%c5_56, %c0_57] : memref<32x128xf32, #tpu.memory_space<vmem>>, vector<1x128xf32>
    %182 = vector.broadcast %181 : vector<1x128xf32> to vector<8x128xf32>
    %183 = arith.addf %180, %182 : vector<8x128xf32>
    %c0_58 = arith.constant 0 : index
    %c20_59 = arith.constant 20 : index
    %c0_60 = arith.constant 0 : index
    %c0_61 = arith.constant 0 : index
    %184 = vector.load %arg6[%c0_58, %c20_59, %c0_60, %c0_61] : memref<1x32x8x128xf32, #tpu.memory_space<vmem>>, vector<1x1x8x128xf32>
    %185 = vector.shape_cast %184 : vector<1x1x8x128xf32> to vector<8x128xf32>
    %186 = vector.shape_cast %183 : vector<8x128xf32> to vector<1x1x8x128xf32>
    tpu.vector_store %arg6[%c0_58, %c20_59, %c0_60, %c0_61], %186 {strides = array<i32>} : memref<1x32x8x128xf32, #tpu.memory_space<vmem>>, vector<1x1x8x128xf32>,
    %c18 = arith.constant 18 : index
    %187 = memref.load %arg4[%c18] : memref<96xf32, #tpu.memory_space<smem>>
    %188 = vector.broadcast %187 : f32 to vector<8x128xf32>
    %189 = arith.mulf %81, %188 : vector<8x128xf32>
    %c19 = arith.constant 19 : index
    %190 = memref.load %arg4[%c19] : memref<96xf32, #tpu.memory_space<smem>>
    %191 = vector.broadcast %190 : f32 to vector<8x128xf32>
    %192 = arith.mulf %82, %191 : vector<8x128xf32>
    %193 = arith.addf %189, %192 : vector<8x128xf32>
    %c20_62 = arith.constant 20 : index
    %194 = memref.load %arg4[%c20_62] : memref<96xf32, #tpu.memory_space<smem>>
    %195 = vector.broadcast %194 : f32 to vector<8x128xf32>
    %196 = arith.mulf %84, %195 : vector<8x128xf32>
    %197 = arith.addf %193, %196 : vector<8x128xf32>
    %c6_63 = arith.constant 6 : index
    %c0_64 = arith.constant 0 : index
    %198 = vector.load %arg5[%c6_63, %c0_64] : memref<32x128xf32, #tpu.memory_space<vmem>>, vector<1x128xf32>
    %199 = vector.broadcast %198 : vector<1x128xf32> to vector<8x128xf32>
    %200 = arith.addf %197, %199 : vector<8x128xf32>
    %c0_65 = arith.constant 0 : index
    %c24_66 = arith.constant 24 : index
    %c0_67 = arith.constant 0 : index
    %c0_68 = arith.constant 0 : index
    %201 = vector.load %arg6[%c0_65, %c24_66, %c0_67, %c0_68] : memref<1x32x8x128xf32, #tpu.memory_space<vmem>>, vector<1x1x8x128xf32>
    %202 = vector.shape_cast %201 : vector<1x1x8x128xf32> to vector<8x128xf32>
    %203 = vector.shape_cast %200 : vector<8x128xf32> to vector<1x1x8x128xf32>
    tpu.vector_store %arg6[%c0_65, %c24_66, %c0_67, %c0_68], %203 {strides = array<i32>} : memref<1x32x8x128xf32, #tpu.memory_space<vmem>>, vector<1x1x8x128xf32>,
    %c21 = arith.constant 21 : index
    %204 = memref.load %arg4[%c21] : memref<96xf32, #tpu.memory_space<smem>>
    %205 = vector.broadcast %204 : f32 to vector<8x128xf32>
    %206 = arith.mulf %81, %205 : vector<8x128xf32>
    %c22 = arith.constant 22 : index
    %207 = memref.load %arg4[%c22] : memref<96xf32, #tpu.memory_space<smem>>
    %208 = vector.broadcast %207 : f32 to vector<8x128xf32>
    %209 = arith.mulf %82, %208 : vector<8x128xf32>
    %210 = arith.addf %206, %209 : vector<8x128xf32>
    %c23 = arith.constant 23 : index
    %211 = memref.load %arg4[%c23] : memref<96xf32, #tpu.memory_space<smem>>
    %212 = vector.broadcast %211 : f32 to vector<8x128xf32>
    %213 = arith.mulf %84, %212 : vector<8x128xf32>
    %214 = arith.addf %210, %213 : vector<8x128xf32>
    %c7_69 = arith.constant 7 : index
    %c0_70 = arith.constant 0 : index
    %215 = vector.load %arg5[%c7_69, %c0_70] : memref<32x128xf32, #tpu.memory_space<vmem>>, vector<1x128xf32>
    %216 = vector.broadcast %215 : vector<1x128xf32> to vector<8x128xf32>
    %217 = arith.addf %214, %216 : vector<8x128xf32>
    %c0_71 = arith.constant 0 : index
    %c28_72 = arith.constant 28 : index
    %c0_73 = arith.constant 0 : index
    %c0_74 = arith.constant 0 : index
    %218 = vector.load %arg6[%c0_71, %c28_72, %c0_73, %c0_74] : memref<1x32x8x128xf32, #tpu.memory_space<vmem>>, vector<1x1x8x128xf32>
    %219 = vector.shape_cast %218 : vector<1x1x8x128xf32> to vector<8x128xf32>
    %220 = vector.shape_cast %217 : vector<8x128xf32> to vector<1x1x8x128xf32>
    tpu.vector_store %arg6[%c0_71, %c28_72, %c0_73, %c0_74], %220 {strides = array<i32>} : memref<1x32x8x128xf32, #tpu.memory_space<vmem>>, vector<1x1x8x128xf32>,
    %c0_75 = arith.constant 0 : index
    %c0_76 = arith.constant 0 : index
    %221 = arith.index_cast %1 : i32 to index
    %c0_77 = arith.constant 0 : index
    %222 = vector.load %arg2[%c0_75, %c0_76, %221, %c0_77] : memref<1x2x9x1024xf32, #tpu.memory_space<vmem>>, vector<1x1x9x256xf32>
    %223 = vector.shape_cast %222 : vector<1x1x9x256xf32> to vector<9x256xf32>
    %224 = vector.extract_strided_slice %223 {offsets = [0, 0], sizes = [8, 256], strides = [1, 1]} : vector<9x256xf32> to vector<8x256xf32>
    %c1_78 = arith.constant 1 : index
    %225 = memref.load %arg3[%c1_78] : memref<48xf32, #tpu.memory_space<smem>>
    %226 = vector.broadcast %225 : f32 to vector<8x256xf32>
    %227 = arith.mulf %224, %226 : vector<8x256xf32>
    %228 = vector.extract_strided_slice %223 {offsets = [1, 0], sizes = [8, 256], strides = [1, 1]} : vector<9x256xf32> to vector<8x256xf32>
    %c33 = arith.constant 33 : index
    %229 = memref.load %arg3[%c33] : memref<48xf32, #tpu.memory_space<smem>>
    %230 = vector.broadcast %229 : f32 to vector<8x256xf32>
    %231 = arith.mulf %228, %230 : vector<8x256xf32>
    %232 = arith.addf %227, %231 : vector<8x256xf32>
    %c0_79 = arith.constant 0 : index
    %c1_80 = arith.constant 1 : index
    %233 = arith.index_cast %1 : i32 to index
    %c0_81 = arith.constant 0 : index
    %234 = vector.load %arg2[%c0_79, %c1_80, %233, %c0_81] : memref<1x2x9x1024xf32, #tpu.memory_space<vmem>>, vector<1x1x8x256xf32>
    %235 = vector.shape_cast %234 : vector<1x1x8x256xf32> to vector<8x256xf32>
    %c17_82 = arith.constant 17 : index
    %236 = memref.load %arg3[%c17_82] : memref<48xf32, #tpu.memory_space<smem>>
    %237 = vector.broadcast %236 : f32 to vector<8x256xf32>
    %238 = arith.mulf %235, %237 : vector<8x256xf32>
    %239 = arith.addf %232, %238 : vector<8x256xf32>
    %c0_83 = arith.constant 0 : index
    %c0_84 = arith.constant 0 : index
    %240 = arith.index_cast %1 : i32 to index
    %c256_85 = arith.constant 256 : index
    %241 = vector.load %arg2[%c0_83, %c0_84, %240, %c256_85] : memref<1x2x9x1024xf32, #tpu.memory_space<vmem>>, vector<1x1x9x256xf32>
    %242 = vector.shape_cast %241 : vector<1x1x9x256xf32> to vector<9x256xf32>
    %243 = vector.extract_strided_slice %242 {offsets = [0, 0], sizes = [8, 256], strides = [1, 1]} : vector<9x256xf32> to vector<8x256xf32>
    %c5_86 = arith.constant 5 : index
    %244 = memref.load %arg3[%c5_86] : memref<48xf32, #tpu.memory_space<smem>>
    %245 = vector.broadcast %244 : f32 to vector<8x256xf32>
    %246 = arith.mulf %243, %245 : vector<8x256xf32>
    %247 = arith.addf %239, %246 : vector<8x256xf32>
    %248 = vector.extract_strided_slice %242 {offsets = [1, 0], sizes = [8, 256], strides = [1, 1]} : vector<9x256xf32> to vector<8x256xf32>
    %c37 = arith.constant 37 : index
    %249 = memref.load %arg3[%c37] : memref<48xf32, #tpu.memory_space<smem>>
    %250 = vector.broadcast %249 : f32 to vector<8x256xf32>
    %251 = arith.mulf %248, %250 : vector<8x256xf32>
    %252 = arith.addf %247, %251 : vector<8x256xf32>
    %c0_87 = arith.constant 0 : index
    %c1_88 = arith.constant 1 : index
    %253 = arith.index_cast %1 : i32 to index
    %c256_89 = arith.constant 256 : index
    %254 = vector.load %arg2[%c0_87, %c1_88, %253, %c256_89] : memref<1x2x9x1024xf32, #tpu.memory_space<vmem>>, vector<1x1x8x256xf32>
    %255 = vector.shape_cast %254 : vector<1x1x8x256xf32> to vector<8x256xf32>
    %c21_90 = arith.constant 21 : index
    %256 = memref.load %arg3[%c21_90] : memref<48xf32, #tpu.memory_space<smem>>
    %257 = vector.broadcast %256 : f32 to vector<8x256xf32>
    %258 = arith.mulf %255, %257 : vector<8x256xf32>
    %259 = arith.addf %252, %258 : vector<8x256xf32>
    %c0_91 = arith.constant 0 : index
    %c0_92 = arith.constant 0 : index
    %260 = arith.index_cast %1 : i32 to index
    %c512_93 = arith.constant 512 : index
    %261 = vector.load %arg2[%c0_91, %c0_92, %260, %c512_93] : memref<1x2x9x1024xf32, #tpu.memory_space<vmem>>, vector<1x1x9x256xf32>
    %262 = vector.shape_cast %261 : vector<1x1x9x256xf32> to vector<9x256xf32>
    %263 = vector.extract_strided_slice %262 {offsets = [0, 0], sizes = [8, 256], strides = [1, 1]} : vector<9x256xf32> to vector<8x256xf32>
    %c9_94 = arith.constant 9 : index
    %264 = memref.load %arg3[%c9_94] : memref<48xf32, #tpu.memory_space<smem>>
    %265 = vector.broadcast %264 : f32 to vector<8x256xf32>
    %266 = arith.mulf %263, %265 : vector<8x256xf32>
    %267 = arith.addf %259, %266 : vector<8x256xf32>
    %268 = vector.extract_strided_slice %262 {offsets = [1, 0], sizes = [8, 256], strides = [1, 1]} : vector<9x256xf32> to vector<8x256xf32>
    %c41 = arith.constant 41 : index
    %269 = memref.load %arg3[%c41] : memref<48xf32, #tpu.memory_space<smem>>
    %270 = vector.broadcast %269 : f32 to vector<8x256xf32>
    %271 = arith.mulf %268, %270 : vector<8x256xf32>
    %272 = arith.addf %267, %271 : vector<8x256xf32>
    %c0_95 = arith.constant 0 : index
    %c1_96 = arith.constant 1 : index
    %273 = arith.index_cast %1 : i32 to index
    %c512_97 = arith.constant 512 : index
    %274 = vector.load %arg2[%c0_95, %c1_96, %273, %c512_97] : memref<1x2x9x1024xf32, #tpu.memory_space<vmem>>, vector<1x1x8x256xf32>
    %275 = vector.shape_cast %274 : vector<1x1x8x256xf32> to vector<8x256xf32>
    %c25 = arith.constant 25 : index
    %276 = memref.load %arg3[%c25] : memref<48xf32, #tpu.memory_space<smem>>
    %277 = vector.broadcast %276 : f32 to vector<8x256xf32>
    %278 = arith.mulf %275, %277 : vector<8x256xf32>
    %279 = arith.addf %272, %278 : vector<8x256xf32>
    %c0_98 = arith.constant 0 : index
    %c0_99 = arith.constant 0 : index
    %280 = arith.index_cast %1 : i32 to index
    %c768_100 = arith.constant 768 : index
    %281 = vector.load %arg2[%c0_98, %c0_99, %280, %c768_100] : memref<1x2x9x1024xf32, #tpu.memory_space<vmem>>, vector<1x1x9x256xf32>
    %282 = vector.shape_cast %281 : vector<1x1x9x256xf32> to vector<9x256xf32>
    %283 = vector.extract_strided_slice %282 {offsets = [0, 0], sizes = [8, 256], strides = [1, 1]} : vector<9x256xf32> to vector<8x256xf32>
    %c13_101 = arith.constant 13 : index
    %284 = memref.load %arg3[%c13_101] : memref<48xf32, #tpu.memory_space<smem>>
    %285 = vector.broadcast %284 : f32 to vector<8x256xf32>
    %286 = arith.mulf %283, %285 : vector<8x256xf32>
    %287 = arith.addf %279, %286 : vector<8x256xf32>
    %288 = vector.extract_strided_slice %282 {offsets = [1, 0], sizes = [8, 256], strides = [1, 1]} : vector<9x256xf32> to vector<8x256xf32>
    %c45 = arith.constant 45 : index
    %289 = memref.load %arg3[%c45] : memref<48xf32, #tpu.memory_space<smem>>
    %290 = vector.broadcast %289 : f32 to vector<8x256xf32>
    %291 = arith.mulf %288, %290 : vector<8x256xf32>
    %292 = arith.addf %287, %291 : vector<8x256xf32>
    %c0_102 = arith.constant 0 : index
    %c1_103 = arith.constant 1 : index
    %293 = arith.index_cast %1 : i32 to index
    %c768_104 = arith.constant 768 : index
    %294 = vector.load %arg2[%c0_102, %c1_103, %293, %c768_104] : memref<1x2x9x1024xf32, #tpu.memory_space<vmem>>, vector<1x1x8x256xf32>
    %295 = vector.shape_cast %294 : vector<1x1x8x256xf32> to vector<8x256xf32>
    %c29 = arith.constant 29 : index
    %296 = memref.load %arg3[%c29] : memref<48xf32, #tpu.memory_space<smem>>
    %297 = vector.broadcast %296 : f32 to vector<8x256xf32>
    %298 = arith.mulf %295, %297 : vector<8x256xf32>
    %299 = arith.addf %292, %298 : vector<8x256xf32>
    %300 = vector.extract_strided_slice %299 {offsets = [0, 0], sizes = [8, 128], strides = [1, 1]} : vector<8x256xf32> to vector<8x128xf32>
    %301 = vector.extract_strided_slice %299 {offsets = [0, 128], sizes = [8, 128], strides = [1, 1]} : vector<8x256xf32> to vector<8x128xf32>
    %302 = vector.extract_strided_slice %299 {offsets = [0, 0], sizes = [8, 128], strides = [1, 1]} : vector<8x256xf32> to vector<8x128xf32>
    %c127_i32_105 = arith.constant 127 : i32
    %303 = tpu.dynamic_rotate %302 by %c127_i32_105 dim 1 : vector<8x128xf32>, i32 -> vector<8x128xf32>
    %c24_106 = arith.constant 24 : index
    %304 = memref.load %arg4[%c24_106] : memref<96xf32, #tpu.memory_space<smem>>
    %305 = vector.broadcast %304 : f32 to vector<8x128xf32>
    %306 = arith.mulf %300, %305 : vector<8x128xf32>
    %c25_107 = arith.constant 25 : index
    %307 = memref.load %arg4[%c25_107] : memref<96xf32, #tpu.memory_space<smem>>
    %308 = vector.broadcast %307 : f32 to vector<8x128xf32>
    %309 = arith.mulf %301, %308 : vector<8x128xf32>
    %310 = arith.addf %306, %309 : vector<8x128xf32>
    %c26 = arith.constant 26 : index
    %311 = memref.load %arg4[%c26] : memref<96xf32, #tpu.memory_space<smem>>
    %312 = vector.broadcast %311 : f32 to vector<8x128xf32>
    %313 = arith.mulf %303, %312 : vector<8x128xf32>
    %314 = arith.addf %310, %313 : vector<8x128xf32>
    %c8_108 = arith.constant 8 : index
    %c0_109 = arith.constant 0 : index
    %315 = vector.load %arg5[%c8_108, %c0_109] : memref<32x128xf32, #tpu.memory_space<vmem>>, vector<1x128xf32>
    %316 = vector.broadcast %315 : vector<1x128xf32> to vector<8x128xf32>
    %317 = arith.addf %314, %316 : vector<8x128xf32>
    %c0_110 = arith.constant 0 : index
    %c1_111 = arith.constant 1 : index
    %c0_112 = arith.constant 0 : index
    %c0_113 = arith.constant 0 : index
    %318 = vector.load %arg6[%c0_110, %c1_111, %c0_112, %c0_113] : memref<1x32x8x128xf32, #tpu.memory_space<vmem>>, vector<1x1x8x128xf32>
    %319 = vector.shape_cast %318 : vector<1x1x8x128xf32> to vector<8x128xf32>
    %320 = vector.shape_cast %317 : vector<8x128xf32> to vector<1x1x8x128xf32>
    tpu.vector_store %arg6[%c0_110, %c1_111, %c0_112, %c0_113], %320 {strides = array<i32>} : memref<1x32x8x128xf32, #tpu.memory_space<vmem>>, vector<1x1x8x128xf32>,
    %c27 = arith.constant 27 : index
    %321 = memref.load %arg4[%c27] : memref<96xf32, #tpu.memory_space<smem>>
    %322 = vector.broadcast %321 : f32 to vector<8x128xf32>
    %323 = arith.mulf %300, %322 : vector<8x128xf32>
    %c28_114 = arith.constant 28 : index
    %324 = memref.load %arg4[%c28_114] : memref<96xf32, #tpu.memory_space<smem>>
    %325 = vector.broadcast %324 : f32 to vector<8x128xf32>
    %326 = arith.mulf %301, %325 : vector<8x128xf32>
    %327 = arith.addf %323, %326 : vector<8x128xf32>
    %c29_115 = arith.constant 29 : index
    %328 = memref.load %arg4[%c29_115] : memref<96xf32, #tpu.memory_space<smem>>
    %329 = vector.broadcast %328 : f32 to vector<8x128xf32>
    %330 = arith.mulf %303, %329 : vector<8x128xf32>
    %331 = arith.addf %327, %330 : vector<8x128xf32>
    %c9_116 = arith.constant 9 : index
    %c0_117 = arith.constant 0 : index
    %332 = vector.load %arg5[%c9_116, %c0_117] : memref<32x128xf32, #tpu.memory_space<vmem>>, vector<1x128xf32>
    %333 = vector.broadcast %332 : vector<1x128xf32> to vector<8x128xf32>
    %334 = arith.addf %331, %333 : vector<8x128xf32>
    %c0_118 = arith.constant 0 : index
    %c5_119 = arith.constant 5 : index
    %c0_120 = arith.constant 0 : index
    %c0_121 = arith.constant 0 : index
    %335 = vector.load %arg6[%c0_118, %c5_119, %c0_120, %c0_121] : memref<1x32x8x128xf32, #tpu.memory_space<vmem>>, vector<1x1x8x128xf32>
    %336 = vector.shape_cast %335 : vector<1x1x8x128xf32> to vector<8x128xf32>
    %337 = vector.shape_cast %334 : vector<8x128xf32> to vector<1x1x8x128xf32>
    tpu.vector_store %arg6[%c0_118, %c5_119, %c0_120, %c0_121], %337 {strides = array<i32>} : memref<1x32x8x128xf32, #tpu.memory_space<vmem>>, vector<1x1x8x128xf32>,
    %c30 = arith.constant 30 : index
    %338 = memref.load %arg4[%c30] : memref<96xf32, #tpu.memory_space<smem>>
    %339 = vector.broadcast %338 : f32 to vector<8x128xf32>
    %340 = arith.mulf %300, %339 : vector<8x128xf32>
    %c31 = arith.constant 31 : index
    %341 = memref.load %arg4[%c31] : memref<96xf32, #tpu.memory_space<smem>>
    %342 = vector.broadcast %341 : f32 to vector<8x128xf32>
    %343 = arith.mulf %301, %342 : vector<8x128xf32>
    %344 = arith.addf %340, %343 : vector<8x128xf32>
    %c32_122 = arith.constant 32 : index
    %345 = memref.load %arg4[%c32_122] : memref<96xf32, #tpu.memory_space<smem>>
    %346 = vector.broadcast %345 : f32 to vector<8x128xf32>
    %347 = arith.mulf %303, %346 : vector<8x128xf32>
    %348 = arith.addf %344, %347 : vector<8x128xf32>
    %c10_123 = arith.constant 10 : index
    %c0_124 = arith.constant 0 : index
    %349 = vector.load %arg5[%c10_123, %c0_124] : memref<32x128xf32, #tpu.memory_space<vmem>>, vector<1x128xf32>
    %350 = vector.broadcast %349 : vector<1x128xf32> to vector<8x128xf32>
    %351 = arith.addf %348, %350 : vector<8x128xf32>
    %c0_125 = arith.constant 0 : index
    %c9_126 = arith.constant 9 : index
    %c0_127 = arith.constant 0 : index
    %c0_128 = arith.constant 0 : index
    %352 = vector.load %arg6[%c0_125, %c9_126, %c0_127, %c0_128] : memref<1x32x8x128xf32, #tpu.memory_space<vmem>>, vector<1x1x8x128xf32>
    %353 = vector.shape_cast %352 : vector<1x1x8x128xf32> to vector<8x128xf32>
    %354 = vector.shape_cast %351 : vector<8x128xf32> to vector<1x1x8x128xf32>
    tpu.vector_store %arg6[%c0_125, %c9_126, %c0_127, %c0_128], %354 {strides = array<i32>} : memref<1x32x8x128xf32, #tpu.memory_space<vmem>>, vector<1x1x8x128xf32>,
    %c33_129 = arith.constant 33 : index
    %355 = memref.load %arg4[%c33_129] : memref<96xf32, #tpu.memory_space<smem>>
    %356 = vector.broadcast %355 : f32 to vector<8x128xf32>
    %357 = arith.mulf %300, %356 : vector<8x128xf32>
    %c34 = arith.constant 34 : index
    %358 = memref.load %arg4[%c34] : memref<96xf32, #tpu.memory_space<smem>>
    %359 = vector.broadcast %358 : f32 to vector<8x128xf32>
    %360 = arith.mulf %301, %359 : vector<8x128xf32>
    %361 = arith.addf %357, %360 : vector<8x128xf32>
    %c35 = arith.constant 35 : index
    %362 = memref.load %arg4[%c35] : memref<96xf32, #tpu.memory_space<smem>>
    %363 = vector.broadcast %362 : f32 to vector<8x128xf32>
    %364 = arith.mulf %303, %363 : vector<8x128xf32>
    %365 = arith.addf %361, %364 : vector<8x128xf32>
    %c11_130 = arith.constant 11 : index
    %c0_131 = arith.constant 0 : index
    %366 = vector.load %arg5[%c11_130, %c0_131] : memref<32x128xf32, #tpu.memory_space<vmem>>, vector<1x128xf32>
    %367 = vector.broadcast %366 : vector<1x128xf32> to vector<8x128xf32>
    %368 = arith.addf %365, %367 : vector<8x128xf32>
    %c0_132 = arith.constant 0 : index
    %c13_133 = arith.constant 13 : index
    %c0_134 = arith.constant 0 : index
    %c0_135 = arith.constant 0 : index
    %369 = vector.load %arg6[%c0_132, %c13_133, %c0_134, %c0_135] : memref<1x32x8x128xf32, #tpu.memory_space<vmem>>, vector<1x1x8x128xf32>
    %370 = vector.shape_cast %369 : vector<1x1x8x128xf32> to vector<8x128xf32>
    %371 = vector.shape_cast %368 : vector<8x128xf32> to vector<1x1x8x128xf32>
    tpu.vector_store %arg6[%c0_132, %c13_133, %c0_134, %c0_135], %371 {strides = array<i32>} : memref<1x32x8x128xf32, #tpu.memory_space<vmem>>, vector<1x1x8x128xf32>,
    %c36_136 = arith.constant 36 : index
    %372 = memref.load %arg4[%c36_136] : memref<96xf32, #tpu.memory_space<smem>>
    %373 = vector.broadcast %372 : f32 to vector<8x128xf32>
    %374 = arith.mulf %300, %373 : vector<8x128xf32>
    %c37_137 = arith.constant 37 : index
    %375 = memref.load %arg4[%c37_137] : memref<96xf32, #tpu.memory_space<smem>>
    %376 = vector.broadcast %375 : f32 to vector<8x128xf32>
    %377 = arith.mulf %301, %376 : vector<8x128xf32>
    %378 = arith.addf %374, %377 : vector<8x128xf32>
    %c38 = arith.constant 38 : index
    %379 = memref.load %arg4[%c38] : memref<96xf32, #tpu.memory_space<smem>>
    %380 = vector.broadcast %379 : f32 to vector<8x128xf32>
    %381 = arith.mulf %303, %380 : vector<8x128xf32>
    %382 = arith.addf %378, %381 : vector<8x128xf32>
    %c12_138 = arith.constant 12 : index
    %c0_139 = arith.constant 0 : index
    %383 = vector.load %arg5[%c12_138, %c0_139] : memref<32x128xf32, #tpu.memory_space<vmem>>, vector<1x128xf32>
    %384 = vector.broadcast %383 : vector<1x128xf32> to vector<8x128xf32>
    %385 = arith.addf %382, %384 : vector<8x128xf32>
    %c0_140 = arith.constant 0 : index
    %c17_141 = arith.constant 17 : index
    %c0_142 = arith.constant 0 : index
    %c0_143 = arith.constant 0 : index
    %386 = vector.load %arg6[%c0_140, %c17_141, %c0_142, %c0_143] : memref<1x32x8x128xf32, #tpu.memory_space<vmem>>, vector<1x1x8x128xf32>
    %387 = vector.shape_cast %386 : vector<1x1x8x128xf32> to vector<8x128xf32>
    %388 = vector.shape_cast %385 : vector<8x128xf32> to vector<1x1x8x128xf32>
    tpu.vector_store %arg6[%c0_140, %c17_141, %c0_142, %c0_143], %388 {strides = array<i32>} : memref<1x32x8x128xf32, #tpu.memory_space<vmem>>, vector<1x1x8x128xf32>,
    %c39 = arith.constant 39 : index
    %389 = memref.load %arg4[%c39] : memref<96xf32, #tpu.memory_space<smem>>
    %390 = vector.broadcast %389 : f32 to vector<8x128xf32>
    %391 = arith.mulf %300, %390 : vector<8x128xf32>
    %c40_144 = arith.constant 40 : index
    %392 = memref.load %arg4[%c40_144] : memref<96xf32, #tpu.memory_space<smem>>
    %393 = vector.broadcast %392 : f32 to vector<8x128xf32>
    %394 = arith.mulf %301, %393 : vector<8x128xf32>
    %395 = arith.addf %391, %394 : vector<8x128xf32>
    %c41_145 = arith.constant 41 : index
    %396 = memref.load %arg4[%c41_145] : memref<96xf32, #tpu.memory_space<smem>>
    %397 = vector.broadcast %396 : f32 to vector<8x128xf32>
    %398 = arith.mulf %303, %397 : vector<8x128xf32>
    %399 = arith.addf %395, %398 : vector<8x128xf32>
    %c13_146 = arith.constant 13 : index
    %c0_147 = arith.constant 0 : index
    %400 = vector.load %arg5[%c13_146, %c0_147] : memref<32x128xf32, #tpu.memory_space<vmem>>, vector<1x128xf32>
    %401 = vector.broadcast %400 : vector<1x128xf32> to vector<8x128xf32>
    %402 = arith.addf %399, %401 : vector<8x128xf32>
    %c0_148 = arith.constant 0 : index
    %c21_149 = arith.constant 21 : index
    %c0_150 = arith.constant 0 : index
    %c0_151 = arith.constant 0 : index
    %403 = vector.load %arg6[%c0_148, %c21_149, %c0_150, %c0_151] : memref<1x32x8x128xf32, #tpu.memory_space<vmem>>, vector<1x1x8x128xf32>
    %404 = vector.shape_cast %403 : vector<1x1x8x128xf32> to vector<8x128xf32>
    %405 = vector.shape_cast %402 : vector<8x128xf32> to vector<1x1x8x128xf32>
    tpu.vector_store %arg6[%c0_148, %c21_149, %c0_150, %c0_151], %405 {strides = array<i32>} : memref<1x32x8x128xf32, #tpu.memory_space<vmem>>, vector<1x1x8x128xf32>,
    %c42 = arith.constant 42 : index
    %406 = memref.load %arg4[%c42] : memref<96xf32, #tpu.memory_space<smem>>
    %407 = vector.broadcast %406 : f32 to vector<8x128xf32>
    %408 = arith.mulf %300, %407 : vector<8x128xf32>
    %c43 = arith.constant 43 : index
    %409 = memref.load %arg4[%c43] : memref<96xf32, #tpu.memory_space<smem>>
    %410 = vector.broadcast %409 : f32 to vector<8x128xf32>
    %411 = arith.mulf %301, %410 : vector<8x128xf32>
    %412 = arith.addf %408, %411 : vector<8x128xf32>
    %c44_152 = arith.constant 44 : index
    %413 = memref.load %arg4[%c44_152] : memref<96xf32, #tpu.memory_space<smem>>
    %414 = vector.broadcast %413 : f32 to vector<8x128xf32>
    %415 = arith.mulf %303, %414 : vector<8x128xf32>
    %416 = arith.addf %412, %415 : vector<8x128xf32>
    %c14_153 = arith.constant 14 : index
    %c0_154 = arith.constant 0 : index
    %417 = vector.load %arg5[%c14_153, %c0_154] : memref<32x128xf32, #tpu.memory_space<vmem>>, vector<1x128xf32>
    %418 = vector.broadcast %417 : vector<1x128xf32> to vector<8x128xf32>
    %419 = arith.addf %416, %418 : vector<8x128xf32>
    %c0_155 = arith.constant 0 : index
    %c25_156 = arith.constant 25 : index
    %c0_157 = arith.constant 0 : index
    %c0_158 = arith.constant 0 : index
    %420 = vector.load %arg6[%c0_155, %c25_156, %c0_157, %c0_158] : memref<1x32x8x128xf32, #tpu.memory_space<vmem>>, vector<1x1x8x128xf32>
    %421 = vector.shape_cast %420 : vector<1x1x8x128xf32> to vector<8x128xf32>
    %422 = vector.shape_cast %419 : vector<8x128xf32> to vector<1x1x8x128xf32>
    tpu.vector_store %arg6[%c0_155, %c25_156, %c0_157, %c0_158], %422 {strides = array<i32>} : memref<1x32x8x128xf32, #tpu.memory_space<vmem>>, vector<1x1x8x128xf32>,
    %c45_159 = arith.constant 45 : index
    %423 = memref.load %arg4[%c45_159] : memref<96xf32, #tpu.memory_space<smem>>
    %424 = vector.broadcast %423 : f32 to vector<8x128xf32>
    %425 = arith.mulf %300, %424 : vector<8x128xf32>
    %c46 = arith.constant 46 : index
    %426 = memref.load %arg4[%c46] : memref<96xf32, #tpu.memory_space<smem>>
    %427 = vector.broadcast %426 : f32 to vector<8x128xf32>
    %428 = arith.mulf %301, %427 : vector<8x128xf32>
    %429 = arith.addf %425, %428 : vector<8x128xf32>
    %c47 = arith.constant 47 : index
    %430 = memref.load %arg4[%c47] : memref<96xf32, #tpu.memory_space<smem>>
    %431 = vector.broadcast %430 : f32 to vector<8x128xf32>
    %432 = arith.mulf %303, %431 : vector<8x128xf32>
    %433 = arith.addf %429, %432 : vector<8x128xf32>
    %c15_160 = arith.constant 15 : index
    %c0_161 = arith.constant 0 : index
    %434 = vector.load %arg5[%c15_160, %c0_161] : memref<32x128xf32, #tpu.memory_space<vmem>>, vector<1x128xf32>
    %435 = vector.broadcast %434 : vector<1x128xf32> to vector<8x128xf32>
    %436 = arith.addf %433, %435 : vector<8x128xf32>
    %c0_162 = arith.constant 0 : index
    %c29_163 = arith.constant 29 : index
    %c0_164 = arith.constant 0 : index
    %c0_165 = arith.constant 0 : index
    %437 = vector.load %arg6[%c0_162, %c29_163, %c0_164, %c0_165] : memref<1x32x8x128xf32, #tpu.memory_space<vmem>>, vector<1x1x8x128xf32>
    %438 = vector.shape_cast %437 : vector<1x1x8x128xf32> to vector<8x128xf32>
    %439 = vector.shape_cast %436 : vector<8x128xf32> to vector<1x1x8x128xf32>
    tpu.vector_store %arg6[%c0_162, %c29_163, %c0_164, %c0_165], %439 {strides = array<i32>} : memref<1x32x8x128xf32, #tpu.memory_space<vmem>>, vector<1x1x8x128xf32>,
    %c0_166 = arith.constant 0 : index
    %c0_167 = arith.constant 0 : index
    %440 = arith.index_cast %1 : i32 to index
    %c0_168 = arith.constant 0 : index
    %441 = vector.load %arg2[%c0_166, %c0_167, %440, %c0_168] : memref<1x2x9x1024xf32, #tpu.memory_space<vmem>>, vector<1x1x9x256xf32>
    %442 = vector.shape_cast %441 : vector<1x1x9x256xf32> to vector<9x256xf32>
    %443 = vector.extract_strided_slice %442 {offsets = [0, 0], sizes = [8, 256], strides = [1, 1]} : vector<9x256xf32> to vector<8x256xf32>
    %c2_169 = arith.constant 2 : index
    %444 = memref.load %arg3[%c2_169] : memref<48xf32, #tpu.memory_space<smem>>
    %445 = vector.broadcast %444 : f32 to vector<8x256xf32>
    %446 = arith.mulf %443, %445 : vector<8x256xf32>
    %447 = vector.extract_strided_slice %442 {offsets = [1, 0], sizes = [8, 256], strides = [1, 1]} : vector<9x256xf32> to vector<8x256xf32>
    %c34_170 = arith.constant 34 : index
    %448 = memref.load %arg3[%c34_170] : memref<48xf32, #tpu.memory_space<smem>>
    %449 = vector.broadcast %448 : f32 to vector<8x256xf32>
    %450 = arith.mulf %447, %449 : vector<8x256xf32>
    %451 = arith.addf %446, %450 : vector<8x256xf32>
    %c0_171 = arith.constant 0 : index
    %c1_172 = arith.constant 1 : index
    %452 = arith.index_cast %1 : i32 to index
    %c0_173 = arith.constant 0 : index
    %453 = vector.load %arg2[%c0_171, %c1_172, %452, %c0_173] : memref<1x2x9x1024xf32, #tpu.memory_space<vmem>>, vector<1x1x8x256xf32>
    %454 = vector.shape_cast %453 : vector<1x1x8x256xf32> to vector<8x256xf32>
    %c18_174 = arith.constant 18 : index
    %455 = memref.load %arg3[%c18_174] : memref<48xf32, #tpu.memory_space<smem>>
    %456 = vector.broadcast %455 : f32 to vector<8x256xf32>
    %457 = arith.mulf %454, %456 : vector<8x256xf32>
    %458 = arith.addf %451, %457 : vector<8x256xf32>
    %c0_175 = arith.constant 0 : index
    %c0_176 = arith.constant 0 : index
    %459 = arith.index_cast %1 : i32 to index
    %c256_177 = arith.constant 256 : index
    %460 = vector.load %arg2[%c0_175, %c0_176, %459, %c256_177] : memref<1x2x9x1024xf32, #tpu.memory_space<vmem>>, vector<1x1x9x256xf32>
    %461 = vector.shape_cast %460 : vector<1x1x9x256xf32> to vector<9x256xf32>
    %462 = vector.extract_strided_slice %461 {offsets = [0, 0], sizes = [8, 256], strides = [1, 1]} : vector<9x256xf32> to vector<8x256xf32>
    %c6_178 = arith.constant 6 : index
    %463 = memref.load %arg3[%c6_178] : memref<48xf32, #tpu.memory_space<smem>>
    %464 = vector.broadcast %463 : f32 to vector<8x256xf32>
    %465 = arith.mulf %462, %464 : vector<8x256xf32>
    %466 = arith.addf %458, %465 : vector<8x256xf32>
    %467 = vector.extract_strided_slice %461 {offsets = [1, 0], sizes = [8, 256], strides = [1, 1]} : vector<9x256xf32> to vector<8x256xf32>
    %c38_179 = arith.constant 38 : index
    %468 = memref.load %arg3[%c38_179] : memref<48xf32, #tpu.memory_space<smem>>
    %469 = vector.broadcast %468 : f32 to vector<8x256xf32>
    %470 = arith.mulf %467, %469 : vector<8x256xf32>
    %471 = arith.addf %466, %470 : vector<8x256xf32>
    %c0_180 = arith.constant 0 : index
    %c1_181 = arith.constant 1 : index
    %472 = arith.index_cast %1 : i32 to index
    %c256_182 = arith.constant 256 : index
    %473 = vector.load %arg2[%c0_180, %c1_181, %472, %c256_182] : memref<1x2x9x1024xf32, #tpu.memory_space<vmem>>, vector<1x1x8x256xf32>
    %474 = vector.shape_cast %473 : vector<1x1x8x256xf32> to vector<8x256xf32>
    %c22_183 = arith.constant 22 : index
    %475 = memref.load %arg3[%c22_183] : memref<48xf32, #tpu.memory_space<smem>>
    %476 = vector.broadcast %475 : f32 to vector<8x256xf32>
    %477 = arith.mulf %474, %476 : vector<8x256xf32>
    %478 = arith.addf %471, %477 : vector<8x256xf32>
    %c0_184 = arith.constant 0 : index
    %c0_185 = arith.constant 0 : index
    %479 = arith.index_cast %1 : i32 to index
    %c512_186 = arith.constant 512 : index
    %480 = vector.load %arg2[%c0_184, %c0_185, %479, %c512_186] : memref<1x2x9x1024xf32, #tpu.memory_space<vmem>>, vector<1x1x9x256xf32>
    %481 = vector.shape_cast %480 : vector<1x1x9x256xf32> to vector<9x256xf32>
    %482 = vector.extract_strided_slice %481 {offsets = [0, 0], sizes = [8, 256], strides = [1, 1]} : vector<9x256xf32> to vector<8x256xf32>
    %c10_187 = arith.constant 10 : index
    %483 = memref.load %arg3[%c10_187] : memref<48xf32, #tpu.memory_space<smem>>
    %484 = vector.broadcast %483 : f32 to vector<8x256xf32>
    %485 = arith.mulf %482, %484 : vector<8x256xf32>
    %486 = arith.addf %478, %485 : vector<8x256xf32>
    %487 = vector.extract_strided_slice %481 {offsets = [1, 0], sizes = [8, 256], strides = [1, 1]} : vector<9x256xf32> to vector<8x256xf32>
    %c42_188 = arith.constant 42 : index
    %488 = memref.load %arg3[%c42_188] : memref<48xf32, #tpu.memory_space<smem>>
    %489 = vector.broadcast %488 : f32 to vector<8x256xf32>
    %490 = arith.mulf %487, %489 : vector<8x256xf32>
    %491 = arith.addf %486, %490 : vector<8x256xf32>
    %c0_189 = arith.constant 0 : index
    %c1_190 = arith.constant 1 : index
    %492 = arith.index_cast %1 : i32 to index
    %c512_191 = arith.constant 512 : index
    %493 = vector.load %arg2[%c0_189, %c1_190, %492, %c512_191] : memref<1x2x9x1024xf32, #tpu.memory_space<vmem>>, vector<1x1x8x256xf32>
    %494 = vector.shape_cast %493 : vector<1x1x8x256xf32> to vector<8x256xf32>
    %c26_192 = arith.constant 26 : index
    %495 = memref.load %arg3[%c26_192] : memref<48xf32, #tpu.memory_space<smem>>
    %496 = vector.broadcast %495 : f32 to vector<8x256xf32>
    %497 = arith.mulf %494, %496 : vector<8x256xf32>
    %498 = arith.addf %491, %497 : vector<8x256xf32>
    %c0_193 = arith.constant 0 : index
    %c0_194 = arith.constant 0 : index
    %499 = arith.index_cast %1 : i32 to index
    %c768_195 = arith.constant 768 : index
    %500 = vector.load %arg2[%c0_193, %c0_194, %499, %c768_195] : memref<1x2x9x1024xf32, #tpu.memory_space<vmem>>, vector<1x1x9x256xf32>
    %501 = vector.shape_cast %500 : vector<1x1x9x256xf32> to vector<9x256xf32>
    %502 = vector.extract_strided_slice %501 {offsets = [0, 0], sizes = [8, 256], strides = [1, 1]} : vector<9x256xf32> to vector<8x256xf32>
    %c14_196 = arith.constant 14 : index
    %503 = memref.load %arg3[%c14_196] : memref<48xf32, #tpu.memory_space<smem>>
    %504 = vector.broadcast %503 : f32 to vector<8x256xf32>
    %505 = arith.mulf %502, %504 : vector<8x256xf32>
    %506 = arith.addf %498, %505 : vector<8x256xf32>
    %507 = vector.extract_strided_slice %501 {offsets = [1, 0], sizes = [8, 256], strides = [1, 1]} : vector<9x256xf32> to vector<8x256xf32>
    %c46_197 = arith.constant 46 : index
    %508 = memref.load %arg3[%c46_197] : memref<48xf32, #tpu.memory_space<smem>>
    %509 = vector.broadcast %508 : f32 to vector<8x256xf32>
    %510 = arith.mulf %507, %509 : vector<8x256xf32>
    %511 = arith.addf %506, %510 : vector<8x256xf32>
    %c0_198 = arith.constant 0 : index
    %c1_199 = arith.constant 1 : index
    %512 = arith.index_cast %1 : i32 to index
    %c768_200 = arith.constant 768 : index
    %513 = vector.load %arg2[%c0_198, %c1_199, %512, %c768_200] : memref<1x2x9x1024xf32, #tpu.memory_space<vmem>>, vector<1x1x8x256xf32>
    %514 = vector.shape_cast %513 : vector<1x1x8x256xf32> to vector<8x256xf32>
    %c30_201 = arith.constant 30 : index
    %515 = memref.load %arg3[%c30_201] : memref<48xf32, #tpu.memory_space<smem>>
    %516 = vector.broadcast %515 : f32 to vector<8x256xf32>
    %517 = arith.mulf %514, %516 : vector<8x256xf32>
    %518 = arith.addf %511, %517 : vector<8x256xf32>
    %519 = vector.extract_strided_slice %518 {offsets = [0, 0], sizes = [8, 128], strides = [1, 1]} : vector<8x256xf32> to vector<8x128xf32>
    %520 = vector.extract_strided_slice %518 {offsets = [0, 128], sizes = [8, 128], strides = [1, 1]} : vector<8x256xf32> to vector<8x128xf32>
    %521 = vector.extract_strided_slice %518 {offsets = [0, 0], sizes = [8, 128], strides = [1, 1]} : vector<8x256xf32> to vector<8x128xf32>
    %c127_i32_202 = arith.constant 127 : i32
    %522 = tpu.dynamic_rotate %521 by %c127_i32_202 dim 1 : vector<8x128xf32>, i32 -> vector<8x128xf32>
    %c48 = arith.constant 48 : index
    %523 = memref.load %arg4[%c48] : memref<96xf32, #tpu.memory_space<smem>>
    %524 = vector.broadcast %523 : f32 to vector<8x128xf32>
    %525 = arith.mulf %519, %524 : vector<8x128xf32>
    %c49 = arith.constant 49 : index
    %526 = memref.load %arg4[%c49] : memref<96xf32, #tpu.memory_space<smem>>
    %527 = vector.broadcast %526 : f32 to vector<8x128xf32>
    %528 = arith.mulf %520, %527 : vector<8x128xf32>
    %529 = arith.addf %525, %528 : vector<8x128xf32>
    %c50 = arith.constant 50 : index
    %530 = memref.load %arg4[%c50] : memref<96xf32, #tpu.memory_space<smem>>
    %531 = vector.broadcast %530 : f32 to vector<8x128xf32>
    %532 = arith.mulf %522, %531 : vector<8x128xf32>
    %533 = arith.addf %529, %532 : vector<8x128xf32>
    %c16_203 = arith.constant 16 : index
    %c0_204 = arith.constant 0 : index
    %534 = vector.load %arg5[%c16_203, %c0_204] : memref<32x128xf32, #tpu.memory_space<vmem>>, vector<1x128xf32>
    %535 = vector.broadcast %534 : vector<1x128xf32> to vector<8x128xf32>
    %536 = arith.addf %533, %535 : vector<8x128xf32>
    %c0_205 = arith.constant 0 : index
    %c2_206 = arith.constant 2 : index
    %c0_207 = arith.constant 0 : index
    %c0_208 = arith.constant 0 : index
    %537 = vector.load %arg6[%c0_205, %c2_206, %c0_207, %c0_208] : memref<1x32x8x128xf32, #tpu.memory_space<vmem>>, vector<1x1x8x128xf32>
    %538 = vector.shape_cast %537 : vector<1x1x8x128xf32> to vector<8x128xf32>
    %539 = vector.shape_cast %536 : vector<8x128xf32> to vector<1x1x8x128xf32>
    tpu.vector_store %arg6[%c0_205, %c2_206, %c0_207, %c0_208], %539 {strides = array<i32>} : memref<1x32x8x128xf32, #tpu.memory_space<vmem>>, vector<1x1x8x128xf32>,
    %c51 = arith.constant 51 : index
    %540 = memref.load %arg4[%c51] : memref<96xf32, #tpu.memory_space<smem>>
    %541 = vector.broadcast %540 : f32 to vector<8x128xf32>
    %542 = arith.mulf %519, %541 : vector<8x128xf32>
    %c52 = arith.constant 52 : index
    %543 = memref.load %arg4[%c52] : memref<96xf32, #tpu.memory_space<smem>>
    %544 = vector.broadcast %543 : f32 to vector<8x128xf32>
    %545 = arith.mulf %520, %544 : vector<8x128xf32>
    %546 = arith.addf %542, %545 : vector<8x128xf32>
    %c53 = arith.constant 53 : index
    %547 = memref.load %arg4[%c53] : memref<96xf32, #tpu.memory_space<smem>>
    %548 = vector.broadcast %547 : f32 to vector<8x128xf32>
    %549 = arith.mulf %522, %548 : vector<8x128xf32>
    %550 = arith.addf %546, %549 : vector<8x128xf32>
    %c17_209 = arith.constant 17 : index
    %c0_210 = arith.constant 0 : index
    %551 = vector.load %arg5[%c17_209, %c0_210] : memref<32x128xf32, #tpu.memory_space<vmem>>, vector<1x128xf32>
    %552 = vector.broadcast %551 : vector<1x128xf32> to vector<8x128xf32>
    %553 = arith.addf %550, %552 : vector<8x128xf32>
    %c0_211 = arith.constant 0 : index
    %c6_212 = arith.constant 6 : index
    %c0_213 = arith.constant 0 : index
    %c0_214 = arith.constant 0 : index
    %554 = vector.load %arg6[%c0_211, %c6_212, %c0_213, %c0_214] : memref<1x32x8x128xf32, #tpu.memory_space<vmem>>, vector<1x1x8x128xf32>
    %555 = vector.shape_cast %554 : vector<1x1x8x128xf32> to vector<8x128xf32>
    %556 = vector.shape_cast %553 : vector<8x128xf32> to vector<1x1x8x128xf32>
    tpu.vector_store %arg6[%c0_211, %c6_212, %c0_213, %c0_214], %556 {strides = array<i32>} : memref<1x32x8x128xf32, #tpu.memory_space<vmem>>, vector<1x1x8x128xf32>,
    %c54 = arith.constant 54 : index
    %557 = memref.load %arg4[%c54] : memref<96xf32, #tpu.memory_space<smem>>
    %558 = vector.broadcast %557 : f32 to vector<8x128xf32>
    %559 = arith.mulf %519, %558 : vector<8x128xf32>
    %c55 = arith.constant 55 : index
    %560 = memref.load %arg4[%c55] : memref<96xf32, #tpu.memory_space<smem>>
    %561 = vector.broadcast %560 : f32 to vector<8x128xf32>
    %562 = arith.mulf %520, %561 : vector<8x128xf32>
    %563 = arith.addf %559, %562 : vector<8x128xf32>
    %c56 = arith.constant 56 : index
    %564 = memref.load %arg4[%c56] : memref<96xf32, #tpu.memory_space<smem>>
    %565 = vector.broadcast %564 : f32 to vector<8x128xf32>
    %566 = arith.mulf %522, %565 : vector<8x128xf32>
    %567 = arith.addf %563, %566 : vector<8x128xf32>
    %c18_215 = arith.constant 18 : index
    %c0_216 = arith.constant 0 : index
    %568 = vector.load %arg5[%c18_215, %c0_216] : memref<32x128xf32, #tpu.memory_space<vmem>>, vector<1x128xf32>
    %569 = vector.broadcast %568 : vector<1x128xf32> to vector<8x128xf32>
    %570 = arith.addf %567, %569 : vector<8x128xf32>
    %c0_217 = arith.constant 0 : index
    %c10_218 = arith.constant 10 : index
    %c0_219 = arith.constant 0 : index
    %c0_220 = arith.constant 0 : index
    %571 = vector.load %arg6[%c0_217, %c10_218, %c0_219, %c0_220] : memref<1x32x8x128xf32, #tpu.memory_space<vmem>>, vector<1x1x8x128xf32>
    %572 = vector.shape_cast %571 : vector<1x1x8x128xf32> to vector<8x128xf32>
    %573 = vector.shape_cast %570 : vector<8x128xf32> to vector<1x1x8x128xf32>
    tpu.vector_store %arg6[%c0_217, %c10_218, %c0_219, %c0_220], %573 {strides = array<i32>} : memref<1x32x8x128xf32, #tpu.memory_space<vmem>>, vector<1x1x8x128xf32>,
    %c57 = arith.constant 57 : index
    %574 = memref.load %arg4[%c57] : memref<96xf32, #tpu.memory_space<smem>>
    %575 = vector.broadcast %574 : f32 to vector<8x128xf32>
    %576 = arith.mulf %519, %575 : vector<8x128xf32>
    %c58 = arith.constant 58 : index
    %577 = memref.load %arg4[%c58] : memref<96xf32, #tpu.memory_space<smem>>
    %578 = vector.broadcast %577 : f32 to vector<8x128xf32>
    %579 = arith.mulf %520, %578 : vector<8x128xf32>
    %580 = arith.addf %576, %579 : vector<8x128xf32>
    %c59 = arith.constant 59 : index
    %581 = memref.load %arg4[%c59] : memref<96xf32, #tpu.memory_space<smem>>
    %582 = vector.broadcast %581 : f32 to vector<8x128xf32>
    %583 = arith.mulf %522, %582 : vector<8x128xf32>
    %584 = arith.addf %580, %583 : vector<8x128xf32>
    %c19_221 = arith.constant 19 : index
    %c0_222 = arith.constant 0 : index
    %585 = vector.load %arg5[%c19_221, %c0_222] : memref<32x128xf32, #tpu.memory_space<vmem>>, vector<1x128xf32>
    %586 = vector.broadcast %585 : vector<1x128xf32> to vector<8x128xf32>
    %587 = arith.addf %584, %586 : vector<8x128xf32>
    %c0_223 = arith.constant 0 : index
    %c14_224 = arith.constant 14 : index
    %c0_225 = arith.constant 0 : index
    %c0_226 = arith.constant 0 : index
    %588 = vector.load %arg6[%c0_223, %c14_224, %c0_225, %c0_226] : memref<1x32x8x128xf32, #tpu.memory_space<vmem>>, vector<1x1x8x128xf32>
    %589 = vector.shape_cast %588 : vector<1x1x8x128xf32> to vector<8x128xf32>
    %590 = vector.shape_cast %587 : vector<8x128xf32> to vector<1x1x8x128xf32>
    tpu.vector_store %arg6[%c0_223, %c14_224, %c0_225, %c0_226], %590 {strides = array<i32>} : memref<1x32x8x128xf32, #tpu.memory_space<vmem>>, vector<1x1x8x128xf32>,
    %c60 = arith.constant 60 : index
    %591 = memref.load %arg4[%c60] : memref<96xf32, #tpu.memory_space<smem>>
    %592 = vector.broadcast %591 : f32 to vector<8x128xf32>
    %593 = arith.mulf %519, %592 : vector<8x128xf32>
    %c61 = arith.constant 61 : index
    %594 = memref.load %arg4[%c61] : memref<96xf32, #tpu.memory_space<smem>>
    %595 = vector.broadcast %594 : f32 to vector<8x128xf32>
    %596 = arith.mulf %520, %595 : vector<8x128xf32>
    %597 = arith.addf %593, %596 : vector<8x128xf32>
    %c62 = arith.constant 62 : index
    %598 = memref.load %arg4[%c62] : memref<96xf32, #tpu.memory_space<smem>>
    %599 = vector.broadcast %598 : f32 to vector<8x128xf32>
    %600 = arith.mulf %522, %599 : vector<8x128xf32>
    %601 = arith.addf %597, %600 : vector<8x128xf32>
    %c20_227 = arith.constant 20 : index
    %c0_228 = arith.constant 0 : index
    %602 = vector.load %arg5[%c20_227, %c0_228] : memref<32x128xf32, #tpu.memory_space<vmem>>, vector<1x128xf32>
    %603 = vector.broadcast %602 : vector<1x128xf32> to vector<8x128xf32>
    %604 = arith.addf %601, %603 : vector<8x128xf32>
    %c0_229 = arith.constant 0 : index
    %c18_230 = arith.constant 18 : index
    %c0_231 = arith.constant 0 : index
    %c0_232 = arith.constant 0 : index
    %605 = vector.load %arg6[%c0_229, %c18_230, %c0_231, %c0_232] : memref<1x32x8x128xf32, #tpu.memory_space<vmem>>, vector<1x1x8x128xf32>
    %606 = vector.shape_cast %605 : vector<1x1x8x128xf32> to vector<8x128xf32>
    %607 = vector.shape_cast %604 : vector<8x128xf32> to vector<1x1x8x128xf32>
    tpu.vector_store %arg6[%c0_229, %c18_230, %c0_231, %c0_232], %607 {strides = array<i32>} : memref<1x32x8x128xf32, #tpu.memory_space<vmem>>, vector<1x1x8x128xf32>,
    %c63 = arith.constant 63 : index
    %608 = memref.load %arg4[%c63] : memref<96xf32, #tpu.memory_space<smem>>
    %609 = vector.broadcast %608 : f32 to vector<8x128xf32>
    %610 = arith.mulf %519, %609 : vector<8x128xf32>
    %c64 = arith.constant 64 : index
    %611 = memref.load %arg4[%c64] : memref<96xf32, #tpu.memory_space<smem>>
    %612 = vector.broadcast %611 : f32 to vector<8x128xf32>
    %613 = arith.mulf %520, %612 : vector<8x128xf32>
    %614 = arith.addf %610, %613 : vector<8x128xf32>
    %c65 = arith.constant 65 : index
    %615 = memref.load %arg4[%c65] : memref<96xf32, #tpu.memory_space<smem>>
    %616 = vector.broadcast %615 : f32 to vector<8x128xf32>
    %617 = arith.mulf %522, %616 : vector<8x128xf32>
    %618 = arith.addf %614, %617 : vector<8x128xf32>
    %c21_233 = arith.constant 21 : index
    %c0_234 = arith.constant 0 : index
    %619 = vector.load %arg5[%c21_233, %c0_234] : memref<32x128xf32, #tpu.memory_space<vmem>>, vector<1x128xf32>
    %620 = vector.broadcast %619 : vector<1x128xf32> to vector<8x128xf32>
    %621 = arith.addf %618, %620 : vector<8x128xf32>
    %c0_235 = arith.constant 0 : index
    %c22_236 = arith.constant 22 : index
    %c0_237 = arith.constant 0 : index
    %c0_238 = arith.constant 0 : index
    %622 = vector.load %arg6[%c0_235, %c22_236, %c0_237, %c0_238] : memref<1x32x8x128xf32, #tpu.memory_space<vmem>>, vector<1x1x8x128xf32>
    %623 = vector.shape_cast %622 : vector<1x1x8x128xf32> to vector<8x128xf32>
    %624 = vector.shape_cast %621 : vector<8x128xf32> to vector<1x1x8x128xf32>
    tpu.vector_store %arg6[%c0_235, %c22_236, %c0_237, %c0_238], %624 {strides = array<i32>} : memref<1x32x8x128xf32, #tpu.memory_space<vmem>>, vector<1x1x8x128xf32>,
    %c66 = arith.constant 66 : index
    %625 = memref.load %arg4[%c66] : memref<96xf32, #tpu.memory_space<smem>>
    %626 = vector.broadcast %625 : f32 to vector<8x128xf32>
    %627 = arith.mulf %519, %626 : vector<8x128xf32>
    %c67 = arith.constant 67 : index
    %628 = memref.load %arg4[%c67] : memref<96xf32, #tpu.memory_space<smem>>
    %629 = vector.broadcast %628 : f32 to vector<8x128xf32>
    %630 = arith.mulf %520, %629 : vector<8x128xf32>
    %631 = arith.addf %627, %630 : vector<8x128xf32>
    %c68 = arith.constant 68 : index
    %632 = memref.load %arg4[%c68] : memref<96xf32, #tpu.memory_space<smem>>
    %633 = vector.broadcast %632 : f32 to vector<8x128xf32>
    %634 = arith.mulf %522, %633 : vector<8x128xf32>
    %635 = arith.addf %631, %634 : vector<8x128xf32>
    %c22_239 = arith.constant 22 : index
    %c0_240 = arith.constant 0 : index
    %636 = vector.load %arg5[%c22_239, %c0_240] : memref<32x128xf32, #tpu.memory_space<vmem>>, vector<1x128xf32>
    %637 = vector.broadcast %636 : vector<1x128xf32> to vector<8x128xf32>
    %638 = arith.addf %635, %637 : vector<8x128xf32>
    %c0_241 = arith.constant 0 : index
    %c26_242 = arith.constant 26 : index
    %c0_243 = arith.constant 0 : index
    %c0_244 = arith.constant 0 : index
    %639 = vector.load %arg6[%c0_241, %c26_242, %c0_243, %c0_244] : memref<1x32x8x128xf32, #tpu.memory_space<vmem>>, vector<1x1x8x128xf32>
    %640 = vector.shape_cast %639 : vector<1x1x8x128xf32> to vector<8x128xf32>
    %641 = vector.shape_cast %638 : vector<8x128xf32> to vector<1x1x8x128xf32>
    tpu.vector_store %arg6[%c0_241, %c26_242, %c0_243, %c0_244], %641 {strides = array<i32>} : memref<1x32x8x128xf32, #tpu.memory_space<vmem>>, vector<1x1x8x128xf32>,
    %c69 = arith.constant 69 : index
    %642 = memref.load %arg4[%c69] : memref<96xf32, #tpu.memory_space<smem>>
    %643 = vector.broadcast %642 : f32 to vector<8x128xf32>
    %644 = arith.mulf %519, %643 : vector<8x128xf32>
    %c70 = arith.constant 70 : index
    %645 = memref.load %arg4[%c70] : memref<96xf32, #tpu.memory_space<smem>>
    %646 = vector.broadcast %645 : f32 to vector<8x128xf32>
    %647 = arith.mulf %520, %646 : vector<8x128xf32>
    %648 = arith.addf %644, %647 : vector<8x128xf32>
    %c71 = arith.constant 71 : index
    %649 = memref.load %arg4[%c71] : memref<96xf32, #tpu.memory_space<smem>>
    %650 = vector.broadcast %649 : f32 to vector<8x128xf32>
    %651 = arith.mulf %522, %650 : vector<8x128xf32>
    %652 = arith.addf %648, %651 : vector<8x128xf32>
    %c23_245 = arith.constant 23 : index
    %c0_246 = arith.constant 0 : index
    %653 = vector.load %arg5[%c23_245, %c0_246] : memref<32x128xf32, #tpu.memory_space<vmem>>, vector<1x128xf32>
    %654 = vector.broadcast %653 : vector<1x128xf32> to vector<8x128xf32>
    %655 = arith.addf %652, %654 : vector<8x128xf32>
    %c0_247 = arith.constant 0 : index
    %c30_248 = arith.constant 30 : index
    %c0_249 = arith.constant 0 : index
    %c0_250 = arith.constant 0 : index
    %656 = vector.load %arg6[%c0_247, %c30_248, %c0_249, %c0_250] : memref<1x32x8x128xf32, #tpu.memory_space<vmem>>, vector<1x1x8x128xf32>
    %657 = vector.shape_cast %656 : vector<1x1x8x128xf32> to vector<8x128xf32>
    %658 = vector.shape_cast %655 : vector<8x128xf32> to vector<1x1x8x128xf32>
    tpu.vector_store %arg6[%c0_247, %c30_248, %c0_249, %c0_250], %658 {strides = array<i32>} : memref<1x32x8x128xf32, #tpu.memory_space<vmem>>, vector<1x1x8x128xf32>,
    %c0_251 = arith.constant 0 : index
    %c0_252 = arith.constant 0 : index
    %659 = arith.index_cast %1 : i32 to index
    %c0_253 = arith.constant 0 : index
    %660 = vector.load %arg2[%c0_251, %c0_252, %659, %c0_253] : memref<1x2x9x1024xf32, #tpu.memory_space<vmem>>, vector<1x1x9x256xf32>
    %661 = vector.shape_cast %660 : vector<1x1x9x256xf32> to vector<9x256xf32>
    %662 = vector.extract_strided_slice %661 {offsets = [0, 0], sizes = [8, 256], strides = [1, 1]} : vector<9x256xf32> to vector<8x256xf32>
    %c3_254 = arith.constant 3 : index
    %663 = memref.load %arg3[%c3_254] : memref<48xf32, #tpu.memory_space<smem>>
    %664 = vector.broadcast %663 : f32 to vector<8x256xf32>
    %665 = arith.mulf %662, %664 : vector<8x256xf32>
    %666 = vector.extract_strided_slice %661 {offsets = [1, 0], sizes = [8, 256], strides = [1, 1]} : vector<9x256xf32> to vector<8x256xf32>
    %c35_255 = arith.constant 35 : index
    %667 = memref.load %arg3[%c35_255] : memref<48xf32, #tpu.memory_space<smem>>
    %668 = vector.broadcast %667 : f32 to vector<8x256xf32>
    %669 = arith.mulf %666, %668 : vector<8x256xf32>
    %670 = arith.addf %665, %669 : vector<8x256xf32>
    %c0_256 = arith.constant 0 : index
    %c1_257 = arith.constant 1 : index
    %671 = arith.index_cast %1 : i32 to index
    %c0_258 = arith.constant 0 : index
    %672 = vector.load %arg2[%c0_256, %c1_257, %671, %c0_258] : memref<1x2x9x1024xf32, #tpu.memory_space<vmem>>, vector<1x1x8x256xf32>
    %673 = vector.shape_cast %672 : vector<1x1x8x256xf32> to vector<8x256xf32>
    %c19_259 = arith.constant 19 : index
    %674 = memref.load %arg3[%c19_259] : memref<48xf32, #tpu.memory_space<smem>>
    %675 = vector.broadcast %674 : f32 to vector<8x256xf32>
    %676 = arith.mulf %673, %675 : vector<8x256xf32>
    %677 = arith.addf %670, %676 : vector<8x256xf32>
    %c0_260 = arith.constant 0 : index
    %c0_261 = arith.constant 0 : index
    %678 = arith.index_cast %1 : i32 to index
    %c256_262 = arith.constant 256 : index
    %679 = vector.load %arg2[%c0_260, %c0_261, %678, %c256_262] : memref<1x2x9x1024xf32, #tpu.memory_space<vmem>>, vector<1x1x9x256xf32>
    %680 = vector.shape_cast %679 : vector<1x1x9x256xf32> to vector<9x256xf32>
    %681 = vector.extract_strided_slice %680 {offsets = [0, 0], sizes = [8, 256], strides = [1, 1]} : vector<9x256xf32> to vector<8x256xf32>
    %c7_263 = arith.constant 7 : index
    %682 = memref.load %arg3[%c7_263] : memref<48xf32, #tpu.memory_space<smem>>
    %683 = vector.broadcast %682 : f32 to vector<8x256xf32>
    %684 = arith.mulf %681, %683 : vector<8x256xf32>
    %685 = arith.addf %677, %684 : vector<8x256xf32>
    %686 = vector.extract_strided_slice %680 {offsets = [1, 0], sizes = [8, 256], strides = [1, 1]} : vector<9x256xf32> to vector<8x256xf32>
    %c39_264 = arith.constant 39 : index
    %687 = memref.load %arg3[%c39_264] : memref<48xf32, #tpu.memory_space<smem>>
    %688 = vector.broadcast %687 : f32 to vector<8x256xf32>
    %689 = arith.mulf %686, %688 : vector<8x256xf32>
    %690 = arith.addf %685, %689 : vector<8x256xf32>
    %c0_265 = arith.constant 0 : index
    %c1_266 = arith.constant 1 : index
    %691 = arith.index_cast %1 : i32 to index
    %c256_267 = arith.constant 256 : index
    %692 = vector.load %arg2[%c0_265, %c1_266, %691, %c256_267] : memref<1x2x9x1024xf32, #tpu.memory_space<vmem>>, vector<1x1x8x256xf32>
    %693 = vector.shape_cast %692 : vector<1x1x8x256xf32> to vector<8x256xf32>
    %c23_268 = arith.constant 23 : index
    %694 = memref.load %arg3[%c23_268] : memref<48xf32, #tpu.memory_space<smem>>
    %695 = vector.broadcast %694 : f32 to vector<8x256xf32>
    %696 = arith.mulf %693, %695 : vector<8x256xf32>
    %697 = arith.addf %690, %696 : vector<8x256xf32>
    %c0_269 = arith.constant 0 : index
    %c0_270 = arith.constant 0 : index
    %698 = arith.index_cast %1 : i32 to index
    %c512_271 = arith.constant 512 : index
    %699 = vector.load %arg2[%c0_269, %c0_270, %698, %c512_271] : memref<1x2x9x1024xf32, #tpu.memory_space<vmem>>, vector<1x1x9x256xf32>
    %700 = vector.shape_cast %699 : vector<1x1x9x256xf32> to vector<9x256xf32>
    %701 = vector.extract_strided_slice %700 {offsets = [0, 0], sizes = [8, 256], strides = [1, 1]} : vector<9x256xf32> to vector<8x256xf32>
    %c11_272 = arith.constant 11 : index
    %702 = memref.load %arg3[%c11_272] : memref<48xf32, #tpu.memory_space<smem>>
    %703 = vector.broadcast %702 : f32 to vector<8x256xf32>
    %704 = arith.mulf %701, %703 : vector<8x256xf32>
    %705 = arith.addf %697, %704 : vector<8x256xf32>
    %706 = vector.extract_strided_slice %700 {offsets = [1, 0], sizes = [8, 256], strides = [1, 1]} : vector<9x256xf32> to vector<8x256xf32>
    %c43_273 = arith.constant 43 : index
    %707 = memref.load %arg3[%c43_273] : memref<48xf32, #tpu.memory_space<smem>>
    %708 = vector.broadcast %707 : f32 to vector<8x256xf32>
    %709 = arith.mulf %706, %708 : vector<8x256xf32>
    %710 = arith.addf %705, %709 : vector<8x256xf32>
    %c0_274 = arith.constant 0 : index
    %c1_275 = arith.constant 1 : index
    %711 = arith.index_cast %1 : i32 to index
    %c512_276 = arith.constant 512 : index
    %712 = vector.load %arg2[%c0_274, %c1_275, %711, %c512_276] : memref<1x2x9x1024xf32, #tpu.memory_space<vmem>>, vector<1x1x8x256xf32>
    %713 = vector.shape_cast %712 : vector<1x1x8x256xf32> to vector<8x256xf32>
    %c27_277 = arith.constant 27 : index
    %714 = memref.load %arg3[%c27_277] : memref<48xf32, #tpu.memory_space<smem>>
    %715 = vector.broadcast %714 : f32 to vector<8x256xf32>
    %716 = arith.mulf %713, %715 : vector<8x256xf32>
    %717 = arith.addf %710, %716 : vector<8x256xf32>
    %c0_278 = arith.constant 0 : index
    %c0_279 = arith.constant 0 : index
    %718 = arith.index_cast %1 : i32 to index
    %c768_280 = arith.constant 768 : index
    %719 = vector.load %arg2[%c0_278, %c0_279, %718, %c768_280] : memref<1x2x9x1024xf32, #tpu.memory_space<vmem>>, vector<1x1x9x256xf32>
    %720 = vector.shape_cast %719 : vector<1x1x9x256xf32> to vector<9x256xf32>
    %721 = vector.extract_strided_slice %720 {offsets = [0, 0], sizes = [8, 256], strides = [1, 1]} : vector<9x256xf32> to vector<8x256xf32>
    %c15_281 = arith.constant 15 : index
    %722 = memref.load %arg3[%c15_281] : memref<48xf32, #tpu.memory_space<smem>>
    %723 = vector.broadcast %722 : f32 to vector<8x256xf32>
    %724 = arith.mulf %721, %723 : vector<8x256xf32>
    %725 = arith.addf %717, %724 : vector<8x256xf32>
    %726 = vector.extract_strided_slice %720 {offsets = [1, 0], sizes = [8, 256], strides = [1, 1]} : vector<9x256xf32> to vector<8x256xf32>
    %c47_282 = arith.constant 47 : index
    %727 = memref.load %arg3[%c47_282] : memref<48xf32, #tpu.memory_space<smem>>
    %728 = vector.broadcast %727 : f32 to vector<8x256xf32>
    %729 = arith.mulf %726, %728 : vector<8x256xf32>
    %730 = arith.addf %725, %729 : vector<8x256xf32>
    %c0_283 = arith.constant 0 : index
    %c1_284 = arith.constant 1 : index
    %731 = arith.index_cast %1 : i32 to index
    %c768_285 = arith.constant 768 : index
    %732 = vector.load %arg2[%c0_283, %c1_284, %731, %c768_285] : memref<1x2x9x1024xf32, #tpu.memory_space<vmem>>, vector<1x1x8x256xf32>
    %733 = vector.shape_cast %732 : vector<1x1x8x256xf32> to vector<8x256xf32>
    %c31_286 = arith.constant 31 : index
    %734 = memref.load %arg3[%c31_286] : memref<48xf32, #tpu.memory_space<smem>>
    %735 = vector.broadcast %734 : f32 to vector<8x256xf32>
    %736 = arith.mulf %733, %735 : vector<8x256xf32>
    %737 = arith.addf %730, %736 : vector<8x256xf32>
    %738 = vector.extract_strided_slice %737 {offsets = [0, 0], sizes = [8, 128], strides = [1, 1]} : vector<8x256xf32> to vector<8x128xf32>
    %739 = vector.extract_strided_slice %737 {offsets = [0, 128], sizes = [8, 128], strides = [1, 1]} : vector<8x256xf32> to vector<8x128xf32>
    %740 = vector.extract_strided_slice %737 {offsets = [0, 0], sizes = [8, 128], strides = [1, 1]} : vector<8x256xf32> to vector<8x128xf32>
    %c127_i32_287 = arith.constant 127 : i32
    %741 = tpu.dynamic_rotate %740 by %c127_i32_287 dim 1 : vector<8x128xf32>, i32 -> vector<8x128xf32>
    %c72 = arith.constant 72 : index
    %742 = memref.load %arg4[%c72] : memref<96xf32, #tpu.memory_space<smem>>
    %743 = vector.broadcast %742 : f32 to vector<8x128xf32>
    %744 = arith.mulf %738, %743 : vector<8x128xf32>
    %c73 = arith.constant 73 : index
    %745 = memref.load %arg4[%c73] : memref<96xf32, #tpu.memory_space<smem>>
    %746 = vector.broadcast %745 : f32 to vector<8x128xf32>
    %747 = arith.mulf %739, %746 : vector<8x128xf32>
    %748 = arith.addf %744, %747 : vector<8x128xf32>
    %c74 = arith.constant 74 : index
    %749 = memref.load %arg4[%c74] : memref<96xf32, #tpu.memory_space<smem>>
    %750 = vector.broadcast %749 : f32 to vector<8x128xf32>
    %751 = arith.mulf %741, %750 : vector<8x128xf32>
    %752 = arith.addf %748, %751 : vector<8x128xf32>
    %c24_288 = arith.constant 24 : index
    %c0_289 = arith.constant 0 : index
    %753 = vector.load %arg5[%c24_288, %c0_289] : memref<32x128xf32, #tpu.memory_space<vmem>>, vector<1x128xf32>
    %754 = vector.broadcast %753 : vector<1x128xf32> to vector<8x128xf32>
    %755 = arith.addf %752, %754 : vector<8x128xf32>
    %c0_290 = arith.constant 0 : index
    %c3_291 = arith.constant 3 : index
    %c0_292 = arith.constant 0 : index
    %c0_293 = arith.constant 0 : index
    %756 = vector.load %arg6[%c0_290, %c3_291, %c0_292, %c0_293] : memref<1x32x8x128xf32, #tpu.memory_space<vmem>>, vector<1x1x8x128xf32>
    %757 = vector.shape_cast %756 : vector<1x1x8x128xf32> to vector<8x128xf32>
    %758 = vector.shape_cast %755 : vector<8x128xf32> to vector<1x1x8x128xf32>
    tpu.vector_store %arg6[%c0_290, %c3_291, %c0_292, %c0_293], %758 {strides = array<i32>} : memref<1x32x8x128xf32, #tpu.memory_space<vmem>>, vector<1x1x8x128xf32>,
    %c75 = arith.constant 75 : index
    %759 = memref.load %arg4[%c75] : memref<96xf32, #tpu.memory_space<smem>>
    %760 = vector.broadcast %759 : f32 to vector<8x128xf32>
    %761 = arith.mulf %738, %760 : vector<8x128xf32>
    %c76 = arith.constant 76 : index
    %762 = memref.load %arg4[%c76] : memref<96xf32, #tpu.memory_space<smem>>
    %763 = vector.broadcast %762 : f32 to vector<8x128xf32>
    %764 = arith.mulf %739, %763 : vector<8x128xf32>
    %765 = arith.addf %761, %764 : vector<8x128xf32>
    %c77 = arith.constant 77 : index
    %766 = memref.load %arg4[%c77] : memref<96xf32, #tpu.memory_space<smem>>
    %767 = vector.broadcast %766 : f32 to vector<8x128xf32>
    %768 = arith.mulf %741, %767 : vector<8x128xf32>
    %769 = arith.addf %765, %768 : vector<8x128xf32>
    %c25_294 = arith.constant 25 : index
    %c0_295 = arith.constant 0 : index
    %770 = vector.load %arg5[%c25_294, %c0_295] : memref<32x128xf32, #tpu.memory_space<vmem>>, vector<1x128xf32>
    %771 = vector.broadcast %770 : vector<1x128xf32> to vector<8x128xf32>
    %772 = arith.addf %769, %771 : vector<8x128xf32>
    %c0_296 = arith.constant 0 : index
    %c7_297 = arith.constant 7 : index
    %c0_298 = arith.constant 0 : index
    %c0_299 = arith.constant 0 : index
    %773 = vector.load %arg6[%c0_296, %c7_297, %c0_298, %c0_299] : memref<1x32x8x128xf32, #tpu.memory_space<vmem>>, vector<1x1x8x128xf32>
    %774 = vector.shape_cast %773 : vector<1x1x8x128xf32> to vector<8x128xf32>
    %775 = vector.shape_cast %772 : vector<8x128xf32> to vector<1x1x8x128xf32>
    tpu.vector_store %arg6[%c0_296, %c7_297, %c0_298, %c0_299], %775 {strides = array<i32>} : memref<1x32x8x128xf32, #tpu.memory_space<vmem>>, vector<1x1x8x128xf32>,
    %c78 = arith.constant 78 : index
    %776 = memref.load %arg4[%c78] : memref<96xf32, #tpu.memory_space<smem>>
    %777 = vector.broadcast %776 : f32 to vector<8x128xf32>
    %778 = arith.mulf %738, %777 : vector<8x128xf32>
    %c79 = arith.constant 79 : index
    %779 = memref.load %arg4[%c79] : memref<96xf32, #tpu.memory_space<smem>>
    %780 = vector.broadcast %779 : f32 to vector<8x128xf32>
    %781 = arith.mulf %739, %780 : vector<8x128xf32>
    %782 = arith.addf %778, %781 : vector<8x128xf32>
    %c80 = arith.constant 80 : index
    %783 = memref.load %arg4[%c80] : memref<96xf32, #tpu.memory_space<smem>>
    %784 = vector.broadcast %783 : f32 to vector<8x128xf32>
    %785 = arith.mulf %741, %784 : vector<8x128xf32>
    %786 = arith.addf %782, %785 : vector<8x128xf32>
    %c26_300 = arith.constant 26 : index
    %c0_301 = arith.constant 0 : index
    %787 = vector.load %arg5[%c26_300, %c0_301] : memref<32x128xf32, #tpu.memory_space<vmem>>, vector<1x128xf32>
    %788 = vector.broadcast %787 : vector<1x128xf32> to vector<8x128xf32>
    %789 = arith.addf %786, %788 : vector<8x128xf32>
    %c0_302 = arith.constant 0 : index
    %c11_303 = arith.constant 11 : index
    %c0_304 = arith.constant 0 : index
    %c0_305 = arith.constant 0 : index
    %790 = vector.load %arg6[%c0_302, %c11_303, %c0_304, %c0_305] : memref<1x32x8x128xf32, #tpu.memory_space<vmem>>, vector<1x1x8x128xf32>
    %791 = vector.shape_cast %790 : vector<1x1x8x128xf32> to vector<8x128xf32>
    %792 = vector.shape_cast %789 : vector<8x128xf32> to vector<1x1x8x128xf32>
    tpu.vector_store %arg6[%c0_302, %c11_303, %c0_304, %c0_305], %792 {strides = array<i32>} : memref<1x32x8x128xf32, #tpu.memory_space<vmem>>, vector<1x1x8x128xf32>,
    %c81 = arith.constant 81 : index
    %793 = memref.load %arg4[%c81] : memref<96xf32, #tpu.memory_space<smem>>
    %794 = vector.broadcast %793 : f32 to vector<8x128xf32>
    %795 = arith.mulf %738, %794 : vector<8x128xf32>
    %c82 = arith.constant 82 : index
    %796 = memref.load %arg4[%c82] : memref<96xf32, #tpu.memory_space<smem>>
    %797 = vector.broadcast %796 : f32 to vector<8x128xf32>
    %798 = arith.mulf %739, %797 : vector<8x128xf32>
    %799 = arith.addf %795, %798 : vector<8x128xf32>
    %c83 = arith.constant 83 : index
    %800 = memref.load %arg4[%c83] : memref<96xf32, #tpu.memory_space<smem>>
    %801 = vector.broadcast %800 : f32 to vector<8x128xf32>
    %802 = arith.mulf %741, %801 : vector<8x128xf32>
    %803 = arith.addf %799, %802 : vector<8x128xf32>
    %c27_306 = arith.constant 27 : index
    %c0_307 = arith.constant 0 : index
    %804 = vector.load %arg5[%c27_306, %c0_307] : memref<32x128xf32, #tpu.memory_space<vmem>>, vector<1x128xf32>
    %805 = vector.broadcast %804 : vector<1x128xf32> to vector<8x128xf32>
    %806 = arith.addf %803, %805 : vector<8x128xf32>
    %c0_308 = arith.constant 0 : index
    %c15_309 = arith.constant 15 : index
    %c0_310 = arith.constant 0 : index
    %c0_311 = arith.constant 0 : index
    %807 = vector.load %arg6[%c0_308, %c15_309, %c0_310, %c0_311] : memref<1x32x8x128xf32, #tpu.memory_space<vmem>>, vector<1x1x8x128xf32>
    %808 = vector.shape_cast %807 : vector<1x1x8x128xf32> to vector<8x128xf32>
    %809 = vector.shape_cast %806 : vector<8x128xf32> to vector<1x1x8x128xf32>
    tpu.vector_store %arg6[%c0_308, %c15_309, %c0_310, %c0_311], %809 {strides = array<i32>} : memref<1x32x8x128xf32, #tpu.memory_space<vmem>>, vector<1x1x8x128xf32>,
    %c84 = arith.constant 84 : index
    %810 = memref.load %arg4[%c84] : memref<96xf32, #tpu.memory_space<smem>>
    %811 = vector.broadcast %810 : f32 to vector<8x128xf32>
    %812 = arith.mulf %738, %811 : vector<8x128xf32>
    %c85 = arith.constant 85 : index
    %813 = memref.load %arg4[%c85] : memref<96xf32, #tpu.memory_space<smem>>
    %814 = vector.broadcast %813 : f32 to vector<8x128xf32>
    %815 = arith.mulf %739, %814 : vector<8x128xf32>
    %816 = arith.addf %812, %815 : vector<8x128xf32>
    %c86 = arith.constant 86 : index
    %817 = memref.load %arg4[%c86] : memref<96xf32, #tpu.memory_space<smem>>
    %818 = vector.broadcast %817 : f32 to vector<8x128xf32>
    %819 = arith.mulf %741, %818 : vector<8x128xf32>
    %820 = arith.addf %816, %819 : vector<8x128xf32>
    %c28_312 = arith.constant 28 : index
    %c0_313 = arith.constant 0 : index
    %821 = vector.load %arg5[%c28_312, %c0_313] : memref<32x128xf32, #tpu.memory_space<vmem>>, vector<1x128xf32>
    %822 = vector.broadcast %821 : vector<1x128xf32> to vector<8x128xf32>
    %823 = arith.addf %820, %822 : vector<8x128xf32>
    %c0_314 = arith.constant 0 : index
    %c19_315 = arith.constant 19 : index
    %c0_316 = arith.constant 0 : index
    %c0_317 = arith.constant 0 : index
    %824 = vector.load %arg6[%c0_314, %c19_315, %c0_316, %c0_317] : memref<1x32x8x128xf32, #tpu.memory_space<vmem>>, vector<1x1x8x128xf32>
    %825 = vector.shape_cast %824 : vector<1x1x8x128xf32> to vector<8x128xf32>
    %826 = vector.shape_cast %823 : vector<8x128xf32> to vector<1x1x8x128xf32>
    tpu.vector_store %arg6[%c0_314, %c19_315, %c0_316, %c0_317], %826 {strides = array<i32>} : memref<1x32x8x128xf32, #tpu.memory_space<vmem>>, vector<1x1x8x128xf32>,
    %c87 = arith.constant 87 : index
    %827 = memref.load %arg4[%c87] : memref<96xf32, #tpu.memory_space<smem>>
    %828 = vector.broadcast %827 : f32 to vector<8x128xf32>
    %829 = arith.mulf %738, %828 : vector<8x128xf32>
    %c88 = arith.constant 88 : index
    %830 = memref.load %arg4[%c88] : memref<96xf32, #tpu.memory_space<smem>>
    %831 = vector.broadcast %830 : f32 to vector<8x128xf32>
    %832 = arith.mulf %739, %831 : vector<8x128xf32>
    %833 = arith.addf %829, %832 : vector<8x128xf32>
    %c89 = arith.constant 89 : index
    %834 = memref.load %arg4[%c89] : memref<96xf32, #tpu.memory_space<smem>>
    %835 = vector.broadcast %834 : f32 to vector<8x128xf32>
    %836 = arith.mulf %741, %835 : vector<8x128xf32>
    %837 = arith.addf %833, %836 : vector<8x128xf32>
    %c29_318 = arith.constant 29 : index
    %c0_319 = arith.constant 0 : index
    %838 = vector.load %arg5[%c29_318, %c0_319] : memref<32x128xf32, #tpu.memory_space<vmem>>, vector<1x128xf32>
    %839 = vector.broadcast %838 : vector<1x128xf32> to vector<8x128xf32>
    %840 = arith.addf %837, %839 : vector<8x128xf32>
    %c0_320 = arith.constant 0 : index
    %c23_321 = arith.constant 23 : index
    %c0_322 = arith.constant 0 : index
    %c0_323 = arith.constant 0 : index
    %841 = vector.load %arg6[%c0_320, %c23_321, %c0_322, %c0_323] : memref<1x32x8x128xf32, #tpu.memory_space<vmem>>, vector<1x1x8x128xf32>
    %842 = vector.shape_cast %841 : vector<1x1x8x128xf32> to vector<8x128xf32>
    %843 = vector.shape_cast %840 : vector<8x128xf32> to vector<1x1x8x128xf32>
    tpu.vector_store %arg6[%c0_320, %c23_321, %c0_322, %c0_323], %843 {strides = array<i32>} : memref<1x32x8x128xf32, #tpu.memory_space<vmem>>, vector<1x1x8x128xf32>,
    %c90 = arith.constant 90 : index
    %844 = memref.load %arg4[%c90] : memref<96xf32, #tpu.memory_space<smem>>
    %845 = vector.broadcast %844 : f32 to vector<8x128xf32>
    %846 = arith.mulf %738, %845 : vector<8x128xf32>
    %c91 = arith.constant 91 : index
    %847 = memref.load %arg4[%c91] : memref<96xf32, #tpu.memory_space<smem>>
    %848 = vector.broadcast %847 : f32 to vector<8x128xf32>
    %849 = arith.mulf %739, %848 : vector<8x128xf32>
    %850 = arith.addf %846, %849 : vector<8x128xf32>
    %c92 = arith.constant 92 : index
    %851 = memref.load %arg4[%c92] : memref<96xf32, #tpu.memory_space<smem>>
    %852 = vector.broadcast %851 : f32 to vector<8x128xf32>
    %853 = arith.mulf %741, %852 : vector<8x128xf32>
    %854 = arith.addf %850, %853 : vector<8x128xf32>
    %c30_324 = arith.constant 30 : index
    %c0_325 = arith.constant 0 : index
    %855 = vector.load %arg5[%c30_324, %c0_325] : memref<32x128xf32, #tpu.memory_space<vmem>>, vector<1x128xf32>
    %856 = vector.broadcast %855 : vector<1x128xf32> to vector<8x128xf32>
    %857 = arith.addf %854, %856 : vector<8x128xf32>
    %c0_326 = arith.constant 0 : index
    %c27_327 = arith.constant 27 : index
    %c0_328 = arith.constant 0 : index
    %c0_329 = arith.constant 0 : index
    %858 = vector.load %arg6[%c0_326, %c27_327, %c0_328, %c0_329] : memref<1x32x8x128xf32, #tpu.memory_space<vmem>>, vector<1x1x8x128xf32>
    %859 = vector.shape_cast %858 : vector<1x1x8x128xf32> to vector<8x128xf32>
    %860 = vector.shape_cast %857 : vector<8x128xf32> to vector<1x1x8x128xf32>
    tpu.vector_store %arg6[%c0_326, %c27_327, %c0_328, %c0_329], %860 {strides = array<i32>} : memref<1x32x8x128xf32, #tpu.memory_space<vmem>>, vector<1x1x8x128xf32>,
    %c93 = arith.constant 93 : index
    %861 = memref.load %arg4[%c93] : memref<96xf32, #tpu.memory_space<smem>>
    %862 = vector.broadcast %861 : f32 to vector<8x128xf32>
    %863 = arith.mulf %738, %862 : vector<8x128xf32>
    %c94 = arith.constant 94 : index
    %864 = memref.load %arg4[%c94] : memref<96xf32, #tpu.memory_space<smem>>
    %865 = vector.broadcast %864 : f32 to vector<8x128xf32>
    %866 = arith.mulf %739, %865 : vector<8x128xf32>
    %867 = arith.addf %863, %866 : vector<8x128xf32>
    %c95 = arith.constant 95 : index
    %868 = memref.load %arg4[%c95] : memref<96xf32, #tpu.memory_space<smem>>
    %869 = vector.broadcast %868 : f32 to vector<8x128xf32>
    %870 = arith.mulf %741, %869 : vector<8x128xf32>
    %871 = arith.addf %867, %870 : vector<8x128xf32>
    %c31_330 = arith.constant 31 : index
    %c0_331 = arith.constant 0 : index
    %872 = vector.load %arg5[%c31_330, %c0_331] : memref<32x128xf32, #tpu.memory_space<vmem>>, vector<1x128xf32>
    %873 = vector.broadcast %872 : vector<1x128xf32> to vector<8x128xf32>
    %874 = arith.addf %871, %873 : vector<8x128xf32>
    %c0_332 = arith.constant 0 : index
    %c31_333 = arith.constant 31 : index
    %c0_334 = arith.constant 0 : index
    %c0_335 = arith.constant 0 : index
    %875 = vector.load %arg6[%c0_332, %c31_333, %c0_334, %c0_335] : memref<1x32x8x128xf32, #tpu.memory_space<vmem>>, vector<1x1x8x128xf32>
    %876 = vector.shape_cast %875 : vector<1x1x8x128xf32> to vector<8x128xf32>
    %877 = vector.shape_cast %874 : vector<8x128xf32> to vector<1x1x8x128xf32>
    tpu.vector_store %arg6[%c0_332, %c31_333, %c0_334, %c0_335], %877 {strides = array<i32>} : memref<1x32x8x128xf32, #tpu.memory_space<vmem>>, vector<1x1x8x128xf32>,
    return
  }
  func.func @transform_0(%arg0: i32, %arg1: i32) -> (i32, i32, i32, i32) {
    %c0_i32 = arith.constant 0 : i32
    %c0_i32_0 = arith.constant 0 : i32
    %c0_i32_1 = arith.constant 0 : i32
    %c0_i32_2 = arith.constant 0 : i32
    return %arg0, %c0_i32, %c0_i32_0, %c0_i32_1 : i32, i32, i32, i32
  }
  func.func @transform_1(%arg0: i32, %arg1: i32) -> i32 {
    %c0_i32 = arith.constant 0 : i32
    %c0_i32_0 = arith.constant 0 : i32
    return %c0_i32 : i32
  }
  func.func @transform_2(%arg0: i32, %arg1: i32) -> i32 {
    %c0_i32 = arith.constant 0 : i32
    %c0_i32_0 = arith.constant 0 : i32
    return %c0_i32 : i32
  }
  func.func @transform_3(%arg0: i32, %arg1: i32) -> (i32, i32) {
    %c0_i32 = arith.constant 0 : i32
    %c0_i32_0 = arith.constant 0 : i32
    %c0_i32_1 = arith.constant 0 : i32
    return %c0_i32, %c0_i32_0 : i32, i32
  }
  func.func @transform_4(%arg0: i32, %arg1: i32) -> (i32, i32, i32, i32) {
    %c0_i32 = arith.constant 0 : i32
    %c0_i32_0 = arith.constant 0 : i32
    %c0_i32_1 = arith.constant 0 : i32
    return %arg0, %c0_i32, %arg1, %c0_i32_0 : i32, i32, i32, i32
  }
}

</mosaic_0001>

<bundles_post_ra>
// kernel: mul.0
= control target key start
LH: loop header
LB: loop body
LE: loop exit
PB: predicated region body
PF: predicated region fallthrough
CT: control target
= control target key end

     0   :  { %s34_s0 = inlined_call_operand.vmem [shape: f32[96], index: 0, kind: input, shape index: {}]   ;;  %s35_s1 = inlined_call_operand.vmem [shape: f32[96], index: 1, kind: input, shape index: {}]   ;;  %s36_s2 = inlined_call_operand.vmem [shape: f32[96], index: 2, kind: output, shape index: {}]  }
   0x1   :  { %v3_v0 = vld [vmem:[%s34_s0] sm:$0x1] }
   0x2   :  { %v4_v1 = vld [vmem:[%s35_s1] sm:$0x1] }
   0x3   :  { %v7_v2 = vmul.f32 %v4_v1, %v3_v0 }
   0x5   :  { %9 = vst [vmem:[%s36_s2] sm:$0x1] %v7_v2 }

// kernel: spatial_sep_conv_sf.1
= control target key start
LH: loop header
LB: loop body
LE: loop exit
PB: predicated region body
PF: predicated region fallthrough
CT: control target
= control target key end

     0   :  { %s3208_s0 = inlined_call_operand.vmem [shape: f32[2,2,9,1024], index: 0, kind: input, shape index: {}]   ;;  %s3209_s1 = inlined_call_operand.vmem [shape: f32[48], index: 1, kind: input, shape index: {}]   ;;  %s3210_s2 = inlined_call_operand.vmem [shape: f32[96], index: 2, kind: input, shape index: {}]   ;;  %s3211_s3 = inlined_call_operand.vmem [shape: f32[32,128], index: 3, kind: input, shape index: {}]   ;;  %s3212_s4 = inlined_call_operand.vmem [shape: f32[2,32,8,128], index: 4, kind: output, shape index: {}]  }
   0x1   :  { %3249 = sst [smem:[#allocation22_spill]] %s3208_s0 }
   0x2   :  { %3250 = sst [smem:[#allocation23_spill]] %s3209_s1 }
   0x3   :  { %3251 = sst [smem:[#allocation24_spill]] %s3210_s2 }
   0x4   :  { %3252 = sst [smem:[#allocation25_spill]] %s3211_s3 }
   0x5   :  { %3253 = sst [smem:[#allocation26_spill]] %s3212_s4 }
   0x6   :  { %9 = vsyncpa [#allocation3], 0 }
   0x7   :  { %10 = vsyncpa [#allocation5], 0  ;;  %s1966_s15 = smov 0   ;;  %s1968_s16 = smov 0  }
   0x8   :  { %s1970_s17 = smov 0  }
   0x9 LB: > { %3254 = sst [smem:[#allocation8_spill]] %s1932_s16  ;;  %s1576_s18 = sadd.s32 4294967295, %s1936_s17   ;;  %s1936_s17 = sphi %s1970_s17, %s16_s17   ;;  %s1932_s16 = sphi %s1968_s16, %s3309_s16   ;;  %s1928_s15 = sphi %s1966_s15, %s3308_s15  }
   0xa   : > { %3255 = sst [smem:[#allocation9_spill]] %s1936_s17  ;;  %s28_s19 = sadd.s32 1, %s1932_s16 }
   0xb   : > { %p30_p0 = scmp.ge.s32.totalorder %s28_s19, 2  ;;  %p1578_p1 = scmp.ge.s32.totalorder %s1936_s17, 1 }
   0xc   : > { %p150_p2 = scmp.lt.s32.totalorder %s1936_s17, 3  ;;  %p1991_p4 = scmp.eq.s32.totalorder %s1576_s18, 0 }
   0xd   : > { %s3311_s19 = smov (%p30_p0, %s28_s19), 0  ;;  %s3259_s1 = sld [smem:[#allocation23_spill]] }
   0xe   : > { %3256 = sst [smem:[#allocation10_spill]] %s3311_s19  ;;  %p1987_p3 = pnand %p1578_p1, %p150_p2 }
   0xf   : > { %s3258_s21 = scalar_select %p1991_p4, 1, 0 }
  0x10   : > { %s3257_s20 = scalar_select %p1987_p3, 1, 0 }
  0x11   : > { %p1838_p5 = pneg %p1987_p3  ;;  %s3260_s2 = sld [smem:[#allocation24_spill]] }
  0x13   : > { %s163_s24 = sshll.u32 %s3259_s1, 4  ;;  %p2005_p6 = pnand %p1991_p4, %p1838_p5  ;;  %s164_s24 = int_to_ptr.vmem [resolvable:$true] %s163_s24 }
  0x14   : > { %s1876_s29 = scalar_lea.vmem %s164_s24, 16  ;;  %p1884_p11 = scmp.lt.s32.totalorder %s164_s24, %s164_s24 }
  0x15   : > { %p1877_p7 = scmp.ne.s32.totalorder %s164_s24, %s1876_s29  ;;  %p1878_p8 = pneg %p2005_p6 }
  0x16   : > { %p1885_p12 = scmp.lt.s32.totalorder %s1876_s29, %s1876_s29 }
  0x17   : > { %s174_s27 = sshll.u32 %s3260_s2, 4  ;;  %p1879_p9 = pnand %p1878_p8, %p1877_p7  ;;  %s175_s27 = int_to_ptr.vmem [resolvable:$true] %s174_s27 }
  0x18   : > { %p1886_p13 = por %p1885_p12, %p1884_p11 }
  0x19   : > { %p1880_p10 = pneg %p1879_p9 }
  0x1b   : > { %p1887_p0 = pnand %p1886_p13, %p1880_p10 }
  0x1d   : > { %1890 = shalt.err (!%p1887_p0)
}
  0x1e   : > { %s1938_s30 = smov [#allocation2]   ;;  %s1891_s5 = scalar_lea.vmem %s175_s27, 16 }
  0x1f   : > { %1841 = dma.vmem_to_smem (!%p2005_p6), %s164_s24, 16, %s1938_s30, [#allocation3]  }
  0x20   : > { %p1892_p1 = scmp.ne.s32.totalorder %s175_s27, %s1891_s5  ;;  %p1899_p4 = scmp.lt.s32.totalorder %s175_s27, %s175_s27 }
  0x21   : > { %p1900_p3 = scmp.lt.s32.totalorder %s1891_s5, %s1891_s5 }
  0x22   : > { %p1894_p2 = pnand %p1892_p1, %p1878_p8 }
  0x23   : > { %p1901_p7 = por %p1900_p3, %p1899_p4 }
  0x24   : > { %p1895_p5 = pneg %p1894_p2 }
  0x26   : > { %p1902_p9 = pnand %p1901_p7, %p1895_p5 }
  0x28   : > { %1905 = shalt.err (!%p1902_p9)
}
  0x29   : > { %s1939_s6 = smov [#allocation4]   ;;  %p3262_p10 = scmp.ne.s32.totalorder %s3257_s20, 0 }
  0x2a   : > { %1844 = dma.vmem_to_smem (!%p2005_p6), %s175_s27, 16, %s1939_s6, [#allocation5]  }
  0x2b   : > { %198 = sbr.rel (%p3262_p10) target bundleno = 261 (0x105), region = 36 }
  0x30   : > { %p3263_p11 = scmp.ne.s32.totalorder %s3258_s21, 0 }
  0x32   : > { %1919 = dma.done.wait (%p3263_p11), [#allocation3], 16  }
  0x33   : > { %1921 = vsyncadd (%p3263_p11), [#allocation3], 4294967280 }
  0x34   : > { %1923 = dma.done.wait (%p3263_p11), [#allocation5], 16  }
  0x35   : > { %1925 = vsyncadd (%p3263_p11), [#allocation5], 4294967280 }
  0x36   : > { %208 = sfence }
  0x37   : > { %p232_p3 = scmp.lt.s32.totalorder %s1928_s15, 1  ;;  %s2026_s7 = sld [smem:[#allocation2 + $0x2]]  ;;  %vm269_vm0 = vcmask 1046528  }
  0x38   : > { %s1707_s8 = sld [smem:[#allocation2 + $0x22]]  ;;  %s3220_s17 = smov 127  }
  0x39   : > { %s3313_s15 = smov (!%p232_p3, %s1928_s15), 1  ;;  %s2032_s10 = sld [smem:[#allocation2 + $0x12]] }
  0x3a   : > { %3264 = sst [smem:[#allocation11_spill]] %s3313_s15  ;;  %s3216_s9 = sshll.u32 %s3313_s15, 8 }
  0x3b   : > { %s3265_s0 = sld [smem:[#allocation22_spill]] }
  0x3c   : > { %s2041_s14 = sld [smem:[#allocation2 + $0x6]] }
  0x3d   : > { %s1712_s18 = sld [smem:[#allocation2 + $0x26]]  ;;  %v3247_v2 = vstv %s2026_s7 }
  0x3e   : > { %s2047_s20 = sld [smem:[#allocation2 + $0x16]]  ;;  %v2052_v3 = vstv %s1707_s8 }
  0x3f   : > { %s2050_s21 = sld [smem:[#allocation2 + $0xa]]  ;;  %v3243_v7 = vstv %s2032_s10 }
  0x40   : > { %s2054_s22 = sld [smem:[#allocation2 + $0x2a]] }
  0x41   : > { %s2039_s13 = scalar_lea.vmem %s3265_s0, %s3216_s9  ;;  %s2067_s23 = sld [smem:[#allocation2 + $0x1a]] }
  0x42   : > { %v2044_v0 = vld [vmem:[%s2039_s13] sm:$0xff]  ;;  %v2064_v8 = vld [vmem:[%s2039_s13 + $0x10] sm:$0xff]  ;;  %s2072_s24 = sld [smem:[#allocation2 + $0xe]]  ;;  %v3242_v13 = vstv %s2041_s14 }
  0x43   : > { %v864_v1 = vld [vmem:[%s2039_s13 + $0x40] sm:$0x1]  ;;  %v872_v4 = vmul.f32 %v2052_v3, %v2044_v0  ;;  %v900_v9 = vld [vmem:[%s2039_s13 + $0x50] sm:$0x1]  ;;  %v868_v10 = vmul.f32 %v3247_v2, %v2044_v0  ;;  %v2075_v14 = vstv %s1712_s18  ;;  %s1722_s25 = sld [smem:[#allocation2 + $0x2e]]  ;;  %v904_v22 = vmul.f32 %v3242_v13, %v2064_v8 }
  0x44   : > { %v874_v5 = vmul.f32 %v2052_v3, %v864_v1  ;;  %v2060_v6 = vld [vmem:[%s2039_s13 + $0x80] sm:$0xff]  ;;  %v910_v16 = vmul.f32 %v2075_v14, %v2064_v8  ;;  %v912_v17 = vmul.f32 %v2075_v14, %v900_v9  ;;  %s2083_s26 = sld [smem:[#allocation2 + $0x1e]]  ;;  %v2098_v25 = vld [vmem:[%s2039_s13 + $0x90] sm:$0xff]  ;;  %v3241_v26 = vstv %s2047_s20 }
  0x45   : > { %v880_v11 = vrot.slane %v872_v4, 1  ;;  %v894_v15 = vmul.f32 %v2060_v6, %v3243_v7  ;;  %v2087_v19 = vld [vmem:[%s2039_s13 + $0x20] sm:$0xff]  ;;  %s2090_s27 = sld [smem:[#allocation2]]  ;;  %v3240_v27 = vstv %s2050_s21  ;;  %v2115_v34 = vld [vmem:[%s2039_s13 + $0x30] sm:$0xff]  ;;  %v932_v40 = vmul.f32 %v2098_v25, %v3241_v26  ;;  %v370_v7 = vld [vmem:[%s2039_s13 + $0x78] sm:$0x1] }
  0x46   : > { %v881_v12 = vrot.slane %v874_v5, 1  ;;  %v938_v20 = vld [vmem:[%s2039_s13 + $0x60] sm:$0x1]  ;;  %v918_v23 = vrot.slane %v910_v16, 1  ;;  %v919_v24 = vrot.slane %v912_v17, 1  ;;  %s2095_s28 = sld [smem:[#allocation2 + $0x20]]  ;;  %v2103_v28 = vstv %s2054_s22 }
  0x47   : > { %s2105_s29 = sld [smem:[#allocation2 + $0x10]]  ;;  %v948_v30 = vmul.f32 %v2103_v28, %v2087_v19  ;;  %v950_v31 = vmul.f32 %v2103_v28, %v938_v20  ;;  %v2111_v32 = vld [vmem:[%s2039_s13 + $0xa0] sm:$0xff]  ;;  %v3238_v33 = vstv %s2067_s23  ;;  %v976_v35 = vld [vmem:[%s2039_s13 + $0x70] sm:$0x1]  ;;  %v942_v43 = vmul.f32 %v3240_v27, %v2087_v19 }
  0x48   : > { %3266 = sst [smem:[#allocation12_spill]] %s2072_s24  ;;  %v882_v18 = vsel %vm269_vm0, %v880_v11, %v881_v12  ;;  %v920_v36 = vsel %vm269_vm0, %v918_v23, %v919_v24  ;;  %v3236_v37 = vstv %s2072_s24  ;;  %v970_v44 = vmul.f32 %v2111_v32, %v3238_v33  ;;  %v253_v47 = vld [vmem:[%s2039_s13 + $0x40] sm:$0x1]  ;;  %v2147_v50 = vld [vmem:[%s2039_s13 + $0xb0] sm:$0xff] }
  0x49   : > { %v888_v21 = vadd.f32 %v882_v18, %v868_v10  ;;  %s2118_s30 = sld [smem:[#allocation2 + $0x4]]  ;;  %v2122_v38 = vstv %s1722_s25  ;;  %v956_v41 = vrot.slane %v948_v30, 1  ;;  %v957_v42 = vrot.slane %v950_v31, 1  ;;  %v293_v61 = vld [vmem:[%s2039_s13 + $0x50] sm:$0x1] }
  0x4a   : > { %3267 = sst [smem:[#allocation13_spill]] %s2083_s26  ;;  %v986_v45 = vmul.f32 %v2122_v38, %v2115_v34  ;;  %v988_v46 = vmul.f32 %v2122_v38, %v976_v35  ;;  %v980_v49 = vmul.f32 %v3236_v37, %v2115_v34  ;;  %v3233_v51 = vstv %s2083_s26  ;;  %v331_v18 = vld [vmem:[%s2039_s13 + $0x60] sm:$0x1] }
  0x4b   : > { %v896_v29 = vadd.f32 %v894_v15, %v888_v21  ;;  %s2124_s5 = sld [smem:[#allocation2 + $0x24]]  ;;  %v256_v52 = vstv %s2090_s27  ;;  %v958_v58 = vsel %vm269_vm0, %v956_v41, %v957_v42  ;;  %v1008_v62 = vmul.f32 %v2147_v50, %v3233_v51 }
  0x4c   : > { %s2129_s6 = sld [smem:[#allocation2 + $0x14]]  ;;  %v994_v53 = vrot.slane %v986_v45, 1  ;;  %v995_v54 = vrot.slane %v988_v46, 1  ;;  %v2154_v55 = vstv %s2095_s28  ;;  %v257_v63 = vmul.f32 %v2044_v0, %v256_v52  ;;  %v369_v45 = vld [vmem:[%s2039_s13 + $0x70] sm:$0x1] }
  0x4d   : > { %v906_v39 = vadd.f32 %v904_v22, %v896_v29  ;;  %s2141_s8 = sld [smem:[#allocation2 + $0x8]]  ;;  %v286_v56 = vstv %s2105_s29  ;;  %v261_v59 = vmul.f32 %v2044_v0, %v2154_v55  ;;  %v263_v60 = vmul.f32 %v2154_v55, %v253_v47 }
  0x4e   : > { %s2151_s11 = sld [smem:[#allocation2 + $0x28]]  ;;  %v287_v11 = vmul.f32 %v2060_v6, %v286_v56  ;;  %v996_v12 = vsel %vm269_vm0, %v994_v53, %v995_v54 }
  0x4f   : > { %v926_v48 = vadd.f32 %v920_v36, %v906_v39  ;;  %s2157_s12 = sld [smem:[#allocation2 + $0x18]]  ;;  %v296_v1 = vstv %s2118_s30  ;;  %v270_v9 = vrot.slane %v261_v59, 1  ;;  %v271_v10 = vrot.slane %v263_v60, 1 }
  0x50   : > { %s2164_s18 = sld [smem:[#allocation2 + $0xc]]  ;;  %v297_v15 = vmul.f32 %v2064_v8, %v296_v1 }
  0x51   : > { %v934_v57 = vadd.f32 %v932_v40, %v926_v48  ;;  %v2174_v4 = vstv %s2124_s5  ;;  %s2176_s22 = sld [smem:[#allocation2 + $0x2c]]  ;;  %v272_v21 = vsel %vm269_vm0, %v270_v9, %v271_v10 }
  0x52   : > { %s2181_s25 = sld [smem:[#allocation2 + $0x1c]]  ;;  %v303_v16 = vmul.f32 %v2064_v8, %v2174_v4  ;;  %v305_v17 = vmul.f32 %v2174_v4, %v293_v61  ;;  %v324_v22 = vstv %s2129_s6  ;;  %v278_v24 = vadd.f32 %v272_v21, %v257_v63 }
  0x53   : > { %v944_v5 = vadd.f32 %v942_v43, %v934_v57  ;;  %s2191_s28 = sld [smem:[#allocation2 + $0x3]]  ;;  %v334_v23 = vstv %s2141_s8  ;;  %v325_v42 = vmul.f32 %v2098_v25, %v324_v22 }
  0x54   : > { %s2196_s5 = sld [smem:[#allocation2 + $0x23]]  ;;  %v311_v29 = vrot.slane %v303_v16, 1  ;;  %v312_v30 = vrot.slane %v305_v17, 1  ;;  %v2199_v31 = vstv %s2151_s11  ;;  %v289_v41 = vadd.f32 %v287_v11, %v278_v24 }
  0x55   : > { %v964_v20 = vadd.f32 %v958_v58, %v944_v5  ;;  %s2201_s9 = sld [smem:[#allocation2 + $0x13]]  ;;  %v341_v36 = vmul.f32 %v2087_v19, %v2199_v31  ;;  %v343_v39 = vmul.f32 %v2199_v31, %v331_v18  ;;  %v362_v40 = vstv %s2157_s12  ;;  %v1168_v5 = vld [vmem:[%s2039_s13 + $0x40] sm:$0x1] }
  0x56   : > { %s2207_s0 = sld [smem:[#allocation2 + $0x7]]  ;;  %v335_v43 = vmul.f32 %v2087_v19, %v334_v23  ;;  %v313_v47 = vsel %vm269_vm0, %v311_v29, %v312_v30  ;;  %v299_v54 = vadd.f32 %v297_v15, %v289_v41  ;;  %v363_v57 = vmul.f32 %v2111_v32, %v362_v40 }
  0x57   : > { %v972_v35 = vadd.f32 %v970_v44, %v964_v20  ;;  %v372_v44 = vstv %s2164_s18  ;;  %s2217_s11 = sld [smem:[#allocation2 + $0x27]]  ;;  %v349_v48 = vrot.slane %v341_v36, 1  ;;  %v350_v53 = vrot.slane %v343_v39, 1 }
  0x58   : > { %s2220_s1 = sld [smem:[#allocation2 + $0x17]]  ;;  %v2228_v58 = vmul.f32 %v2115_v34, %v372_v44  ;;  %v2231_v59 = vstv %s2176_s22  ;;  %v400_v63 = vstv %s2181_s25  ;;  %v319_v9 = vadd.f32 %v313_v47, %v299_v54  ;;  %v1242_v54 = vld [vmem:[%s2039_s13 + $0x60] sm:$0x1] }
  0x59   : > { %v982_v46 = vadd.f32 %v980_v49, %v972_v35  ;;  %s2233_s2 = sld [smem:[#allocation2 + $0xb]]  ;;  %v379_v60 = vmul.f32 %v2115_v34, %v2231_v59  ;;  %v381_v61 = vmul.f32 %v2231_v59, %v369_v45  ;;  %v351_v10 = vsel %vm269_vm0, %v349_v48, %v350_v53 }
  0x5a   : > { %s2240_s19 = sld [smem:[#allocation2 + $0x2b]]  ;;  %v3239_v11 = vstv %s2191_s28  ;;  %v2245_v15 = vstv %s2196_s5  ;;  %v327_v20 = vadd.f32 %v325_v42, %v319_v9  ;;  %v2258_v21 = vmul.f32 %v2147_v50, %v400_v63 }
  0x5b   : > { %3268 = sst [smem:[#allocation14_spill]] %s2201_s9  ;;  %v1002_v49 = vadd.f32 %v996_v12, %v982_v46  ;;  %v387_v16 = vrot.slane %v379_v60, 1  ;;  %v388_v17 = vrot.slane %v381_v61, 1  ;;  %v1176_v18 = vmul.f32 %v2245_v15, %v2044_v0 }
  0x5c   : > { %3269 = sst [smem:[#allocation15_spill]] %s2207_s0  ;;  %v1178_v24 = vmul.f32 %v2245_v15, %v1168_v5  ;;  %v3237_v29 = vstv %s2201_s9  ;;  %v1172_v35 = vmul.f32 %v3239_v11, %v2044_v0  ;;  %v3235_v39 = vstv %s2207_s0  ;;  %v672_v11 = vld [vmem:[%s2039_s13 + $0x70] sm:$0x1] }
  0x5d   : > { %s2247_s22 = sld [smem:[#allocation2 + $0x1b]]  ;;  %v2249_v12 = vadd.f32 %v1008_v62, %v1002_v49  ;;  %v1204_v62 = vld [vmem:[%s2039_s13 + $0x50] sm:$0x1]  ;;  %v389_v30 = vsel %vm269_vm0, %v387_v16, %v388_v17  ;;  %v1184_v36 = vrot.slane %v1176_v18, 1  ;;  %v337_v41 = vadd.f32 %v335_v43, %v327_v20 }
  0x5e   : > { %3270 = sst [smem:[#allocation16_spill]] %s2220_s1  ;;  %v1185_v42 = vrot.slane %v1178_v24, 1  ;;  %v1198_v45 = vmul.f32 %v2060_v6, %v3237_v29  ;;  %v2278_v46 = vstv %s2217_s11  ;;  %v3234_v53 = vstv %s2220_s1 }
  0x5f   : > { %3271 = sst [smem:[#allocation17_spill]] %s2233_s2  ;;  %1012 = vrot.lane.b32.xlu1 %v2249_v12, %s3220_s17  ;;  %v1214_v47 = vmul.f32 %v2278_v46, %v2064_v8  ;;  %v1216_v48 = vmul.f32 %v2278_v46, %v1204_v62  ;;  %v3226_v49 = vstv %s2233_s2  ;;  %v357_v43 = vadd.f32 %v351_v10, %v337_v41 }
  0x60   : > { %s2253_s16 = sld [smem:[#allocation2 + $0xf]]  ;;  %v1186_v60 = vsel %vm269_vm0, %v1184_v36, %v1185_v42  ;;  %v1208_v61 = vmul.f32 %v3235_v39, %v2064_v8  ;;  %v2295_v5 = vstv %s2240_s19  ;;  %v1236_v20 = vmul.f32 %v2098_v25, %v3234_v53  ;;  %v1280_v36 = vld [vmem:[%s2039_s13 + $0x70] sm:$0x1]  ;;  %v634_v53 = vld [vmem:[%s2039_s13 + $0x60] sm:$0x1] }
  0x61   : > { %s2263_s5 = sld [smem:[#allocation2 + $0x2f]]  ;;  %v1192_v9 = vadd.f32 %v1186_v60, %v1172_v35  ;;  %v1222_v16 = vrot.slane %v1214_v47, 1  ;;  %v1223_v17 = vrot.slane %v1216_v48, 1  ;;  %v1252_v18 = vmul.f32 %v2295_v5, %v2087_v19 }
  0x62   : > { %s2272_s4 = sld [smem:[#allocation2 + $0x1f]]  ;;  %v365_v10 = vadd.f32 %v363_v57, %v357_v43  ;;  %v1246_v24 = vmul.f32 %v3226_v49, %v2087_v19  ;;  %v1254_v62 = vmul.f32 %v2295_v5, %v1242_v54 }
  0x63   : > { %3272 = sst [smem:[#allocation18_spill]] %s2247_s22  ;;  %v1200_v35 = vadd.f32 %v1198_v45, %v1192_v9  ;;  %v1260_v41 = vrot.slane %v1252_v18, 1  ;;  %v3232_v42 = vstv %s2247_s22  ;;  %v1224_v48 = vsel %vm269_vm0, %v1222_v16, %v1223_v17 }
  0x64   : > { %s2280_s15 = sld [smem:[#allocation2 + $0x1]]  ;;  %v375_v57 = vadd.f32 %v2228_v58, %v365_v10  ;;  %v1261_v43 = vrot.slane %v1254_v62, 1  ;;  %v1274_v17 = vmul.f32 %v2111_v32, %v3232_v42  ;;  %v560_v10 = vld [vmem:[%s2039_s13 + $0x40] sm:$0x1] }
  0x65   : > { %s2288_s17 = sld [smem:[#allocation2 + $0x21]]  ;;  %v1210_v54 = vadd.f32 %v1208_v61, %v1200_v35 }
  0x66   : > { %3273 = sst [smem:[#allocation19_spill]] %s2253_s16  ;;  %v3231_v47 = vstv %s2253_s16  ;;  %v395_v58 = vadd.f32 %v389_v30, %v375_v57  ;;  %v1262_v16 = vsel %vm269_vm0, %v1260_v41, %v1261_v43 }
  0x67   : > { %s2297_s11 = sld [smem:[#allocation2 + $0x11]]  ;;  %v2320_v60 = vstv %s2263_s5  ;;  %v1284_v61 = vmul.f32 %v3231_v47, %v2115_v34  ;;  %v1230_v62 = vadd.f32 %v1224_v48, %v1210_v54 }
  0x68   : > { %3274 = sst [smem:[#allocation20_spill]] %s2272_s4  ;;  %v1290_v45 = vmul.f32 %v2320_v60, %v2115_v34  ;;  %v1292_v9 = vmul.f32 %v2320_v60, %v1280_v36  ;;  %v3230_v18 = vstv %s2272_s4  ;;  %v2344_v30 = vadd.f32 %v2258_v21, %v395_v58  ;;  %v596_v21 = vld [vmem:[%s2039_s13 + $0x50] sm:$0x1]  ;;  %s3275_s4 = smov 127  }
  0x69   : > { %s2301_s3 = sld [smem:[#allocation2 + $0x5]]  ;;  %v2349_v41 = vmul.f32 %v2147_v50, %v3230_v18  ;;  %v1238_v48 = vadd.f32 %v1236_v20, %v1230_v62 }
  0x6a   : > { %s2311_s19 = sld [smem:[#allocation2 + $0x25]]  ;;  %v1298_v36 = vrot.slane %v1290_v45, 1  ;;  %v1299_v35 = vrot.slane %v1292_v9, 1  ;;  %v563_v49 = vstv %s2280_s15  ;;  %405 = vrot.lane.b32.xlu0 %v2344_v30, %s3275_s4 }
  0x6b   : > { %s2315_s26 = sld [smem:[#allocation2 + $0x15]]  ;;  %v2352_v57 = vstv %s2288_s17  ;;  %v564_v18 = vmul.f32 %v2044_v0, %v563_v49  ;;  %v1248_v47 = vadd.f32 %v1246_v24, %v1238_v48 }
  0x6c   : > { %s2322_s2 = sld [smem:[#allocation2 + $0x9]]  ;;  %v568_v54 = vmul.f32 %v2044_v0, %v2352_v57  ;;  %v570_v45 = vmul.f32 %v2352_v57, %v560_v10  ;;  %v1300_v58 = vsel %vm269_vm0, %v1298_v36, %v1299_v35 }
  0x6d   : > { %s2328_s1 = sld [smem:[#allocation2 + $0x29]]  ;;  %v589_v43 = vstv %s2297_s11  ;;  %v1268_v35 = vadd.f32 %v1262_v16, %v1248_v47 }
  0x6e   : > { %s2338_s5 = sld [smem:[#allocation2 + $0x19]]  ;;  %v590_v20 = vmul.f32 %v2060_v6, %v589_v43  ;;  %v576_v10 = vrot.slane %v568_v54, 1  ;;  %v577_v42 = vrot.slane %v570_v45, 1 }
  0x6f   : > { %s2341_s0 = sld [smem:[#allocation2 + $0xd]]  ;;  %v599_v9 = vstv %s2301_s3 }
  0x70   : > { %s2355_s16 = sld [smem:[#allocation2 + $0x2d]]  ;;  %v2372_v62 = vstv %s2311_s19  ;;  %v600_v0 = vmul.f32 %v2064_v8, %v599_v9  ;;  %v578_v48 = vsel %vm269_vm0, %v576_v10, %v577_v42 }
  0x71   : > { %v606_v51 = vmul.f32 %v2064_v8, %v2372_v62  ;;  %s2377_s17 = sld [smem:[#allocation2 + $0x1d]]  ;;  %v608_v6 = vmul.f32 %v2372_v62, %v596_v21  ;;  %v627_v36 = vstv %s2315_s26  ;;  %v584_v39 = vadd.f32 %v578_v48, %v564_v18  ;;  %v2410_v48 = vld [vmem:[%s2039_s13 + $0x8] sm:$0xff] }
  0x72   : > { %v637_v45 = vstv %s2322_s2  ;;  %v1276_v21 = vadd.f32 %v1274_v17, %v1268_v35  ;;  %v628_v18 = vmul.f32 %v2098_v25, %v627_v36  ;;  %s2450_s19 = sld [smem:[#allocation4 + $0x3]] }
  0x73   : > { %v2385_v24 = vstv %s2328_s1  ;;  %v614_v54 = vrot.slane %v606_v51, 1  ;;  %v615_v37 = vrot.slane %v608_v6, 1  ;;  %v592_v51 = vadd.f32 %v590_v20, %v584_v39  ;;  %v254_v39 = vld [vmem:[%s2039_s13 + $0x48] sm:$0x1]  ;;  %s2430_s1 = sld [smem:[#allocation4]] }
  0x74   : > { %v644_v29 = vmul.f32 %v2087_v19, %v2385_v24  ;;  %v646_v8 = vmul.f32 %v2385_v24, %v634_v53  ;;  %v665_v33 = vstv %s2338_s5  ;;  %v1286_v6 = vadd.f32 %v1284_v61, %v1276_v21  ;;  %v2428_v61 = vld [vmem:[%s2039_s13 + $0x18] sm:$0xff]  ;;  %s2467_s27 = sld [smem:[#allocation4 + $0x4]] }
  0x75   : > { %v675_v47 = vstv %s2341_s0  ;;  %v616_v53 = vsel %vm269_vm0, %v614_v54, %v615_v37  ;;  %v638_v17 = vmul.f32 %v2087_v19, %v637_v45  ;;  %v602_v20 = vadd.f32 %v600_v0, %v592_v51  ;;  %v2425_v19 = vld [vmem:[%s2039_s13 + $0x88] sm:$0xff]  ;;  %s2473_s29 = sld [smem:[#allocation4 + $0x6]] }
  0x76   : > { %v2396_v42 = vstv %s2355_s16  ;;  %v652_v16 = vrot.slane %v644_v29, 1  ;;  %v653_v10 = vrot.slane %v646_v8, 1  ;;  %v666_v25 = vmul.f32 %v2111_v32, %v665_v33  ;;  %v294_v8 = vld [vmem:[%s2039_s13 + $0x58] sm:$0x1]  ;;  %s2438_s16 = sld [smem:[#allocation4 + $0x1]] }
  0x77   : > { %v2407_v35 = vmul.f32 %v2115_v34, %v2396_v42  ;;  %v2419_v29 = vmul.f32 %v2115_v34, %v675_v47  ;;  %v2422_v37 = vmul.f32 %v2396_v42, %v672_v11  ;;  %v1306_v0 = vadd.f32 %v1300_v58, %v1286_v6  ;;  %v2445_v6 = vld [vmem:[%s2039_s13 + $0x98] sm:$0xff]  ;;  %s2484_s30 = sld [smem:[#allocation4 + $0x7]] }
  0x78   : > { %v654_v32 = vsel %vm269_vm0, %v652_v16, %v653_v10  ;;  %v703_v54 = vstv %s2377_s17  ;;  %v258_v34 = vmul.f32 %v256_v52, %v2410_v48  ;;  %v622_v11 = vadd.f32 %v616_v53, %v602_v20  ;;  %v2448_v16 = vld [vmem:[%s2039_s13 + $0x28] sm:$0xff]  ;;  %s2494_s6 = sld [smem:[#allocation4 + $0x9]] }
  0x79   : > { %v690_v21 = vrot.slane %v2407_v35, 1  ;;  %v262_v51 = vmul.f32 %v2154_v55, %v2410_v48  ;;  %v264_v58 = vmul.f32 %v2154_v55, %v254_v39  ;;  %v2453_v52 = vadd.f32 %v2349_v41, %v1306_v0  ;;  %v332_v35 = vld [vmem:[%s2039_s13 + $0x68] sm:$0x1]  ;;  %s2504_s8 = sld [smem:[#allocation4 + $0xa]] }
  0x7a   : > { %v288_v10 = vmul.f32 %v2425_v19, %v286_v56  ;;  %v298_v53 = vmul.f32 %v296_v1, %v2428_v61  ;;  %v304_v55 = vmul.f32 %v2174_v4, %v2428_v61  ;;  %v2465_v39 = vld [vmem:[%s2039_s13 + $0xa8] sm:$0xff]  ;;  %v630_v20 = vadd.f32 %v628_v18, %v622_v11  ;;  %v2471_v56 = vld [vmem:[%s2039_s13 + $0x38] sm:$0xff]  ;;  %s2508_s22 = sld [smem:[#allocation4 + $0xc]] }
  0x7b   : > { %v691_v41 = vrot.slane %v2422_v37, 1  ;;  %v273_v0 = vrot.slane %v262_v51, 1  ;;  %v274_v27 = vrot.slane %v264_v58, 1  ;;  %1316 = vrot.lane.b32.xlu1 %v2453_v52, %s3275_s4  ;;  %v306_v1 = vmul.f32 %v2174_v4, %v294_v8  ;;  %v2492_v4 = vld [vmem:[%s2039_s13 + $0xb8] sm:$0xff]  ;;  %s2517_s12 = sld [smem:[#allocation4 + $0xd]] }
  0x7c   : > { %v314_v26 = vrot.slane %v304_v55, 1  ;;  %v326_v18 = vmul.f32 %v2445_v6, %v324_v22  ;;  %v336_v37 = vmul.f32 %v334_v23, %v2448_v16  ;;  %v640_v11 = vadd.f32 %v638_v17, %v630_v20  ;;  %s2520_s18 = sld [smem:[#allocation4 + $0xf]] }
  0x7d   : > { %v275_v51 = vsel %vm269_vm0, %v273_v0, %v274_v27  ;;  %v342_v58 = vmul.f32 %v2199_v31, %v2448_v16  ;;  %v344_v13 = vmul.f32 %v2199_v31, %v332_v35  ;;  %v315_v8 = vrot.slane %v306_v1, 1  ;;  %s2523_s24 = sld [smem:[#allocation4 + $0x10]] }
  0x7e   : > { %v279_v22 = vadd.f32 %v275_v51, %v258_v34  ;;  %v364_v23 = vmul.f32 %v2465_v39, %v362_v40  ;;  %v2502_v17 = vmul.f32 %v372_v44, %v2471_v56  ;;  %v660_v27 = vadd.f32 %v654_v32, %v640_v11  ;;  %s2530_s25 = sld [smem:[#allocation4 + $0x12]] }
  0x7f   : > { %v352_v55 = vrot.slane %v342_v58, 1  ;;  %v353_v31 = vrot.slane %v344_v13, 1  ;;  %v380_v35 = vmul.f32 %v2231_v59, %v2471_v56  ;;  %v316_v20 = vsel %vm269_vm0, %v314_v26, %v315_v8  ;;  %s2535_s9 = sld [smem:[#allocation4 + $0x13]] }
  0x80   : > { %v290_v34 = vadd.f32 %v288_v10, %v279_v22  ;;  %v382_v40 = vmul.f32 %v2231_v59, %v370_v7  ;;  %v2515_v44 = vmul.f32 %v2492_v4, %v400_v63  ;;  %v668_v13 = vadd.f32 %v666_v25, %v660_v27  ;;  %s2614_s2 = sld [smem:[#allocation4 + $0x18]] }
  0x81   : > { %v354_v32 = vsel %vm269_vm0, %v352_v55, %v353_v31  ;;  %v390_v0 = vrot.slane %v380_v35, 1  ;;  %v692_v10 = vsel %vm269_vm0, %v690_v21, %v691_v41  ;;  %v704_v59 = vmul.f32 %v2147_v50, %v703_v54  ;;  %s2620_s3 = sld [smem:[#allocation4 + $0x19]] }
  0x82   : > { %v300_v26 = vadd.f32 %v298_v53, %v290_v34  ;;  %v391_v1 = vrot.slane %v382_v40, 1  ;;  %v678_v7 = vadd.f32 %v2419_v29, %v668_v13  ;;  %v408_v63 = vstv %s2430_s1  ;;  %s2541_s1 = sld [smem:[#allocation4 + $0x15]]  ;;  %v561_v34 = vld [vmem:[%s2039_s13 + $0x48] sm:$0x1] }
  0x83   : > { %v426_v53 = vstv %s2450_s19  ;;  %v445_v41 = vstv %s2473_s29  ;;  %v2538_v51 = vmul.f32 %v408_v63, %v2344_v30  ;;  %v464_v50 = vstv %s2494_s6  ;;  %s2628_s0 = sld [smem:[#allocation4 + $0x1b]] }
  0x84   : > { %v320_v25 = vadd.f32 %v316_v20, %v300_v26  ;;  %v392_v11 = vsel %vm269_vm0, %v390_v0, %v391_v1  ;;  %v698_v21 = vadd.f32 %v692_v10, %v678_v7  ;;  %v411_v22 = vstv %s2438_s16  ;;  %s2632_s15 = sld [smem:[#allocation4 + $0x1e]] }
  0x85   : > { %v429_v8 = vstv %s2467_s27  ;;  %v483_v27 = vstv %s2508_s22  ;;  %v2549_v31 = vmul.f32 %v426_v53, %v2344_v30  ;;  %v448_v35 = vstv %s2484_s30  ;;  %s2563_s22 = sld [smem:[#allocation4 + $0x16]] }
  0x86   : > { %v328_v29 = vadd.f32 %v326_v18, %v320_v25  ;;  %v2543_v58 = vadd.f32 %v704_v59, %v698_v21  ;;  %v2552_v18 = vmul.f32 %v445_v41, %v2344_v30  ;;  %v2559_v20 = vmul.f32 %v464_v50, %v2344_v30  ;;  %v597_v21 = vld [vmem:[%s2039_s13 + $0x58] sm:$0x1]  ;;  %s2659_s26 = sld [smem:[#allocation4 + $0x22]] }
  0x87   : > { %v467_v40 = vstv %s2504_s8  ;;  %v565_v13 = vmul.f32 %v563_v49, %v2410_v48  ;;  %v484_v10 = vmul.f32 %v483_v27, %v2344_v30  ;;  %v486_v26 = vstv %s2517_s12  ;;  %s2661_s11 = sld [smem:[#allocation4 + $0x24]] }
  0x88   : > { %v338_v55 = vadd.f32 %v336_v37, %v328_v29  ;;  %708 = vrot.lane.b32.xlu0 %v2543_v58, %s3275_s4  ;;  %v502_v37 = vstv %s2520_s18  ;;  %v521_v1 = vstv %s2530_s25  ;;  %v505_v59 = vstv %s2523_s24  ;;  %s2630_s4 = sld [smem:[#allocation4 + $0x1c]] }
  0x89   : > { %v503_v7 = vmul.f32 %v502_v37, %v2344_v30  ;;  %v569_v63 = vmul.f32 %v2352_v57, %v2410_v48  ;;  %v571_v25 = vmul.f32 %v2352_v57, %v561_v34  ;;  %v540_v41 = vstv %s2541_s1  ;;  %v635_v37 = vld [vmem:[%s2039_s13 + $0x68] sm:$0x1]  ;;  %s2656_s24 = sld [smem:[#allocation4 + $0x21]] }
  0x8a   : > { %v358_v0 = vadd.f32 %v354_v32, %v338_v55  ;;  %v591_v49 = vmul.f32 %v2425_v19, %v589_v43  ;;  %v601_v32 = vmul.f32 %v599_v9, %v2428_v61  ;;  %v522_v29 = vmul.f32 %v521_v1, %v2344_v30  ;;  %s2664_s5 = sld [smem:[#allocation4 + $0x25]] }
  0x8b   : > { %v524_v50 = vstv %s2535_s9  ;;  %v579_v27 = vrot.slane %v569_v63, 1  ;;  %v580_v55 = vrot.slane %v571_v25, 1  ;;  %v541_v34 = vmul.f32 %v540_v41, %v2344_v30  ;;  %v673_v41 = vld [vmem:[%s2039_s13 + $0x78] sm:$0x1]  ;;  %s2646_s9 = sld [smem:[#allocation4 + $0x1f]] }
  0x8c   : > { %v366_v53 = vadd.f32 %v364_v23, %v358_v0  ;;  %v607_v23 = vmul.f32 %v2372_v62, %v2428_v61  ;;  %v609_v43 = vmul.f32 %v2372_v62, %v597_v21  ;;  %v629_v0 = vmul.f32 %v2445_v6, %v627_v36  ;;  %s2666_s17 = sld [smem:[#allocation4 + $0x27]] }
  0x8d   : > { %v581_v9 = vsel %vm269_vm0, %v579_v27, %v580_v55  ;;  %v639_v1 = vmul.f32 %v637_v45, %v2448_v16  ;;  %v543_v2 = vstv %s2563_s22  ;;  %v647_v62 = vmul.f32 %v2385_v24, %v635_v37  ;;  %s2669_s16 = sld [smem:[#allocation4 + $0x28]] }
  0x8e   : > { %v376_v57 = vadd.f32 %v2502_v17, %v366_v53  ;;  %v645_v17 = vmul.f32 %v2385_v24, %v2448_v16  ;;  %v585_v30 = vadd.f32 %v581_v9, %v565_v13  ;;  %v617_v25 = vrot.slane %v607_v23, 1  ;;  %s2672_s19 = sld [smem:[#allocation4 + $0x2a]] }
  0x8f   : > { %v618_v53 = vrot.slane %v609_v43, 1  ;;  %v2607_v21 = vmul.f32 %v2465_v39, %v665_v33  ;;  %v2612_v36 = vmul.f32 %v675_v47, %v2471_v56  ;;  %v683_v27 = vmul.f32 %v2396_v42, %v2471_v56  ;;  %s2675_s27 = sld [smem:[#allocation4 + $0x2d]] }
  0x90   : > { %v396_v63 = vadd.f32 %v392_v11, %v376_v57  ;;  %v593_v11 = vadd.f32 %v591_v49, %v585_v30  ;;  %v655_v24 = vrot.slane %v645_v17, 1  ;;  %v656_v55 = vrot.slane %v647_v62, 1  ;;  %s2679_s29 = sld [smem:[#allocation4 + $0x2b]]  ;;  %v901_v62 = vld [vmem:[%s2039_s13 + $0x58] sm:$0x1] }
  0x91   : > { %v619_v13 = vsel %vm269_vm0, %v617_v25, %v618_v53  ;;  %v685_v33 = vmul.f32 %v2396_v42, %v673_v41  ;;  %v2626_v47 = vmul.f32 %v2492_v4, %v703_v54  ;;  %v749_v30 = vstv %s2632_s15  ;;  %s2685_s30 = sld [smem:[#allocation4 + $0x2e]] }
  0x92   : > { %v404_v45 = vadd.f32 %v2515_v44, %v396_v63  ;;  %v714_v53 = vstv %s2620_s3  ;;  %s2739_s6 = sld [smem:[#allocation4 + $0xb]] }
  0x93   : > { %s2749_s8 = sld [smem:[#allocation4 + $0xe]] }
  0x94   : > { %v412_v57 = vmul.f32 %v411_v22, %v404_v45  ;;  %v430_v44 = vmul.f32 %v429_v8, %v404_v45  ;;  %v449_v49 = vmul.f32 %v448_v35, %v404_v45  ;;  %v468_v23 = vmul.f32 %v467_v40, %v404_v45  ;;  %s2754_s12 = sld [smem:[#allocation4 + $0x11]] }
  0x95   : > { %v487_v43 = vmul.f32 %v486_v26, %v404_v45  ;;  %v506_v37 = vmul.f32 %v505_v59, %v404_v45  ;;  %v525_v9 = vmul.f32 %v524_v50, %v404_v45  ;;  %v544_v63 = vmul.f32 %v543_v2, %v404_v45  ;;  %s2759_s18 = sld [smem:[#allocation4 + $0x14]] }
  0x96   : > { %v2635_v42 = vadd.f32 %v412_v57, %v2538_v51  ;;  %v2638_v54 = vadd.f32 %v430_v44, %v2549_v31  ;;  %v2641_v17 = vadd.f32 %v449_v49, %v2552_v18  ;;  %v2644_v22 = vadd.f32 %v468_v23, %v2559_v20  ;;  %s2761_s25 = sld [smem:[#allocation4 + $0x17]] }
  0x97   : > { %v2648_v8 = vadd.f32 %v487_v43, %v484_v10  ;;  %v2650_v2 = vadd.f32 %v506_v37, %v503_v7  ;;  %v2652_v35 = vadd.f32 %v525_v9, %v522_v29  ;;  %v2654_v51 = vadd.f32 %v544_v63, %v541_v34  ;;  %v865_v29 = vld [vmem:[%s2039_s13 + $0x48] sm:$0x1]  ;;  %s2769_s1 = sld [smem:[#allocation4 + $0x31]] }
  0x98   : > { %v603_v31 = vadd.f32 %v601_v32, %v593_v11  ;;  %v657_v18 = vsel %vm269_vm0, %v655_v24, %v656_v55  ;;  %v693_v20 = vrot.slane %v683_v27, 1  ;;  %v694_v40 = vrot.slane %v685_v33, 1  ;;  %s2771_s22 = sld [smem:[#allocation4 + $0x32]] }
  0x99   : > { %v711_v59 = vstv %s2614_s2  ;;  %v730_v32 = vstv %s2628_s0  ;;  %v733_v45 = vstv %s2630_s4  ;;  %v3276_v11 = vstv %s2026_s7  ;;  %s2724_s7 = sld [smem:[#allocation4 + $0x2]] }
  0x9a   : > { %v623_v10 = vadd.f32 %v619_v13, %v603_v31  ;;  %v695_v26 = vsel %vm269_vm0, %v693_v20, %v694_v40  ;;  %v712_v34 = vmul.f32 %v711_v59, %v2543_v58  ;;  %v731_v41 = vmul.f32 %v730_v32, %v2543_v58  ;;  %s2775_s2 = sld [smem:[#allocation4 + $0x33]] }
  0x9b   : > { %v869_v13 = vmul.f32 %v3276_v11, %v2410_v48  ;;  %v911_v24 = vmul.f32 %v2075_v14, %v2428_v61  ;;  %v750_v33 = vmul.f32 %v749_v30, %v2543_v58  ;;  %v752_v57 = vstv %s2646_s9  ;;  %s3283_s3 = sld [smem:[#allocation14_spill]] }
  0x9c   : > { %v631_v7 = vadd.f32 %v629_v0, %v623_v10  ;;  %v873_v0 = vmul.f32 %v2052_v3, %v2410_v48  ;;  %v771_v49 = vstv %s2659_s26  ;;  %v3277_v23 = vstv %s2032_s10  ;;  %s2726_s10 = sld [smem:[#allocation4 + $0x5]] }
  0x9d   : > { %v895_v43 = vmul.f32 %v2425_v19, %v3277_v23  ;;  %v913_v37 = vmul.f32 %v2075_v14, %v901_v62  ;;  %v787_v63 = vstv %s2661_s11  ;;  %v806_v31 = vstv %s2666_s17  ;;  %s2785_s0 = sld [smem:[#allocation4 + $0x35]] }
  0x9e   : > { %v641_v50 = vadd.f32 %v639_v1, %v631_v7  ;;  %v875_v1 = vmul.f32 %v2052_v3, %v865_v29  ;;  %v883_v27 = vrot.slane %v873_v0, 1  ;;  %v768_v3 = vstv %s2656_s24  ;;  %s2788_s4 = sld [smem:[#allocation4 + $0x36]] }
  0x9f   : > { %v3278_v20 = vstv %s2041_s14  ;;  %v921_v10 = vrot.slane %v911_v24, 1  ;;  %v922_v7 = vrot.slane %v913_v37, 1  ;;  %v769_v32 = vmul.f32 %v768_v3, %v2543_v58  ;;  %s2728_s14 = sld [smem:[#allocation4 + $0x8]] }
  0xa0   : > { %v661_v25 = vadd.f32 %v657_v18, %v641_v50  ;;  %v884_v44 = vrot.slane %v875_v1, 1  ;;  %v905_v40 = vmul.f32 %v3278_v20, %v2428_v61  ;;  %v825_v29 = vstv %s2672_s19  ;;  %s2790_s15 = sld [smem:[#allocation4 + $0x37]] }
  0xa1   : > { %v844_v14 = vstv %s2675_s27  ;;  %v790_v50 = vstv %s2664_s5  ;;  %v807_v30 = vmul.f32 %v806_v31, %v2543_v58  ;;  %v809_v1 = vstv %s2669_s16  ;;  %s3284_s9 = sld [smem:[#allocation12_spill]] }
  0xa2   : > { %v669_v55 = vadd.f32 %v2607_v21, %v661_v25  ;;  %v885_v21 = vsel %vm269_vm0, %v883_v27, %v884_v44  ;;  %v828_v62 = vstv %s2679_s29  ;;  %v847_v11 = vstv %s2685_s30  ;;  %3279 = sst [smem:[#allocation21_spill]] %s2726_s10 }
  0xa3   : > { %v889_v18 = vadd.f32 %v885_v21, %v869_v13  ;;  %v826_v13 = vmul.f32 %v825_v29, %v2543_v58  ;;  %v845_v27 = vmul.f32 %v844_v14, %v2543_v58  ;;  %v923_v24 = vsel %vm269_vm0, %v921_v10, %v922_v7  ;;  %s2799_s24 = sld [smem:[#allocation4 + $0x38]] }
  0xa4   : > { %v679_v9 = vadd.f32 %v2612_v36, %v669_v55  ;;  %v788_v36 = vmul.f32 %v787_v63, %v2543_v58  ;;  %v949_v20 = vmul.f32 %v2103_v28, %v2448_v16  ;;  %v3281_v7 = vstv %s2050_s21  ;;  %s2778_s21 = sld [smem:[#allocation4 + $0x34]] }
  0xa5   : > { %v897_v0 = vadd.f32 %v895_v43, %v889_v18  ;;  %s2807_s26 = sld [smem:[#allocation4 + $0x39]] }
  0xa6   : > { %v699_v59 = vadd.f32 %v695_v26, %v679_v9  ;;  %v959_v29 = vrot.slane %v949_v20, 1  ;;  %s2809_s11 = sld [smem:[#allocation4 + $0x3a]] }
  0xa7   : > { %v907_v26 = vadd.f32 %v905_v40, %v897_v0  ;;  %s2816_s5 = sld [smem:[#allocation4 + $0x3d]] }
  0xa8   : > { %v707_v25 = vadd.f32 %v2626_v47, %v699_v59  ;;  %v943_v59 = vmul.f32 %v3281_v7, %v2448_v16  ;;  %s3289_s17 = sld [smem:[#allocation16_spill]]  ;;  %v1253_v7 = vmul.f32 %v2295_v5, %v2448_v16 }
  0xa9   : > { %s3291_s16 = sld [smem:[#allocation13_spill]] }
  0xaa   : > { %v715_v55 = vmul.f32 %v714_v53, %v707_v25  ;;  %v734_v44 = vmul.f32 %v733_v45, %v707_v25  ;;  %v753_v3 = vmul.f32 %v752_v57, %v707_v25  ;;  %v772_v23 = vmul.f32 %v771_v49, %v707_v25  ;;  %v939_v53 = vld [vmem:[%s2039_s13 + $0x68] sm:$0x1]  ;;  %s2822_s19 = sld [smem:[#allocation4 + $0x3f]] }
  0xab   : > { %v791_v47 = vmul.f32 %v790_v50, %v707_v25  ;;  %v810_v43 = vmul.f32 %v809_v1, %v707_v25  ;;  %v829_v37 = vmul.f32 %v828_v62, %v707_v25  ;;  %v848_v9 = vmul.f32 %v847_v11, %v707_v25  ;;  %v1205_v1 = vld [vmem:[%s2039_s13 + $0x58] sm:$0x1]  ;;  %s2824_s27 = sld [smem:[#allocation4 + $0x40]] }
  0xac   : > { %v2730_v58 = vadd.f32 %v715_v55, %v712_v34  ;;  %v2732_v63 = vadd.f32 %v734_v44, %v731_v41  ;;  %v2734_v31 = vadd.f32 %v753_v3, %v750_v33  ;;  %v2736_v21 = vadd.f32 %v772_v23, %v769_v32  ;;  %v1169_v32 = vld [vmem:[%s2039_s13 + $0x48] sm:$0x1]  ;;  %s2826_s29 = sld [smem:[#allocation4 + $0x42]] }
  0xad   : > { %v2741_v45 = vadd.f32 %v791_v47, %v788_v36  ;;  %v2743_v57 = vadd.f32 %v810_v43, %v807_v30  ;;  %v2745_v49 = vadd.f32 %v829_v37, %v826_v13  ;;  %v2747_v18 = vadd.f32 %v848_v9, %v845_v27  ;;  %v977_v13 = vld [vmem:[%s2039_s13 + $0x78] sm:$0x1]  ;;  %s3292_s30 = sld [smem:[#allocation17_spill]] }
  0xae   : > { %v927_v34 = vadd.f32 %v923_v24, %v907_v26  ;;  %v3280_v41 = vstv %s2047_s20  ;;  %v951_v40 = vmul.f32 %v2103_v28, %v939_v53  ;;  %s2766_s20 = sld [smem:[#allocation4 + $0x30]]  ;;  %v1177_v28 = vmul.f32 %v2245_v15, %v2410_v48 }
  0xaf   : > { %v933_v33 = vmul.f32 %v2445_v6, %v3280_v41  ;;  %v1179_v36 = vmul.f32 %v2245_v15, %v1169_v32  ;;  %v3282_v30 = vstv %s2191_s28  ;;  %v1215_v27 = vmul.f32 %v2278_v46, %v2428_v61  ;;  %s3286_s28 = sld [smem:[#allocation15_spill]] }
  0xb0   : > { %v960_v14 = vrot.slane %v951_v40, 1  ;;  %v1173_v0 = vmul.f32 %v3282_v30, %v2410_v48  ;;  %v1187_v25 = vrot.slane %v1177_v28, 1  ;;  %v1217_v48 = vmul.f32 %v2278_v46, %v1205_v1 }
  0xb1   : > { %v935_v10 = vadd.f32 %v933_v33, %v927_v34  ;;  %v1188_v11 = vrot.slane %v1179_v36, 1  ;;  %v3285_v24 = vstv %s2067_s23  ;;  %v3287_v3 = vstv %s3283_s3  ;;  %s2811_s23 = sld [smem:[#allocation4 + $0x3c]]  ;;  %v1243_v33 = vld [vmem:[%s2039_s13 + $0x68] sm:$0x1] }
  0xb2   : > { %v961_v62 = vsel %vm269_vm0, %v959_v29, %v960_v14  ;;  %v971_v55 = vmul.f32 %v2465_v39, %v3285_v24  ;;  %v1199_v23 = vmul.f32 %v2425_v19, %v3287_v3  ;;  %v987_v47 = vmul.f32 %v2122_v38, %v2471_v56  ;;  %s2833_s3 = sld [smem:[#allocation4 + $0x45]] }
  0xb3   : > { %v945_v50 = vadd.f32 %v943_v59, %v935_v10  ;;  %v1189_v15 = vsel %vm269_vm0, %v1187_v25, %v1188_v11  ;;  %v989_v43 = vmul.f32 %v2122_v38, %v977_v13  ;;  %v1225_v46 = vrot.slane %v1215_v27, 1 }
  0xb4   : > { %v1193_v44 = vadd.f32 %v1189_v15, %v1173_v0  ;;  %v1226_v37 = vrot.slane %v1217_v48, 1  ;;  %v3288_v53 = vstv %s3284_s9  ;;  %v997_v20 = vrot.slane %v987_v47, 1  ;;  %s2841_s9 = sld [smem:[#allocation4 + $0x43]] }
  0xb5   : > { %v965_v26 = vadd.f32 %v961_v62, %v945_v50  ;;  %v981_v34 = vmul.f32 %v3288_v53, %v2471_v56  ;;  %v3290_v41 = vstv %s3286_s28  ;;  %v998_v40 = vrot.slane %v989_v43, 1  ;;  %s2856_s28 = sld [smem:[#allocation4 + $0x3b]] }
  0xb6   : > { %v1201_v19 = vadd.f32 %v1199_v23, %v1193_v44  ;;  %v1209_v38 = vmul.f32 %v3290_v41, %v2428_v61  ;;  %v1227_v10 = vsel %vm269_vm0, %v1225_v46, %v1226_v37  ;;  %v1255_v61 = vmul.f32 %v2295_v5, %v1243_v33  ;;  %v1281_v41 = vld [vmem:[%s2039_s13 + $0x78] sm:$0x1]  ;;  %s2897_s13 = sld [smem:[#allocation4 + $0x4b]] }
  0xb7   : > { %v973_v9 = vadd.f32 %v971_v55, %v965_v26  ;;  %v1015_v32 = vstv %s2766_s20  ;;  %v3293_v14 = vstv %s3289_s17  ;;  %v415_v36 = vstv %s2724_s7  ;;  %s2847_s20 = sld [smem:[#allocation4 + $0x46]] }
  0xb8   : > { %v1211_v29 = vadd.f32 %v1209_v38, %v1201_v19  ;;  %v1237_v28 = vmul.f32 %v2445_v6, %v3293_v14  ;;  %v433_v50 = vstv %s2726_s10  ;;  %v999_v30 = vsel %vm269_vm0, %v997_v20, %v998_v40  ;;  %s2891_s17 = sld [smem:[#allocation4 + $0x49]] }
  0xb9   : > { %v983_v59 = vadd.f32 %v981_v34, %v973_v9  ;;  %v3294_v0 = vstv %s3291_s16  ;;  %v1034_v25 = vstv %s2775_s2  ;;  %v3295_v6 = vstv %s3292_s30  ;;  %s2860_s2 = sld [smem:[#allocation4 + $0x3e]] }
  0xba   : > { %v1009_v5 = vmul.f32 %v2492_v4, %v3294_v0  ;;  %v1231_v1 = vadd.f32 %v1227_v10, %v1211_v29  ;;  %v1247_v62 = vmul.f32 %v3295_v6, %v2448_v16  ;;  %v2853_v11 = vmul.f32 %v1015_v32, %v2249_v12  ;;  %s2907_s16 = sld [smem:[#allocation4 + $0x4f]] }
  0xbb   : > { %v1053_v13 = vstv %s2788_s4  ;;  %v1263_v15 = vrot.slane %v1253_v7, 1  ;;  %v1264_v27 = vrot.slane %v1255_v61, 1  ;;  %v1003_v48 = vadd.f32 %v999_v30, %v983_v59  ;;  %s2866_s4 = sld [smem:[#allocation4 + $0x41]] }
  0xbc   : > { %v1018_v26 = vstv %s2769_s1  ;;  %v1072_v24 = vstv %s2807_s26  ;;  %v1239_v55 = vadd.f32 %v1237_v28, %v1231_v1  ;;  %v1022_v16 = vstv %s2771_s22  ;;  %s2871_s1 = sld [smem:[#allocation4 + $0x44]] }
  0xbd   : > { %v1035_v44 = vmul.f32 %v1034_v25, %v2249_v12  ;;  %v1037_v3 = vstv %s2778_s21  ;;  %v1041_v23 = vstv %s2785_s0  ;;  %v1054_v47 = vmul.f32 %v1053_v13, %v2249_v12  ;;  %s3296_s26 = sld [smem:[#allocation18_spill]] }
  0xbe   : > { %v1056_v43 = vstv %s2790_s15  ;;  %v1060_v46 = vstv %s2799_s24  ;;  %v1249_v37 = vadd.f32 %v1247_v62, %v1239_v55  ;;  %v1073_v9 = vmul.f32 %v1072_v24, %v2249_v12  ;;  %s2876_s21 = sld [smem:[#allocation4 + $0x47]] }
  0xbf   : > { %v1075_v53 = vstv %s2809_s11  ;;  %v1091_v34 = vstv %s2811_s23  ;;  %v1265_v19 = vsel %vm269_vm0, %v1263_v15, %v1264_v27  ;;  %v1011_v38 = vadd.f32 %v1009_v5, %v1003_v48  ;;  %s2883_s15 = sld [smem:[#allocation4 + $0x48]] }
  0xc0   : > { %v1110_v33 = vstv %s2822_s19  ;;  %v1129_v20 = vstv %s2826_s29  ;;  %v1148_v40 = vstv %s2833_s3  ;;  %v1094_v10 = vstv %s2816_s5  ;;  %s3298_s11 = sld [smem:[#allocation19_spill]] }
  0xc1   : > { %v1113_v7 = vstv %s2824_s27  ;;  %v1132_v61 = vstv %s2841_s9  ;;  %v1151_v29 = vstv %s2847_s20  ;;  %v1269_v14 = vadd.f32 %v1265_v19, %v1249_v37  ;;  %s2903_s23 = sld [smem:[#allocation4 + $0x4c]] }
  0xc2   : > { %v1291_v28 = vmul.f32 %v2320_v60, %v2471_v56  ;;  %v1293_v30 = vmul.f32 %v2320_v60, %v1281_v41  ;;  %v1092_v0 = vmul.f32 %v1091_v34, %v2249_v12  ;;  %v1111_v5 = vmul.f32 %v1110_v33, %v2249_v12  ;;  %s2905_s5 = sld [smem:[#allocation4 + $0x4e]] }
  0xc3   : > { %v3297_v59 = vstv %s3296_s26  ;;  %v1130_v25 = vmul.f32 %v1129_v20, %v2249_v12  ;;  %v1019_v1 = vmul.f32 %v1018_v26, %v1011_v38  ;;  %v1038_v6 = vmul.f32 %v1037_v3, %v1011_v38  ;;  %s2912_s19 = sld [smem:[#allocation4 + $0x51]] }
  0xc4   : > { %v1275_v32 = vmul.f32 %v2465_v39, %v3297_v59  ;;  %v1149_v39 = vmul.f32 %v1148_v40, %v2249_v12  ;;  %v1057_v62 = vmul.f32 %v1056_v43, %v1011_v38  ;;  %v1076_v60 = vmul.f32 %v1075_v53, %v1011_v38  ;;  %s2918_s27 = sld [smem:[#allocation4 + $0x52]] }
  0xc5   : > { %v1095_v13 = vmul.f32 %v1094_v10, %v1011_v38  ;;  %v1114_v15 = vmul.f32 %v1113_v7, %v1011_v38  ;;  %v1133_v27 = vmul.f32 %v1132_v61, %v1011_v38  ;;  %v1152_v48 = vmul.f32 %v1151_v29, %v1011_v38  ;;  %s2921_s29 = sld [smem:[#allocation4 + $0x54]] }
  0xc6   : > { %v1277_v24 = vadd.f32 %v1275_v32, %v1269_v14  ;;  %v3299_v12 = vstv %s3298_s11  ;;  %v1301_v37 = vrot.slane %v1291_v28, 1  ;;  %v1302_v26 = vrot.slane %v1293_v30, 1  ;;  %s2924_s30 = sld [smem:[#allocation4 + $0x55]] }
  0xc7   : > { %v1285_v55 = vmul.f32 %v3299_v12, %v2471_v56  ;;  %v1079_v3 = vstv %s2856_s28  ;;  %v1098_v43 = vstv %s2860_s2  ;;  %v1117_v53 = vstv %s2866_s4  ;;  %s3300_s20 = sld [smem:[#allocation25_spill]] }
  0xc8   : > { %v1136_v34 = vstv %s2871_s1  ;;  %v1020_v19 = vadd.f32 %v1019_v1, %v2853_v11  ;;  %v1039_v41 = vadd.f32 %v1038_v6, %v1035_v44  ;;  %v1058_v38 = vadd.f32 %v1057_v62, %v1054_v47  ;;  %s2934_s4 = sld [smem:[#allocation4 + $0x57]] }
  0xc9   : > { %v1077_v33 = vadd.f32 %v1076_v60, %v1073_v9  ;;  %v1096_v56 = vadd.f32 %v1095_v13, %v1092_v0  ;;  %v1115_v20 = vadd.f32 %v1114_v15, %v1111_v5  ;;  %v1134_v40 = vadd.f32 %v1133_v27, %v1130_v25  ;;  %s3301_s3 = sld [smem:[#allocation11_spill]] }
  0xca   : > { %v1155_v10 = vstv %s2876_s21  ;;  %v1153_v47 = vadd.f32 %v1152_v48, %v1149_v39  ;;  %v1287_v9 = vadd.f32 %v1285_v55, %v1277_v24  ;;  %v1303_v61 = vsel %vm269_vm0, %v1301_v37, %v1302_v26  ;;  %s2948_s9 = sld [smem:[#allocation4 + $0x58]] }
  0xcb   : > { %v1319_v59 = vstv %s2883_s15  ;;  %s2956_s28 = sld [smem:[#allocation4 + $0x5a]] }
  0xcc   : > { %s2964_s11 = sld [smem:[#allocation4 + $0x5b]] }
  0xcd   : > { %v1729_v11 = vld [vmem:[%s3300_s20 + $0x10] ss:$0 sm:$0xff]  ;;  %v1734_v44 = vld [vmem:[%s3300_s20 + $0x11] ss:$0 sm:$0xff]  ;;  %v1739_v28 = vld [vmem:[%s3300_s20 + $0x12] ss:$0 sm:$0xff] }
  0xce   : > { %v1744_v0 = vld [vmem:[%s3300_s20 + $0x13] ss:$0 sm:$0xff]  ;;  %v1759_v13 = vld [vmem:[%s3300_s20 + $0x16] ss:$0 sm:$0xff]  ;;  %v1764_v15 = vld [vmem:[%s3300_s20 + $0x17] ss:$0 sm:$0xff] }
  0xcf   : > { %s3302_s15 = sshll.u32 %s3301_s3, 8  ;;  %s3303_s24 = sld [smem:[#allocation26_spill]] }
  0xd0   : > { %s2973_s2 = sld [smem:[#allocation4 + $0x5d]] }
  0xd1   : > { %v1013_v7 = vpop.permute.xlu1 %1012  ;;  %s2975_s3 = sld [smem:[#allocation4 + $0x5e]] }
  0xd2   : > { %v1023_v32 = vmul.f32 %v1022_v16, %v1013_v7  ;;  %v1042_v29 = vmul.f32 %v1041_v23, %v1013_v7  ;;  %v1061_v14 = vmul.f32 %v1060_v46, %v1013_v7  ;;  %v1080_v30 = vmul.f32 %v1079_v3, %v1013_v7  ;;  %v1749_v16 = vld [vmem:[%s3300_s20 + $0x14] ss:$0 sm:$0xff]  ;;  %v1754_v46 = vld [vmem:[%s3300_s20 + $0x15] ss:$0 sm:$0xff]  ;;  %s3304_s1 = sld [smem:[#allocation20_spill]] }
  0xd3   : > { %v1099_v5 = vmul.f32 %v1098_v43, %v1013_v7  ;;  %v1118_v23 = vmul.f32 %v1117_v53, %v1013_v7  ;;  %v1137_v25 = vmul.f32 %v1136_v34, %v1013_v7  ;;  %v1156_v39 = vmul.f32 %v1155_v10, %v1013_v7 }
  0xd4   : > { %v1024_v1 = vadd.f32 %v1023_v32, %v1020_v19  ;;  %v1043_v6 = vadd.f32 %v1042_v29, %v1039_v41  ;;  %v1062_v62 = vadd.f32 %v1061_v14, %v1058_v38  ;;  %v1081_v60 = vadd.f32 %v1080_v30, %v1077_v33 }
  0xd5   : > { %s2971_s10 = scalar_lea.vmem %s3303_s24, %s3302_s15  ;;  %v1100_v27 = vadd.f32 %v1099_v5, %v1096_v56  ;;  %v1119_v48 = vadd.f32 %v1118_v23, %v1115_v20  ;;  %v1138_v24 = vadd.f32 %v1137_v25, %v1134_v40  ;;  %v1157_v12 = vadd.f32 %v1156_v39, %v1153_v47  ;;  %v1610_v39 = vld [vmem:[%s3300_s20] ss:$0 sm:$0xff]  ;;  %s3141_s15 = sld [smem:[#allocation4 + $0x2f]] }
  0xd6   : > { %v1030_v55 = vadd.f32 %v1729_v11, %v1024_v1  ;;  %v1049_v37 = vadd.f32 %v1734_v44, %v1043_v6  ;;  %v1068_v26 = vadd.f32 %v1739_v28, %v1062_v62  ;;  %v1087_v3 = vadd.f32 %v1744_v0, %v1081_v60  ;;  %v1614_v1 = vld [vmem:[%s3300_s20 + $0x1] ss:$0 sm:$0xff] }
  0xd7   : > { %v1106_v43 = vadd.f32 %v1749_v16, %v1100_v27  ;;  %v1125_v53 = vadd.f32 %v1754_v46, %v1119_v48  ;;  %v1144_v34 = vadd.f32 %v1759_v13, %v1138_v24  ;;  %v1163_v19 = vadd.f32 %v1764_v15, %v1157_v12  ;;  %v1619_v24 = vld [vmem:[%s3300_s20 + $0x2] ss:$0 sm:$0xff] }
  0xd8   : > { %v452_v41 = vstv %s2728_s14  ;;  %v471_v38 = vstv %s2739_s6  ;;  %1730 = vst [vmem:[%s2971_s10 + $0x10] sm:$0xff] %v1030_v55  ;;  %1735 = vst [vmem:[%s2971_s10 + $0x30] sm:$0xff] %v1049_v37  ;;  %v1307_v44 = vadd.f32 %v1303_v61, %v1287_v9  ;;  %v2998_v29 = vmul.f32 %v1319_v59, %v2453_v52  ;;  %s3001_s14 = sld [smem:[#allocation4 + $0x4a]] }
  0xd9   : > { %1740 = vst [vmem:[%s2971_s10 + $0x50] sm:$0xff] %v1068_v26  ;;  %1745 = vst [vmem:[%s2971_s10 + $0x70] sm:$0xff] %v1087_v3  ;;  %v1338_v33 = vstv %s2897_s13  ;;  %v1357_v56 = vstv %s2905_s5  ;;  %s3010_s6 = sld [smem:[#allocation4 + $0x4d]] }
  0xda   : > { %v490_v20 = vstv %s2749_s8  ;;  %v509_v40 = vstv %s2754_s12  ;;  %v528_v10 = vstv %s2759_s18  ;;  %1750 = vst [vmem:[%s2971_s10 + $0x90] sm:$0xff] %v1106_v43  ;;  %v3004_v28 = vmul.f32 %v1338_v33, %v2453_v52  ;;  %s3018_s12 = sld [smem:[#allocation4 + $0x50]] }
  0xdb   : > { %1755 = vst [vmem:[%s2971_s10 + $0xb0] sm:$0xff] %v1125_v53  ;;  %1760 = vst [vmem:[%s2971_s10 + $0xd0] sm:$0xff] %v1144_v34  ;;  %v1376_v7 = vstv %s2912_s19  ;;  %v547_v11 = vstv %s2761_s25  ;;  %v3008_v0 = vmul.f32 %v1357_v56, %v2453_v52  ;;  %s3030_s5 = sld [smem:[#allocation4 + $0x53]] }
  0xdc   : > { %1765 = vst [vmem:[%s2971_s10 + $0xf0] sm:$0xff] %v1163_v19  ;;  %v3305_v47 = vstv %s3304_s1  ;;  %v1322_v14 = vstv %s2891_s17  ;;  %v1341_v30 = vstv %s2903_s23  ;;  %v406_v25 = vpop.permute.xlu0 %405  ;;  %s3091_s1 = sld [smem:[#allocation4 + $0x1a]] }
  0xdd   : > { %v1313_v32 = vmul.f32 %v2492_v4, %v3305_v47  ;;  %v1360_v9 = vstv %s2907_s16  ;;  %v3014_v4 = vmul.f32 %v1376_v7, %v2453_v52  ;;  %v1379_v61 = vstv %s2918_s27  ;;  %v1624_v55 = vld [vmem:[%s3300_s20 + $0x3] ss:$0 sm:$0xff]  ;;  %v1629_v26 = vld [vmem:[%s3300_s20 + $0x4] ss:$0 sm:$0xff]  ;;  %s3097_s23 = sld [smem:[#allocation4 + $0x1d]] }
  0xde   : > { %v1395_v59 = vstv %s2921_s29  ;;  %v1398_v5 = vstv %s2924_s30  ;;  %v1414_v16 = vstv %s2934_s4  ;;  %v1417_v23 = vstv %s2948_s9  ;;  %s3045_s9 = sld [smem:[#allocation4 + $0x56]] }
  0xdf   : > { %v1433_v46 = vstv %s2956_s28  ;;  %v1315_v6 = vadd.f32 %v1313_v32, %v1307_v44  ;;  %v1436_v62 = vstv %s2964_s11  ;;  %v1452_v60 = vstv %s2973_s2  ;;  %s3053_s11 = sld [smem:[#allocation4 + $0x59]]  ;;  %v1644_v33 = vld [vmem:[%s3300_s20 + $0x7] ss:$0 sm:$0xff] }
  0xe0   : > { %v1455_v13 = vstv %s2975_s3  ;;  %v416_v15 = vmul.f32 %v415_v36, %v406_v25  ;;  %v434_v27 = vmul.f32 %v433_v50, %v406_v25  ;;  %v453_v48 = vmul.f32 %v452_v41, %v406_v25  ;;  %v1634_v50 = vld [vmem:[%s3300_s20 + $0x5] ss:$0 sm:$0xff]  ;;  %s3065_s2 = sld [smem:[#allocation4 + $0x5c]] }
  0xe1   : > { %v472_v12 = vmul.f32 %v471_v38, %v406_v25  ;;  %v491_v37 = vmul.f32 %v490_v20, %v406_v25  ;;  %v510_v36 = vmul.f32 %v509_v40, %v406_v25  ;;  %v529_v3 = vmul.f32 %v528_v10, %v406_v25  ;;  %v1639_v38 = vld [vmem:[%s3300_s20 + $0x6] ss:$0 sm:$0xff]  ;;  %s3071_s3 = sld [smem:[#allocation4 + $0x5f]] }
  0xe2   : > { %v548_v43 = vmul.f32 %v547_v11, %v406_v25  ;;  %v417_v53 = vadd.f32 %v416_v15, %v2635_v42  ;;  %v435_v34 = vadd.f32 %v434_v27, %v2638_v54  ;;  %v454_v19 = vadd.f32 %v453_v48, %v2641_v17  ;;  %s3103_s16 = sld [smem:[#allocation4 + $0x20]] }
  0xe3   : > { %v473_v41 = vadd.f32 %v472_v12, %v2644_v22  ;;  %v492_v42 = vadd.f32 %v491_v37, %v2648_v8  ;;  %v511_v54 = vadd.f32 %v510_v36, %v2650_v2  ;;  %v530_v17 = vadd.f32 %v529_v3, %v2652_v35  ;;  %s3109_s27 = sld [smem:[#allocation4 + $0x23]]  ;;  %v1799_v36 = vld [vmem:[%s3300_s20 + $0x1a] ss:$0 sm:$0xff]  ;;  %v1804_v3 = vld [vmem:[%s3300_s20 + $0x1b] ss:$0 sm:$0xff] }
  0xe4   : > { %v549_v22 = vadd.f32 %v548_v43, %v2654_v51  ;;  %v423_v56 = vadd.f32 %v1610_v39, %v417_v53  ;;  %v441_v20 = vadd.f32 %v1614_v1, %v435_v34  ;;  %v460_v40 = vadd.f32 %v1619_v24, %v454_v19  ;;  %s3117_s18 = sld [smem:[#allocation4 + $0x26]]  ;;  %v1809_v53 = vld [vmem:[%s3300_s20 + $0x1c] ss:$0 sm:$0xff]  ;;  %v1814_v19 = vld [vmem:[%s3300_s20 + $0x1d] ss:$0 sm:$0xff] }
  0xe5   : > { %v479_v10 = vadd.f32 %v1624_v55, %v473_v41  ;;  %v498_v7 = vadd.f32 %v1629_v26, %v492_v42  ;;  %v517_v8 = vadd.f32 %v1634_v50, %v511_v54  ;;  %v536_v11 = vadd.f32 %v1639_v38, %v530_v17  ;;  %s3125_s19 = sld [smem:[#allocation4 + $0x29]] }
  0xe6   : > { %v555_v2 = vadd.f32 %v1644_v33, %v549_v22  ;;  %424 = vst [vmem:[%s2971_s10] sm:$0xff] %v423_v56  ;;  %1615 = vst [vmem:[%s2971_s10 + $0x20] sm:$0xff] %v441_v20  ;;  %v1323_v35 = vmul.f32 %v1322_v14, %v1315_v6  ;;  %v1396_v51 = vmul.f32 %v1395_v59, %v2453_v52  ;;  %v1326_v15 = vstv %s3001_s14  ;;  %s3133_s28 = sld [smem:[#allocation4 + $0x2c]]  ;;  %v1819_v22 = vld [vmem:[%s3300_s20 + $0x1e] ss:$0 sm:$0xff] }
  0xe7   : > { %1620 = vst [vmem:[%s2971_s10 + $0x40] sm:$0xff] %v460_v40  ;;  %1625 = vst [vmem:[%s2971_s10 + $0x60] sm:$0xff] %v479_v10  ;;  %v1415_v44 = vmul.f32 %v1414_v16, %v2453_v52  ;;  %v1434_v47 = vmul.f32 %v1433_v46, %v2453_v52  ;;  %v1342_v32 = vmul.f32 %v1341_v30, %v1315_v6  ;;  %v1345_v27 = vstv %s3010_s6  ;;  %v1824_v56 = vld [vmem:[%s3300_s20 + $0x1f] ss:$0 sm:$0xff] }
  0xe8   : > { %1630 = vst [vmem:[%s2971_s10 + $0x80] sm:$0xff] %v498_v7  ;;  %1635 = vst [vmem:[%s2971_s10 + $0xa0] sm:$0xff] %v517_v8  ;;  %v1361_v14 = vmul.f32 %v1360_v9, %v1315_v6  ;;  %v1380_v59 = vmul.f32 %v1379_v61, %v1315_v6  ;;  %v1399_v25 = vmul.f32 %v1398_v5, %v1315_v6  ;;  %v1364_v48 = vstv %s3018_s12 }
  0xe9   : > { %1640 = vst [vmem:[%s2971_s10 + $0xc0] sm:$0xff] %v536_v11  ;;  %1645 = vst [vmem:[%s2971_s10 + $0xe0] sm:$0xff] %v555_v2  ;;  %v1418_v16 = vmul.f32 %v1417_v23, %v1315_v6  ;;  %v1437_v39 = vmul.f32 %v1436_v62, %v1315_v6  ;;  %v1453_v46 = vmul.f32 %v1452_v60, %v2453_v52  ;;  %v1383_v24 = vstv %s3030_s5  ;;  %v1789_v60 = vld [vmem:[%s3300_s20 + $0x18] ss:$0 sm:$0xff] }
  0xea   : > { %v1456_v1 = vmul.f32 %v1455_v13, %v1315_v6  ;;  %v1324_v30 = vadd.f32 %v1323_v35, %v2998_v29  ;;  %v1402_v9 = vstv %s3045_s9  ;;  %v1421_v12 = vstv %s3053_s11  ;;  %v1794_v29 = vld [vmem:[%s3300_s20 + $0x19] ss:$0 sm:$0xff] }
  0xeb   : > { %v1440_v61 = vstv %s3065_s2  ;;  %v1343_v5 = vadd.f32 %v1342_v32, %v3004_v28  ;;  %v1362_v52 = vadd.f32 %v1361_v14, %v3008_v0  ;;  %v1381_v23 = vadd.f32 %v1380_v59, %v3014_v4 }
  0xec   : > { %v1459_v6 = vstv %s3071_s3  ;;  %v1400_v13 = vadd.f32 %v1399_v25, %v1396_v51  ;;  %v1419_v55 = vadd.f32 %v1418_v16, %v1415_v44  ;;  %v1438_v37 = vadd.f32 %v1437_v39, %v1434_v47 }
  0xed   : > { %v1317_v62 = vpop.permute.xlu1 %1316  ;;  %v1457_v28 = vadd.f32 %v1456_v1, %v1453_v46  ;;  %v718_v14 = vstv %s3091_s1  ;;  %v737_v59 = vstv %s3097_s23  ;;  %v756_v25 = vstv %s3103_s16 }
  0xee   : > { %v1327_v0 = vmul.f32 %v1326_v15, %v1317_v62  ;;  %v1346_v4 = vmul.f32 %v1345_v27, %v1317_v62  ;;  %v1365_v26 = vmul.f32 %v1364_v48, %v1317_v62  ;;  %v1384_v50 = vmul.f32 %v1383_v24, %v1317_v62  ;;  %v1669_v24 = vld [vmem:[%s3300_s20 + $0x8] ss:$0 sm:$0xff] }
  0xef   : > { %v1403_v43 = vmul.f32 %v1402_v9, %v1317_v62  ;;  %v1422_v34 = vmul.f32 %v1421_v12, %v1317_v62  ;;  %v1441_v41 = vmul.f32 %v1440_v61, %v1317_v62  ;;  %v1460_v38 = vmul.f32 %v1459_v6, %v1317_v62  ;;  %v1674_v9 = vld [vmem:[%s3300_s20 + $0x9] ss:$0 sm:$0xff]  ;;  %v1689_v6 = vld [vmem:[%s3300_s20 + $0xc] ss:$0 sm:$0xff] }
  0xf0   : > { %v1328_v33 = vadd.f32 %v1327_v0, %v1324_v30  ;;  %v1347_v42 = vadd.f32 %v1346_v4, %v1343_v5  ;;  %v1366_v54 = vadd.f32 %v1365_v26, %v1362_v52  ;;  %v1385_v17 = vadd.f32 %v1384_v50, %v1381_v23  ;;  %v1679_v5 = vld [vmem:[%s3300_s20 + $0xa] ss:$0 sm:$0xff]  ;;  %v1684_v52 = vld [vmem:[%s3300_s20 + $0xb] ss:$0 sm:$0xff]  ;;  %v1694_v0 = vld [vmem:[%s3300_s20 + $0xd] ss:$0 sm:$0xff] }
  0xf1   : > { %v1404_v20 = vadd.f32 %v1403_v43, %v1400_v13  ;;  %v1423_v40 = vadd.f32 %v1422_v34, %v1419_v55  ;;  %v1442_v10 = vadd.f32 %v1441_v41, %v1438_v37  ;;  %v1461_v7 = vadd.f32 %v1460_v38, %v1457_v28  ;;  %v1699_v4 = vld [vmem:[%s3300_s20 + $0xe] ss:$0 sm:$0xff] }
  0xf2   : > { %v1334_v8 = vadd.f32 %v1789_v60, %v1328_v33  ;;  %v1353_v11 = vadd.f32 %v1794_v29, %v1347_v42  ;;  %v1372_v2 = vadd.f32 %v1799_v36, %v1366_v54  ;;  %v1391_v35 = vadd.f32 %v1804_v3, %v1385_v17 }
  0xf3   : > { %v1410_v51 = vadd.f32 %v1809_v53, %v1404_v20  ;;  %v1429_v44 = vadd.f32 %v1814_v19, %v1423_v40  ;;  %v1448_v47 = vadd.f32 %v1819_v22, %v1442_v10  ;;  %v1467_v32 = vadd.f32 %v1824_v56, %v1461_v7 }
  0xf4   : > { %1790 = vst [vmem:[%s2971_s10 + $0x18] sm:$0xff] %v1334_v8  ;;  %1795 = vst [vmem:[%s2971_s10 + $0x38] sm:$0xff] %v1353_v11  ;;  %v775_v16 = vstv %s3109_s27  ;;  %v794_v39 = vstv %s3117_s18 }
  0xf5   : > { %1800 = vst [vmem:[%s2971_s10 + $0x58] sm:$0xff] %v1372_v2  ;;  %1805 = vst [vmem:[%s2971_s10 + $0x78] sm:$0xff] %v1391_v35  ;;  %v813_v46 = vstv %s3125_s19  ;;  %v832_v1 = vstv %s3133_s28 }
  0xf6   : > { %1810 = vst [vmem:[%s2971_s10 + $0x98] sm:$0xff] %v1410_v51  ;;  %1815 = vst [vmem:[%s2971_s10 + $0xb8] sm:$0xff] %v1429_v44  ;;  %v851_v15 = vstv %s3141_s15 }
  0xf7   : > { %1820 = vst [vmem:[%s2971_s10 + $0xd8] sm:$0xff] %v1448_v47  ;;  %1825 = vst [vmem:[%s2971_s10 + $0xf8] sm:$0xff] %v1467_v32 }
  0xfa   : > { %v709_v27 = vpop.permute.xlu0 %708 }
  0xfb   : > { %v719_v48 = vmul.f32 %v718_v14, %v709_v27  ;;  %v738_v30 = vmul.f32 %v737_v59, %v709_v27  ;;  %v757_v12 = vmul.f32 %v756_v25, %v709_v27  ;;  %v776_v61 = vmul.f32 %v775_v16, %v709_v27 }
  0xfc   : > { %v795_v23 = vmul.f32 %v794_v39, %v709_v27  ;;  %v814_v62 = vmul.f32 %v813_v46, %v709_v27  ;;  %v833_v60 = vmul.f32 %v832_v1, %v709_v27  ;;  %v852_v29 = vmul.f32 %v851_v15, %v709_v27 }
  0xfd   : > { %v720_v13 = vadd.f32 %v719_v48, %v2730_v58  ;;  %v739_v55 = vadd.f32 %v738_v30, %v2732_v63  ;;  %v758_v37 = vadd.f32 %v757_v12, %v2734_v31  ;;  %v777_v28 = vadd.f32 %v776_v61, %v2736_v21  ;;  %v1704_v58 = vld [vmem:[%s3300_s20 + $0xf] ss:$0 sm:$0xff] }
  0xfe   : > { %v796_v63 = vadd.f32 %v795_v23, %v2741_v45  ;;  %v815_v31 = vadd.f32 %v814_v62, %v2743_v57  ;;  %v834_v21 = vadd.f32 %v833_v60, %v2745_v49  ;;  %v853_v26 = vadd.f32 %v852_v29, %v2747_v18 }
  0xff   : > { %v726_v36 = vadd.f32 %v1669_v24, %v720_v13  ;;  %v745_v50 = vadd.f32 %v1674_v9, %v739_v55  ;;  %v764_v3 = vadd.f32 %v1679_v5, %v758_v37  ;;  %v783_v43 = vadd.f32 %v1684_v52, %v777_v28 }
 0x100   : > { %v802_v53 = vadd.f32 %v1689_v6, %v796_v63  ;;  %v821_v34 = vadd.f32 %v1694_v0, %v815_v31  ;;  %v840_v19 = vadd.f32 %v1699_v4, %v834_v21  ;;  %v859_v41 = vadd.f32 %v1704_v58, %v853_v26 }
 0x101   : > { %1670 = vst [vmem:[%s2971_s10 + $0x8] sm:$0xff] %v726_v36  ;;  %1675 = vst [vmem:[%s2971_s10 + $0x28] sm:$0xff] %v745_v50 }
 0x102   : > { %1680 = vst [vmem:[%s2971_s10 + $0x48] sm:$0xff] %v764_v3  ;;  %1685 = vst [vmem:[%s2971_s10 + $0x68] sm:$0xff] %v783_v43 }
 0x103   : > { %1690 = vst [vmem:[%s2971_s10 + $0x88] sm:$0xff] %v802_v53  ;;  %1695 = vst [vmem:[%s2971_s10 + $0xa8] sm:$0xff] %v821_v34 }
 0x104   : > { %1700 = vst [vmem:[%s2971_s10 + $0xc8] sm:$0xff] %v840_v19  ;;  %1705 = vst [vmem:[%s2971_s10 + $0xe8] sm:$0xff] %v859_v41 }
 0x105 PF: > { %s3307_s13 = sld [smem:[#allocation9_spill]] }
 0x106   : > { %s3308_s15 = sld [smem:[#allocation8_spill]] }
 0x107   : > { %s3309_s16 = sld [smem:[#allocation10_spill]] }
 0x10b   : > { %s16_s17 = sadd.s32 1, %s3307_s13  }
 0x10c   : > { %p13_p4 = scmp.ge.s32.totalorder %s16_s17, 4  }
 0x10e   :  { %15 = sbr.rel (!%p13_p4) target bundleno = 9 (0x9), region = 108 }
 0x113   :  { %1497 = vsyncpa [#allocation3], 1 }
 0x114   :  { %1499 = vsyncpa [#allocation3 + $0x1], 1 }
 0x115   :  { %1500 = vsyncpa [#allocation5], 1 }

</bundles_post_ra>
